<compile_context>
chip_gen: v5e
topology: v5e:2x2
jax: 0.10.0
libtpu: 0.0.40
codegen_flags: <defaults>
</compile_context>

<pallas_src>
import functools
import math

import jax
import jax.numpy as jnp
from jax.experimental import pallas as pl
from jax.experimental.pallas import tpu as pltpu


_INV_SQRT2 = 0.7071067811865476
_NEG_PAD = -1e30          # finite stand-in for MaxPool2d's implicit -inf padding


def _round_up(v, m):
    return -(-v // m) * m


def _erf_approx(z):
    """Abramowitz & Stegun 7.1.26 erf approximation, |error| <= 1.5e-7."""
    a1, a2, a3, a4, a5 = (0.254829592, -0.284496736, 1.421413741,
                          -1.453152027, 1.061405429)
    p = 0.3275911
    sgn = jnp.where(z < 0.0, -1.0, 1.0)
    az = jnp.abs(z)
    # EUP reciprocal keeps the divide off the (saturating) VALU slot.
    t = pl.reciprocal(1.0 + p * az, approx=False)
    poly = ((((a5 * t + a4) * t + a3) * t + a2) * t + a1) * t
    return sgn * (1.0 - poly * jnp.exp(-az * az))


def _gelu_exact(x):
    # Matches torch.nn.GELU() (erf form) to ~1e-7.
    return 0.5 * x * (1.0 + _erf_approx(x * _INV_SQRT2))


def _high_mixer_kernel(xc_ref, xp_ref, w1_ref, wd_ref, w2_ref, b2_ref,
                       out_ref, y_ref, *, wp, n_out):
    """One (batch, H-tile) grid step.

    xc_ref/xp_ref : (1, 1, rows_pad, C)  bf16  padded, flattened input slabs
    w1_ref/w2_ref : (C, CD)              bf16  1x1 conv weights (in, out)
    wd_ref        : (9, CD)              f32   depthwise 3x3 weights
    b2_ref        : (1, CD)              f32   pool-branch 1x1 conv bias
    out_ref       : (1, 1, n_out, 2*CD)  f32   lane-concatenated [cnn | pool]
    y_ref         : (rows_pad, CD)       f32   VMEM scratch for conv1 output
    """
    # ----------------- CNN branch: 1x1 conv -> depthwise 3x3 ----------------
    # bf16 x bf16 MXU matmul with f32 accumulation, result parked in VMEM so
    # the 9 taps below are simple (aligned-base + kx) ref loads.
    y_ref[...] = jnp.dot(xc_ref[0, 0], w1_ref[...],
                         preferred_element_type=jnp.float32)
    acc = None
    for ky in range(3):
        base = ky * wp                       # sublane-aligned (wp % 8 == 0)
        for kx in range(3):
            t = 3 * ky + kx
            tap = y_ref[base + kx:base + kx + n_out, :] * wd_ref[t:t + 1, :]
            acc = tap if acc is None else acc + tap

    # ----------------- Pool branch: 3x3 maxpool -> 1x1 conv + bias ----------
    pm = None
    for ky in range(3):
        base = ky * wp
        for kx in range(3):
            v = xp_ref[0, 0, base + kx:base + kx + n_out, :]
            pm = v if pm is None else jnp.maximum(pm, v)
    px = jnp.dot(pm, w2_ref[...],
                 preferred_element_type=jnp.float32) + b2_ref[...]

    # Lane-concat the two branches, one wide GELU, one lane-dense store.
    comb = jnp.concatenate([acc, px], axis=-1)           # (n_out, 2*CD)
    out_ref[0, 0] = _gelu_exact(comb)


def _pick_tile_h(H, wp):
    """Divisor of H, capped so per-tile slabs stay a few MiB, and (when
    possible) >= 2 tiles so both v7x TensorCores get work even at batch 1."""
    budget_rows = 4096
    th = max(1, min(H, budget_rows // max(wp, 1)))
    while H % th:
        th -= 1
    if th == H and H > 1:
        th = H // 2
        while H % th:
            th -= 1
    return th


def high_mixer_forward(x, params, tile_h=None):
    """x: (B, dim, H, W) NCHW.  Returns (B, 2*dim, H, W) float32."""
    B, dim, H, W = x.shape
    assert dim % 2 == 0, "HighMixer requires an even channel count"
    C = dim // 2
    CD = 2 * C
    wp = _round_up(W + 2, 8)             # padded row width, sublane-aligned
    if tile_h is None:
        tile_h = _pick_tile_h(H, wp)
    assert H % tile_h == 0
    nT = H // tile_h
    n_out = tile_h * wp                  # flattened output rows per tile
    rows_in = (tile_h + 2) * wp          # input rows per tile incl. 2-row halo
    rows_pad = rows_in + 8               # slack so the kx=1,2 taps stay in bounds

    # ---- channels-last bf16 slabs, spatially padded, H-tiled with halo -----
    xf = x.astype(jnp.float32)
    xc = jnp.transpose(xf[:, :C], (0, 2, 3, 1))            # (B, H, W, C)
    xp = jnp.transpose(xf[:, C:], (0, 2, 3, 1))
    xc = jnp.pad(xc, ((0, 0), (1, 1), (1, wp - W - 1), (0, 0)))
    xp = jnp.pad(xp, ((0, 0), (1, 1), (1, wp - W - 1), (0, 0)),
                 constant_values=_NEG_PAD)
    xc = xc.astype(jnp.bfloat16)
    xp = xp.astype(jnp.bfloat16)

    xc_t = jnp.stack([xc[:, t * tile_h:t * tile_h + tile_h + 2]
                      for t in range(nT)], axis=1)         # (B,nT,TH+2,wp,C)
    xp_t = jnp.stack([xp[:, t * tile_h:t * tile_h + tile_h + 2]
                      for t in range(nT)], axis=1)
    xc_t = xc_t.reshape(B, nT, rows_in, C)
    xp_t = xp_t.reshape(B, nT, rows_in, C)
    xc_t = jnp.pad(xc_t, ((0, 0), (0, 0), (0, rows_pad - rows_in), (0, 0)))
    xp_t = jnp.pad(xp_t, ((0, 0), (0, 0), (0, rows_pad - rows_in), (0, 0)),
                   constant_values=_NEG_PAD)

    # Weights stored (in_features, out_features) so y = x @ W (+ b).
    w1 = params["conv1_w"].reshape(CD, C).T.astype(jnp.bfloat16)    # (C, CD)
    wd = params["proj1_w"].reshape(CD, 9).T.astype(jnp.float32)     # (9, CD)
    w2 = params["proj2_w"].reshape(CD, C).T.astype(jnp.bfloat16)    # (C, CD)
    b2 = params["proj2_b"].reshape(1, CD).astype(jnp.float32)       # (1, CD)

    # ---- VMEM budget / advisory cost ---------------------------------------
    lane = 128
    c_l = _round_up(C, lane)
    cd_l = _round_up(CD, lane)
    cd2_l = _round_up(2 * CD, lane)
    est = (2 * 2 * rows_pad * c_l * 2        # double-buffered bf16 input slabs
           + 2 * n_out * cd2_l * 4           # double-buffered f32 output block
           + rows_pad * cd_l * 4             # y scratch
           + 6 * n_out * cd_l * 4            # tap / maxpool / matmul temporaries
           + 3 * n_out * cd2_l * 4)          # concat + GELU temporaries
    vmem_limit = int(min(max(2 * est, 16 * (1 << 20)), 48 * (1 << 20)))

    flops_tile = (2 * rows_pad * C * CD          # conv1
                  + 18 * n_out * CD              # depthwise 3x3 taps
                  + 8 * n_out * C                # 3x3 maxpool
                  + 2 * n_out * C * CD           # conv2
                  + 50 * n_out * 2 * CD)         # GELU polynomial
    cost = pl.CostEstimate(
        flops=int(B * nT * flops_tile),
        transcendentals=int(B * nT * n_out * 2 * CD),
        bytes_accessed=int(B * nT * (2 * rows_pad * C * 2
                                     + n_out * 2 * CD * 4)
                           + 2 * 2 * C * CD + (9 + 1) * CD * 4),
    )

    kernel = functools.partial(_high_mixer_kernel, wp=wp, n_out=n_out)
    out = pl.pallas_call(
        kernel,
        out_shape=jax.ShapeDtypeStruct((B, nT, n_out, 2 * CD), jnp.float32),
        grid=(B, nT),
        in_specs=[
            pl.BlockSpec((1, 1, rows_pad, C), lambda b, t: (b, t, 0, 0)),  # cnn half
            pl.BlockSpec((1, 1, rows_pad, C), lambda b, t: (b, t, 0, 0)),  # pool half
            pl.BlockSpec((C, CD), lambda b, t: (0, 0)),                    # w1 (resident)
            pl.BlockSpec((9, CD), lambda b, t: (0, 0)),                    # wd (resident)
            pl.BlockSpec((C, CD), lambda b, t: (0, 0)),                    # w2 (resident)
            pl.BlockSpec((1, CD), lambda b, t: (0, 0)),                    # b2 (resident)
        ],
        out_specs=pl.BlockSpec((1, 1, n_out, 2 * CD), lambda b, t: (b, t, 0, 0)),
        scratch_shapes=[pltpu.VMEM((rows_pad, CD), jnp.float32)],
        compiler_params=pltpu.CompilerParams(
            dimension_semantics=("parallel", "parallel"),
            vmem_limit_bytes=vmem_limit),
        cost_estimate=cost,
    )(xc_t, xp_t, w1, wd, w2, b2)

    # (B, nT, TH*wp, 2CD) -> (B, H, wp, 2CD) -> crop junk cols -> NCHW.
    out = out.reshape(B, H, wp, 2 * CD)[:, :, :W, :]
    out = jnp.transpose(out, (0, 3, 1, 2))                 # (B, 2*dim, H, W)
    return out


def _reference_forward(x, params, bf16_inputs=False):
    """Pure-JAX reference matching PyTorch HighMixer.forward (NCHW).

    With bf16_inputs=True the 1x1-conv inputs/weights are quantized to bf16
    exactly like the kernel's HBM slabs / MXU operands, isolating kernel
    semantics from the intentional bf16 storage error."""
    B, dim, H, W = x.shape
    C = dim // 2
    CD = 2 * C
    f32 = jnp.float32
    hi = jax.lax.Precision.HIGHEST

    def q(a):
        a = a.astype(f32)
        return a.astype(jnp.bfloat16).astype(f32) if bf16_inputs else a

    xc = q(x[:, :C])
    w1 = q(params["conv1_w"].reshape(CD, C))
    y = jnp.einsum("bchw,dc->bdhw", xc, w1, precision=hi)
    yp = jnp.pad(y, ((0, 0), (0, 0), (1, 1), (1, 1)))
    wd = params["proj1_w"].reshape(CD, 3, 3).astype(f32)
    cx = jnp.zeros_like(y)
    for ky in range(3):
        for kx in range(3):
            cx = cx + yp[:, :, ky:ky + H, kx:kx + W] * wd[None, :, ky, kx, None, None]
    cx = jax.nn.gelu(cx, approximate=False)

    xp = q(x[:, C:])
    xpp = jnp.pad(xp, ((0, 0), (0, 0), (1, 1), (1, 1)),
                  constant_values=-jnp.inf)
    pm = xpp[:, :, 0:H, 0:W]
    for ky in range(3):
        for kx in range(3):
            pm = jnp.maximum(pm, xpp[:, :, ky:ky + H, kx:kx + W])
    w2 = q(params["proj2_w"].reshape(CD, C))
    b2 = params["proj2_b"].astype(f32)
    px = jnp.einsum("bchw,dc->bdhw", pm, w2, precision=hi) + b2[None, :, None, None]
    px = jax.nn.gelu(px, approximate=False)
    return jnp.concatenate([cx, px], axis=1)


def init_params(key, dim):
    C = dim // 2
    CD = 2 * C
    k1, k2, k3, k4 = jax.random.split(key, 4)
    return {
        # PyTorch-shaped conv weights: (out, in, kh, kw); depthwise (out, 1, 3, 3).
        "conv1_w": jax.random.normal(k1, (CD, C, 1, 1), jnp.float32) / math.sqrt(C),
        "proj1_w": jax.random.normal(k2, (CD, 1, 3, 3), jnp.float32) / 3.0,
        "proj2_w": jax.random.normal(k3, (CD, C, 1, 1), jnp.float32) / math.sqrt(C),
        "proj2_b": jax.random.normal(k4, (CD,), jnp.float32) * 0.1,
    }


if __name__ == "__main__":
    B, dim, H, W = 2, 4, 16, 16          # cnn_in = pool_in = 2, out channels = 8

    key = jax.random.PRNGKey(0)
    kx_key, kp_key = jax.random.split(key)
    x = jax.random.normal(kx_key, (B, dim, H, W), jnp.float32)
    params = init_params(kp_key, dim)

    out = jax.block_until_ready(high_mixer_forward(x, params))
    assert out.shape == (B, 2 * dim, H, W), out.shape

    # Strict check vs a reference that applies the same bf16 quantization the
    # kernel uses for its matmul operands (isolates kernel semantics from the
    # intentional bf16 storage error).
    ref_q = _reference_forward(x, params, bf16_inputs=True)
    err_q = float(jnp.max(jnp.abs(out - ref_q)))
    assert err_q < 2e-3, "kernel mismatch vs bf16-quantized reference: %e" % err_q

    # Loose sanity check vs the exact f32 reference (bounds the bf16 error).
    ref = _reference_forward(x, params, bf16_inputs=False)
    err = float(jnp.max(jnp.abs(out - ref)))
    assert err < 1e-1, "kernel mismatch vs f32 reference: %e" % err

    print("KERNEL_OK")
</pallas_src>

<mosaic_0001>
module attributes {stable_mosaic.version = 11 : i64} {
  func.func @_high_mixer_kernel(%arg0: i32, %arg1: i32, %arg2: memref<1x1x248x2xbf16, #tpu.memory_space<vmem>>, %arg3: memref<1x1x248x2xbf16, #tpu.memory_space<vmem>>, %arg4: memref<2x4xbf16, #tpu.memory_space<vmem>>, %arg5: memref<9x4xf32, #tpu.memory_space<vmem>>, %arg6: memref<2x4xbf16, #tpu.memory_space<vmem>>, %arg7: memref<1x4xf32, #tpu.memory_space<vmem>>, %arg8: memref<1x1x192x8xf32, #tpu.memory_space<vmem>>, %arg9: memref<248x4xf32, #tpu.memory_space<vmem>>) attributes {dimension_semantics = [#tpu.dimension_semantics<parallel>, #tpu.dimension_semantics<parallel>], iteration_bounds = array<i64: 2, 2>, scalar_prefetch = 0 : i64, scratch_operands = 1 : i64, tpu.core_type = #tpu.core_type<tc>, window_params = [{transform_indices = @transform_0, window_bounds = array<i64: 1, 1, 248, 2>}, {transform_indices = @transform_1, window_bounds = array<i64: 1, 1, 248, 2>}, {pipeline_mode = #tpu.pipeline_mode<synchronous>, transform_indices = @transform_2, window_bounds = array<i64: 2, 4>}, {pipeline_mode = #tpu.pipeline_mode<synchronous>, transform_indices = @transform_3, window_bounds = array<i64: 9, 4>}, {pipeline_mode = #tpu.pipeline_mode<synchronous>, transform_indices = @transform_4, window_bounds = array<i64: 2, 4>}, {pipeline_mode = #tpu.pipeline_mode<synchronous>, transform_indices = @transform_5, window_bounds = array<i64: 1, 4>}, {transform_indices = @transform_6, window_bounds = array<i64: 1, 1, 192, 8>}]} {
    %c0 = arith.constant 0 : index
    %c0_0 = arith.constant 0 : index
    %c0_1 = arith.constant 0 : index
    %c0_2 = arith.constant 0 : index
    %0 = vector.load %arg2[%c0, %c0_0, %c0_1, %c0_2] : memref<1x1x248x2xbf16, #tpu.memory_space<vmem>>, vector<1x1x248x2xbf16>
    %1 = vector.shape_cast %0 : vector<1x1x248x2xbf16> to vector<248x2xbf16>
    %c0_3 = arith.constant 0 : index
    %c0_4 = arith.constant 0 : index
    %2 = vector.load %arg4[%c0_3, %c0_4] : memref<2x4xbf16, #tpu.memory_space<vmem>>, vector<2x4xbf16>
    %cst = arith.constant dense<0.000000e+00> : vector<248x4xf32>
    %3 = tpu.matmul %1, %2, %cst {dimension_numbers = #tpu.dot_dimension_numbers<[1], [0], [0], [1], [0, 0, 1, 1], [], []>} : vector<248x2xbf16>, vector<2x4xbf16>, vector<248x4xf32> -> vector<248x4xf32>
    %c0_5 = arith.constant 0 : index
    %c0_6 = arith.constant 0 : index
    %4 = vector.load %arg9[%c0_5, %c0_6] : memref<248x4xf32, #tpu.memory_space<vmem>>, vector<248x4xf32>
    tpu.vector_store %arg9[%c0_5, %c0_6], %3 {strides = array<i32>} : memref<248x4xf32, #tpu.memory_space<vmem>>, vector<248x4xf32>,
    %c0_7 = arith.constant 0 : index
    %c0_8 = arith.constant 0 : index
    %5 = vector.load %arg9[%c0_7, %c0_8] : memref<248x4xf32, #tpu.memory_space<vmem>>, vector<192x4xf32>
    %c0_9 = arith.constant 0 : index
    %c0_10 = arith.constant 0 : index
    %6 = vector.load %arg5[%c0_9, %c0_10] : memref<9x4xf32, #tpu.memory_space<vmem>>, vector<1x4xf32>
    %7 = vector.broadcast %6 : vector<1x4xf32> to vector<192x4xf32>
    %8 = arith.mulf %5, %7 : vector<192x4xf32>
    %c1 = arith.constant 1 : index
    %c0_11 = arith.constant 0 : index
    %9 = vector.load %arg9[%c1, %c0_11] : memref<248x4xf32, #tpu.memory_space<vmem>>, vector<192x4xf32>
    %c1_12 = arith.constant 1 : index
    %c0_13 = arith.constant 0 : index
    %10 = vector.load %arg5[%c1_12, %c0_13] : memref<9x4xf32, #tpu.memory_space<vmem>>, vector<1x4xf32>
    %11 = vector.broadcast %10 : vector<1x4xf32> to vector<192x4xf32>
    %12 = arith.mulf %9, %11 : vector<192x4xf32>
    %13 = arith.addf %8, %12 : vector<192x4xf32>
    %c2 = arith.constant 2 : index
    %c0_14 = arith.constant 0 : index
    %14 = vector.load %arg9[%c2, %c0_14] : memref<248x4xf32, #tpu.memory_space<vmem>>, vector<192x4xf32>
    %c2_15 = arith.constant 2 : index
    %c0_16 = arith.constant 0 : index
    %15 = vector.load %arg5[%c2_15, %c0_16] : memref<9x4xf32, #tpu.memory_space<vmem>>, vector<1x4xf32>
    %16 = vector.broadcast %15 : vector<1x4xf32> to vector<192x4xf32>
    %17 = arith.mulf %14, %16 : vector<192x4xf32>
    %18 = arith.addf %13, %17 : vector<192x4xf32>
    %c24 = arith.constant 24 : index
    %c0_17 = arith.constant 0 : index
    %19 = vector.load %arg9[%c24, %c0_17] : memref<248x4xf32, #tpu.memory_space<vmem>>, vector<192x4xf32>
    %c3 = arith.constant 3 : index
    %c0_18 = arith.constant 0 : index
    %20 = vector.load %arg5[%c3, %c0_18] : memref<9x4xf32, #tpu.memory_space<vmem>>, vector<1x4xf32>
    %21 = vector.broadcast %20 : vector<1x4xf32> to vector<192x4xf32>
    %22 = arith.mulf %19, %21 : vector<192x4xf32>
    %23 = arith.addf %18, %22 : vector<192x4xf32>
    %c25 = arith.constant 25 : index
    %c0_19 = arith.constant 0 : index
    %24 = vector.load %arg9[%c25, %c0_19] : memref<248x4xf32, #tpu.memory_space<vmem>>, vector<192x4xf32>
    %c4 = arith.constant 4 : index
    %c0_20 = arith.constant 0 : index
    %25 = vector.load %arg5[%c4, %c0_20] : memref<9x4xf32, #tpu.memory_space<vmem>>, vector<1x4xf32>
    %26 = vector.broadcast %25 : vector<1x4xf32> to vector<192x4xf32>
    %27 = arith.mulf %24, %26 : vector<192x4xf32>
    %28 = arith.addf %23, %27 : vector<192x4xf32>
    %c26 = arith.constant 26 : index
    %c0_21 = arith.constant 0 : index
    %29 = vector.load %arg9[%c26, %c0_21] : memref<248x4xf32, #tpu.memory_space<vmem>>, vector<192x4xf32>
    %c5 = arith.constant 5 : index
    %c0_22 = arith.constant 0 : index
    %30 = vector.load %arg5[%c5, %c0_22] : memref<9x4xf32, #tpu.memory_space<vmem>>, vector<1x4xf32>
    %31 = vector.broadcast %30 : vector<1x4xf32> to vector<192x4xf32>
    %32 = arith.mulf %29, %31 : vector<192x4xf32>
    %33 = arith.addf %28, %32 : vector<192x4xf32>
    %c48 = arith.constant 48 : index
    %c0_23 = arith.constant 0 : index
    %34 = vector.load %arg9[%c48, %c0_23] : memref<248x4xf32, #tpu.memory_space<vmem>>, vector<192x4xf32>
    %c6 = arith.constant 6 : index
    %c0_24 = arith.constant 0 : index
    %35 = vector.load %arg5[%c6, %c0_24] : memref<9x4xf32, #tpu.memory_space<vmem>>, vector<1x4xf32>
    %36 = vector.broadcast %35 : vector<1x4xf32> to vector<192x4xf32>
    %37 = arith.mulf %34, %36 : vector<192x4xf32>
    %38 = arith.addf %33, %37 : vector<192x4xf32>
    %c49 = arith.constant 49 : index
    %c0_25 = arith.constant 0 : index
    %39 = vector.load %arg9[%c49, %c0_25] : memref<248x4xf32, #tpu.memory_space<vmem>>, vector<192x4xf32>
    %c7 = arith.constant 7 : index
    %c0_26 = arith.constant 0 : index
    %40 = vector.load %arg5[%c7, %c0_26] : memref<9x4xf32, #tpu.memory_space<vmem>>, vector<1x4xf32>
    %41 = vector.broadcast %40 : vector<1x4xf32> to vector<192x4xf32>
    %42 = arith.mulf %39, %41 : vector<192x4xf32>
    %43 = arith.addf %38, %42 : vector<192x4xf32>
    %c50 = arith.constant 50 : index
    %c0_27 = arith.constant 0 : index
    %44 = vector.load %arg9[%c50, %c0_27] : memref<248x4xf32, #tpu.memory_space<vmem>>, vector<192x4xf32>
    %c8 = arith.constant 8 : index
    %c0_28 = arith.constant 0 : index
    %45 = vector.load %arg5[%c8, %c0_28] : memref<9x4xf32, #tpu.memory_space<vmem>>, vector<1x4xf32>
    %46 = vector.broadcast %45 : vector<1x4xf32> to vector<192x4xf32>
    %47 = arith.mulf %44, %46 : vector<192x4xf32>
    %48 = arith.addf %43, %47 : vector<192x4xf32>
    %c0_29 = arith.constant 0 : index
    %c0_30 = arith.constant 0 : index
    %c0_31 = arith.constant 0 : index
    %c0_32 = arith.constant 0 : index
    %49 = vector.load %arg3[%c0_29, %c0_30, %c0_31, %c0_32] : memref<1x1x248x2xbf16, #tpu.memory_space<vmem>>, vector<1x1x192x2xbf16>
    %50 = vector.shape_cast %49 : vector<1x1x192x2xbf16> to vector<192x2xbf16>
    %c0_33 = arith.constant 0 : index
    %c0_34 = arith.constant 0 : index
    %c1_35 = arith.constant 1 : index
    %c0_36 = arith.constant 0 : index
    %51 = vector.load %arg3[%c0_33, %c0_34, %c1_35, %c0_36] : memref<1x1x248x2xbf16, #tpu.memory_space<vmem>>, vector<1x1x192x2xbf16>
    %52 = vector.shape_cast %51 : vector<1x1x192x2xbf16> to vector<192x2xbf16>
    %53 = arith.maximumf %50, %52 : vector<192x2xbf16>
    %c0_37 = arith.constant 0 : index
    %c0_38 = arith.constant 0 : index
    %c2_39 = arith.constant 2 : index
    %c0_40 = arith.constant 0 : index
    %54 = vector.load %arg3[%c0_37, %c0_38, %c2_39, %c0_40] : memref<1x1x248x2xbf16, #tpu.memory_space<vmem>>, vector<1x1x192x2xbf16>
    %55 = vector.shape_cast %54 : vector<1x1x192x2xbf16> to vector<192x2xbf16>
    %56 = arith.maximumf %53, %55 : vector<192x2xbf16>
    %c0_41 = arith.constant 0 : index
    %c0_42 = arith.constant 0 : index
    %c24_43 = arith.constant 24 : index
    %c0_44 = arith.constant 0 : index
    %57 = vector.load %arg3[%c0_41, %c0_42, %c24_43, %c0_44] : memref<1x1x248x2xbf16, #tpu.memory_space<vmem>>, vector<1x1x192x2xbf16>
    %58 = vector.shape_cast %57 : vector<1x1x192x2xbf16> to vector<192x2xbf16>
    %59 = arith.maximumf %56, %58 : vector<192x2xbf16>
    %c0_45 = arith.constant 0 : index
    %c0_46 = arith.constant 0 : index
    %c25_47 = arith.constant 25 : index
    %c0_48 = arith.constant 0 : index
    %60 = vector.load %arg3[%c0_45, %c0_46, %c25_47, %c0_48] : memref<1x1x248x2xbf16, #tpu.memory_space<vmem>>, vector<1x1x192x2xbf16>
    %61 = vector.shape_cast %60 : vector<1x1x192x2xbf16> to vector<192x2xbf16>
    %62 = arith.maximumf %59, %61 : vector<192x2xbf16>
    %c0_49 = arith.constant 0 : index
    %c0_50 = arith.constant 0 : index
    %c26_51 = arith.constant 26 : index
    %c0_52 = arith.constant 0 : index
    %63 = vector.load %arg3[%c0_49, %c0_50, %c26_51, %c0_52] : memref<1x1x248x2xbf16, #tpu.memory_space<vmem>>, vector<1x1x192x2xbf16>
    %64 = vector.shape_cast %63 : vector<1x1x192x2xbf16> to vector<192x2xbf16>
    %65 = arith.maximumf %62, %64 : vector<192x2xbf16>
    %c0_53 = arith.constant 0 : index
    %c0_54 = arith.constant 0 : index
    %c48_55 = arith.constant 48 : index
    %c0_56 = arith.constant 0 : index
    %66 = vector.load %arg3[%c0_53, %c0_54, %c48_55, %c0_56] : memref<1x1x248x2xbf16, #tpu.memory_space<vmem>>, vector<1x1x192x2xbf16>
    %67 = vector.shape_cast %66 : vector<1x1x192x2xbf16> to vector<192x2xbf16>
    %68 = arith.maximumf %65, %67 : vector<192x2xbf16>
    %c0_57 = arith.constant 0 : index
    %c0_58 = arith.constant 0 : index
    %c49_59 = arith.constant 49 : index
    %c0_60 = arith.constant 0 : index
    %69 = vector.load %arg3[%c0_57, %c0_58, %c49_59, %c0_60] : memref<1x1x248x2xbf16, #tpu.memory_space<vmem>>, vector<1x1x192x2xbf16>
    %70 = vector.shape_cast %69 : vector<1x1x192x2xbf16> to vector<192x2xbf16>
    %71 = arith.maximumf %68, %70 : vector<192x2xbf16>
    %c0_61 = arith.constant 0 : index
    %c0_62 = arith.constant 0 : index
    %c50_63 = arith.constant 50 : index
    %c0_64 = arith.constant 0 : index
    %72 = vector.load %arg3[%c0_61, %c0_62, %c50_63, %c0_64] : memref<1x1x248x2xbf16, #tpu.memory_space<vmem>>, vector<1x1x192x2xbf16>
    %73 = vector.shape_cast %72 : vector<1x1x192x2xbf16> to vector<192x2xbf16>
    %74 = arith.maximumf %71, %73 : vector<192x2xbf16>
    %c0_65 = arith.constant 0 : index
    %c0_66 = arith.constant 0 : index
    %75 = vector.load %arg6[%c0_65, %c0_66] : memref<2x4xbf16, #tpu.memory_space<vmem>>, vector<2x4xbf16>
    %cst_67 = arith.constant dense<0.000000e+00> : vector<192x4xf32>
    %76 = tpu.matmul %74, %75, %cst_67 {dimension_numbers = #tpu.dot_dimension_numbers<[1], [0], [0], [1], [0, 0, 1, 1], [], []>} : vector<192x2xbf16>, vector<2x4xbf16>, vector<192x4xf32> -> vector<192x4xf32>
    %c0_68 = arith.constant 0 : index
    %c0_69 = arith.constant 0 : index
    %77 = vector.load %arg7[%c0_68, %c0_69] : memref<1x4xf32, #tpu.memory_space<vmem>>, vector<1x4xf32>
    %78 = vector.broadcast %77 : vector<1x4xf32> to vector<192x4xf32>
    %79 = arith.addf %76, %78 : vector<192x4xf32>
    %80 = tpu.concatenate %48, %79 in 1 : vector<192x4xf32>, vector<192x4xf32> -> vector<192x8xf32>
    %cst_70 = arith.constant 5.000000e-01 : f32
    %81 = vector.broadcast %cst_70 : f32 to vector<192x8xf32>
    %82 = arith.mulf %81, %80 : vector<192x8xf32>
    %cst_71 = arith.constant 0.707106769 : f32
    %83 = vector.broadcast %cst_71 : f32 to vector<192x8xf32>
    %84 = arith.mulf %80, %83 : vector<192x8xf32>
    %cst_72 = arith.constant 0.000000e+00 : f32
    %85 = vector.broadcast %cst_72 : f32 to vector<192x8xf32>
    %86 = arith.cmpf olt, %84, %85 : vector<192x8xf32>
    %cst_73 = arith.constant -1.000000e+00 : f32
    %cst_74 = arith.constant 1.000000e+00 : f32
    %87 = vector.broadcast %cst_73 : f32 to vector<192x8xf32>
    %88 = vector.broadcast %cst_74 : f32 to vector<192x8xf32>
    %89 = arith.select %86, %87, %88 : vector<192x8xi1>, vector<192x8xf32>
    %90 = math.absf %84 : vector<192x8xf32>
    %cst_75 = arith.constant 0.327591091 : f32
    %91 = vector.broadcast %cst_75 : f32 to vector<192x8xf32>
    %92 = arith.mulf %91, %90 : vector<192x8xf32>
    %cst_76 = arith.constant 1.000000e+00 : f32
    %93 = vector.broadcast %cst_76 : f32 to vector<192x8xf32>
    %94 = arith.addf %93, %92 : vector<192x8xf32>
    %95 = tpu.reciprocal %94 : vector<192x8xf32> -> vector<192x8xf32>
    %cst_77 = arith.constant 1.06140542 : f32
    %96 = vector.broadcast %cst_77 : f32 to vector<192x8xf32>
    %97 = arith.mulf %96, %95 : vector<192x8xf32>
    %cst_78 = arith.constant -1.45315206 : f32
    %98 = vector.broadcast %cst_78 : f32 to vector<192x8xf32>
    %99 = arith.addf %97, %98 : vector<192x8xf32>
    %100 = arith.mulf %99, %95 : vector<192x8xf32>
    %cst_79 = arith.constant 1.42141378 : f32
    %101 = vector.broadcast %cst_79 : f32 to vector<192x8xf32>
    %102 = arith.addf %100, %101 : vector<192x8xf32>
    %103 = arith.mulf %102, %95 : vector<192x8xf32>
    %cst_80 = arith.constant -0.284496725 : f32
    %104 = vector.broadcast %cst_80 : f32 to vector<192x8xf32>
    %105 = arith.addf %103, %104 : vector<192x8xf32>
    %106 = arith.mulf %105, %95 : vector<192x8xf32>
    %cst_81 = arith.constant 0.254829586 : f32
    %107 = vector.broadcast %cst_81 : f32 to vector<192x8xf32>
    %108 = arith.addf %106, %107 : vector<192x8xf32>
    %109 = arith.mulf %108, %95 : vector<192x8xf32>
    %cst_82 = arith.constant 0.000000e+00 : f32
    %110 = vector.broadcast %cst_82 : f32 to vector<192x8xf32>
    %111 = arith.subf %110, %90 : vector<192x8xf32>
    %112 = arith.mulf %111, %90 : vector<192x8xf32>
    %113 = math.exp %112 : vector<192x8xf32>
    %114 = arith.mulf %109, %113 : vector<192x8xf32>
    %cst_83 = arith.constant 1.000000e+00 : f32
    %115 = vector.broadcast %cst_83 : f32 to vector<192x8xf32>
    %116 = arith.subf %115, %114 : vector<192x8xf32>
    %117 = arith.mulf %89, %116 : vector<192x8xf32>
    %cst_84 = arith.constant 1.000000e+00 : f32
    %118 = vector.broadcast %cst_84 : f32 to vector<192x8xf32>
    %119 = arith.addf %118, %117 : vector<192x8xf32>
    %120 = arith.mulf %82, %119 : vector<192x8xf32>
    %c0_85 = arith.constant 0 : index
    %c0_86 = arith.constant 0 : index
    %c0_87 = arith.constant 0 : index
    %c0_88 = arith.constant 0 : index
    %121 = vector.load %arg8[%c0_85, %c0_86, %c0_87, %c0_88] : memref<1x1x192x8xf32, #tpu.memory_space<vmem>>, vector<1x1x192x8xf32>
    %122 = vector.shape_cast %121 : vector<1x1x192x8xf32> to vector<192x8xf32>
    %123 = vector.shape_cast %120 : vector<192x8xf32> to vector<1x1x192x8xf32>
    tpu.vector_store %arg8[%c0_85, %c0_86, %c0_87, %c0_88], %123 {strides = array<i32>} : memref<1x1x192x8xf32, #tpu.memory_space<vmem>>, vector<1x1x192x8xf32>,
    return
  }
  func.func @transform_0(%arg0: i32, %arg1: i32) -> (i32, i32, i32, i32) {
    %c0_i32 = arith.constant 0 : i32
    %c0_i32_0 = arith.constant 0 : i32
    %c0_i32_1 = arith.constant 0 : i32
    return %arg0, %arg1, %c0_i32, %c0_i32_0 : i32, i32, i32, i32
  }
  func.func @transform_1(%arg0: i32, %arg1: i32) -> (i32, i32, i32, i32) {
    %c0_i32 = arith.constant 0 : i32
    %c0_i32_0 = arith.constant 0 : i32
    %c0_i32_1 = arith.constant 0 : i32
    return %arg0, %arg1, %c0_i32, %c0_i32_0 : i32, i32, i32, i32
  }
  func.func @transform_2(%arg0: i32, %arg1: i32) -> (i32, i32) {
    %c0_i32 = arith.constant 0 : i32
    %c0_i32_0 = arith.constant 0 : i32
    %c0_i32_1 = arith.constant 0 : i32
    return %c0_i32, %c0_i32_0 : i32, i32
  }
  func.func @transform_3(%arg0: i32, %arg1: i32) -> (i32, i32) {
    %c0_i32 = arith.constant 0 : i32
    %c0_i32_0 = arith.constant 0 : i32
    %c0_i32_1 = arith.constant 0 : i32
    return %c0_i32, %c0_i32_0 : i32, i32
  }
  func.func @transform_4(%arg0: i32, %arg1: i32) -> (i32, i32) {
    %c0_i32 = arith.constant 0 : i32
    %c0_i32_0 = arith.constant 0 : i32
    %c0_i32_1 = arith.constant 0 : i32
    return %c0_i32, %c0_i32_0 : i32, i32
  }
  func.func @transform_5(%arg0: i32, %arg1: i32) -> (i32, i32) {
    %c0_i32 = arith.constant 0 : i32
    %c0_i32_0 = arith.constant 0 : i32
    %c0_i32_1 = arith.constant 0 : i32
    return %c0_i32, %c0_i32_0 : i32, i32
  }
  func.func @transform_6(%arg0: i32, %arg1: i32) -> (i32, i32, i32, i32) {
    %c0_i32 = arith.constant 0 : i32
    %c0_i32_0 = arith.constant 0 : i32
    %c0_i32_1 = arith.constant 0 : i32
    return %arg0, %arg1, %c0_i32, %c0_i32_0 : i32, i32, i32, i32
  }
}

</mosaic_0001>

<bundles_post_ra>
// kernel: tpu_custom_call.1
= control target key start
LH: loop header
LB: loop body
LE: loop exit
PB: predicated region body
PF: predicated region fallthrough
CT: control target
= control target key end

     0   :  { %s3738_s21 = smov 0   ;;  %s3740_s22 = smov 0   ;;  %s6030_s0 = inlined_call_operand.vmem [shape: bf16[2,2,248,2], index: 0, kind: input, shape index: {}]   ;;  %s6031_s1 = inlined_call_operand.vmem [shape: bf16[2,2,248,2], index: 1, kind: input, shape index: {}]   ;;  %s6032_s2 = inlined_call_operand.vmem [shape: bf16[2,4], index: 2, kind: input, shape index: {}]   ;;  %s6033_s3 = inlined_call_operand.vmem [shape: f32[9,4], index: 3, kind: input, shape index: {}]   ;;  %s6034_s4 = inlined_call_operand.vmem [shape: bf16[2,4], index: 4, kind: input, shape index: {}]   ;;  %s6035_s5 = inlined_call_operand.vmem [shape: f32[1,4], index: 5, kind: input, shape index: {}]   ;;  %s6036_s6 = inlined_call_operand.vmem [shape: f32[2,2,192,8], index: 6, kind: output, shape index: {}]  }
   0x1   :  { %s3742_s23 = smov 0   ;;  %s3744_s24 = smov 0  }
   0x2   :  { %s3746_s25 = smov 0  }
   0x3 LB: > { %s25_s26 = sadd.s32 1, %s3691_s23  ;;  %s28_s27 = sadd.s32 1, %s3695_s24  ;;  %s3699_s25 = sphi %s3746_s25, %s16_s25   ;;  %s3695_s24 = sphi %s3744_s24, %s6122_s24   ;;  %s3691_s23 = sphi %s3742_s23, %s6121_s23   ;;  %s3687_s22 = sphi %s3740_s22, %s6120_s22   ;;  %s3683_s21 = sphi %s3738_s21, %s6119_s21  }
   0x4   : > { %p26_p0 = scmp.ge.s32.totalorder %s25_s26, 2  ;;  %p3286_p1 = scmp.ge.s32.totalorder %s3699_s25, 1 }
   0x5   : > { %p248_p2 = scmp.lt.s32.totalorder %s3699_s25, 5 }
   0x6   : > { %s6124_s26 = smov (%p26_p0, %s25_s26), 0  ;;  %s6126_s27 = smov (!%p26_p0, %s28_s27), %s3695_s24 }
   0x7   : > { %p249_p3 = pnand %p3286_p1, %p248_p2  ;;  %p30_p4 = scmp.ge.s32.totalorder %s6126_s27, 2 }
   0x9   : > { %s6128_s27 = smov (%p30_p4, %s6126_s27), 0  ;;  %252 = sbr.rel (%p249_p3) target bundleno = 650 (0x28a), region = 44 }
   0xe   : > { %v354_v0 = vld [vmem:[%s6032_s2] sm:$0x1]  ;;  %vm482_vm0 = vcmask 1040384   ;;  %p295_p5 = scmp.lt.s32.totalorder %s3687_s22, 1  ;;  %p297_p6 = scmp.lt.s32.totalorder %s3683_s21, 1  ;;  %vm433_vm1 = vcmask 15360  }
   0xf   : > { %v484_v1 = vsel %vm482_vm0, %v354_v0, 0  ;;  %v1972_v2 = vld [vmem:[%s6034_s4] sm:$0x1]  ;;  %vm1197_vm2 = vcmask 1046528   ;;  %vm1346_vm3 = vcmask 1045504   ;;  %vm574_vm4 = vcmask 31744  }
  0x10   : > { %3464 = vmatpush.bf16.msra.mxu2 %v484_v1  ;;  %3465 = vmatpush.bf16.msra.mxu3 %v484_v1  ;;  %s6130_s22 = smov (!%p295_p5, %s3687_s22), 1  ;;  %v2014_v3 = vsel %vm482_vm0, %v1972_v2, 0  ;;  %s6132_s21 = smov (!%p297_p6, %s3683_s21), 1 }
  0x11   : > { %493 = vmatpush.bf16.msra.mxu0 %v484_v1  ;;  %2023 = vmatpush.bf16.msra.mxu1 %v2014_v3  ;;  %s3468_s8 = smul.u32 62, %s6130_s22  ;;  %s3701_s20 = smov 4  }
  0x12   : > { %s3467_s9 = smul.u32 31, %s6132_s21 }
  0x13   : > { %s3470_s30 = smul.u32 48, %s6130_s22 }
  0x14   : > { %3466 = vmatpush.bf16.msrb.mxu3 %v2014_v3  ;;  %s301_s10 = sadd.s32 %s3468_s8, %s3467_s9 }
  0x15   : > { %s3287_s11 = sshll.u32 %s301_s10, 2 }
  0x16   : > { %s3783_s14 = scalar_lea.vmem %s6030_s0, %s3287_s11  ;;  %s3788_s17 = scalar_lea.vmem %s6031_s1, %s3287_s11 }
  0x17   : > { %v3387_v4 = vld [vmem:[%s3783_s14 + $0x38] sm:$0xff]  ;;  %v3394_v5 = vld [vmem:[%s3783_s14 + $0x70] sm:$0xff]  ;;  %v3380_v6 = vld [vmem:[%s3783_s14] sm:$0xff] }
  0x18   : > { %v3396_v7 = vld [vmem:[%s3788_s17] sm:$0xff]   ;;  %3357 = vmatmul.msk.bf16.vlgmr.msra.gmra.mxu2 %vm433_vm1, %v3387_v4  ;;  %3364 = vmatmul.msk.bf16.vlgmr.msra.gmra.mxu3 %vm433_vm1, %v3394_v5  ;;  %v3451_v10 = vld [vmem:[%s3788_s17 + $0x8] sm:$0xff]   ;;  %v3452_v12 = vld [vmem:[%s3788_s17 + $0x10] sm:$0xff]  }
  0x19   : > { %v3397_v8 = vunpack.c.l.bf16 %v3396_v7  ;;  %v3398_v9 = vunpack.c.h.bf16 %v3396_v7  ;;  %3350 = vmatmul.msk.bf16.vlgmr.msra.gmra.mxu0 %vm433_vm1, %v3380_v6  ;;  %v3798_v11 = vunpack.c.l.bf16 %v3451_v10  ;;  %v3453_v13 = vld [vmem:[%s3788_s17 + $0x18] sm:$0xff]   ;;  %v3802_v14 = vunpack.c.h.bf16 %v3451_v10  ;;  %v3805_v15 = vld [vmem:[%s3788_s17 + $0x20] sm:$0xff]   ;;  %v1636_v30 = vld [vmem:[%s3788_s17 + $0xc] sm:$0xe] }
  0x1a   : > { %v353_v19 = vld [vmem:[%s3783_s14 + $0x78] sm:$0xf]  ;;  %v3809_v20 = vunpack.c.l.bf16 %v3452_v12  ;;  %v3811_v21 = vunpack.c.h.bf16 %v3452_v12  ;;  %v3813_v22 = vunpack.c.l.bf16 %v3453_v13  ;;  %v1319_v24 = vld [vmem:[%s3788_s17] sm:$0xe]  ;;  %v3819_v25 = vunpack.c.h.bf16 %v3453_v13  ;;  %v3829_v35 = vld [vmem:[%s3788_s17 + $0x28] sm:$0xff]  }
  0x1b   : > { %v1198_v16 = vrot.slane %v3397_v8, 1  ;;  %v1199_v17 = vrot.slane %v3398_v9, 1  ;;  %v1201_v18 = vrot.slane %v3798_v11, 1  ;;  %v3822_v26 = vunpack.c.l.bf16 %v3805_v15  ;;  %v1894_v44 = vld [vmem:[%s3788_s17 + $0x18] sm:$0xe]  ;;  %v3388_v48 = vld [vmem:[%s3783_s14 + $0x40] sm:$0xff] }
  0x1c   : > { %v416_v28 = vunpack.c.l.b16 %v353_v19  ;;  %v1203_v29 = vrot.slane %v3802_v14, 1  ;;  %v1205_v31 = vrot.slane %v3809_v20, 1  ;;  %v1344_v33 = vunpack.c.l.bf16 %v1319_v24  ;;  %v3381_v57 = vld [vmem:[%s3783_s14 + $0x8] sm:$0xff]  ;;  %v3457_v58 = vld [vmem:[%s3788_s17 + $0x38] sm:$0xff]   ;;  %v3458_v63 = vld [vmem:[%s3788_s17 + $0x40] sm:$0xff]  }
  0x1d   : > { %v1202_v23 = vsel %vm1197_vm2, %v1199_v17, %v1201_v18  ;;  %v1200_v27 = vsel %vm1197_vm2, %v1198_v16, %v1199_v17  ;;  %v1348_v34 = vrot.slane %v3398_v9, 2  ;;  %v1207_v36 = vrot.slane %v3811_v21, 1 }
  0x1e   : > { %v1272_v32 = vmax.f32 %v3398_v9, %v1202_v23  ;;  %v1209_v37 = vrot.slane %v3813_v22, 1  ;;  %v1271_v38 = vmax.f32 %v3397_v8, %v1200_v27  ;;  %v1350_v39 = vrot.slane %v3798_v11, 2  ;;  %v3459_v8 = vld [vmem:[%s3788_s17 + $0x48] sm:$0xff]  }
  0x1f   : > { %v1211_v40 = vrot.slane %v3819_v25, 1  ;;  %v1213_v41 = vrot.slane %v3822_v26, 1  ;;  %v1347_v42 = vrot.slane %v1344_v33, 2  ;;  %v1661_v43 = vunpack.c.l.bf16 %v1636_v30 }
  0x20   : > { %v1351_v45 = vsel %vm1346_vm3, %v1348_v34, %v1350_v39  ;;  %v1354_v46 = vrot.slane %v3809_v20, 2  ;;  %v1356_v47 = vrot.slane %v3811_v21, 2  ;;  %v432_v49 = vpack.c.b16 %v416_v28, %v416_v28 }
  0x21   : > { %v3844_v50 = vunpack.c.l.bf16 %v3829_v35  ;;  %v1349_v51 = vsel %vm1346_vm3, %v1347_v42, %v1348_v34  ;;  %v1421_v52 = vmax.f32 %v1272_v32, %v1351_v45  ;;  %v1208_v53 = vsel %vm1197_vm2, %v1205_v31, %v1207_v36  ;;  %v3460_v32 = vld [vmem:[%s3788_s17 + $0x50] sm:$0xff]  }
  0x22   : > { %v1420_v54 = vmax.f32 %v1271_v38, %v1349_v51  ;;  %v1663_v55 = vrot.slane %v1661_v43, 2  ;;  %v1919_v56 = vunpack.c.l.bf16 %v1894_v44  ;;  %v1206_v59 = vsel %vm1197_vm2, %v1203_v29, %v1205_v31 }
  0x23   : > { %v3858_v60 = vsel %vm1197_vm2, %v1209_v37, %v1211_v40  ;;  %v3863_v61 = vsel %vm1197_vm2, %v1211_v40, %v1213_v41  ;;  %v1499_v62 = vmax.f32 %v1421_v52, %v3809_v20  ;;  %v1352_v0 = vrot.slane %v3802_v14, 2 }
  0x24   : > { %v1357_v1 = vsel %vm1346_vm3, %v1354_v46, %v1356_v47  ;;  %v3872_v2 = vrot.slane %v3819_v25, 2  ;;  %v1498_v3 = vmax.f32 %v1420_v54, %v3802_v14  ;;  %v1664_v5 = vsel %vm1346_vm3, %v1663_v55, %v1354_v46  ;;  %v3933_v54 = vld [vmem:[%s3788_s17 + $0x58] sm:$0xff]  }
  0x25   : > { %v1589_v4 = vmax.f32 %v1499_v62, %v1208_v53  ;;  %v3878_v6 = vunpack.c.l.bf16 %v3457_v58  ;;  %v3880_v7 = vunpack.c.h.bf16 %v3457_v58  ;;  %v1362_v9 = vrot.slane %v3822_v26, 2 }
  0x26   : > { %v1588_v10 = vmax.f32 %v1498_v3, %v1206_v59  ;;  %v1921_v12 = vrot.slane %v1919_v56, 2  ;;  %v3885_v13 = vunpack.c.l.bf16 %v3458_v63  ;;  %v1274_v16 = vmax.f32 %v3802_v14, %v1206_v59 }
  0x27   : > { %v1275_v17 = vmax.f32 %v3809_v20, %v1208_v53  ;;  %v1277_v19 = vmax.f32 %v3813_v22, %v3858_v60  ;;  %v1679_v23 = vmax.f32 %v1589_v4, %v1357_v1  ;;  %v1355_v24 = vsel %vm1346_vm3, %v1352_v0, %v1354_v46 }
  0x28   : > { %3358 = vmatmul.msk.bf16.gmra.mxu2 %vm433_vm1, %v3388_v48  ;;  %3365 = vmatmul.msk.bf16.gmra.mxu3 %vm433_vm1, %v432_v49  ;;  %v1678_v27 = vmax.f32 %v1588_v10, %v1664_v5  ;;  %v3894_v28 = vunpack.c.h.bf16 %v3458_v63  ;;  %v3896_v30 = vunpack.c.l.bf16 %v3459_v8  ;;  %v6038_v33 = vrot.slane %v3878_v6, 1 }
  0x29   : > { %3351 = vmatmul.msk.bf16.gmra.mxu0 %vm433_vm1, %v3381_v57  ;;  %v1757_v31 = vmax.f32 %v1679_v23, %v3819_v25  ;;  %v1227_v20 = vrot.slane %v3880_v7, 1  ;;  %v1229_v34 = vrot.slane %v3885_v13, 1  ;;  %v1278_v38 = vmax.f32 %v3819_v25, %v3863_v61  ;;  %v3389_v23 = vld [vmem:[%s3783_s14 + $0x48] sm:$0xff] }
  0x2a   : > { %v3909_v40 = vsel %vm1346_vm3, %v3872_v2, %v1362_v9  ;;  %v1756_v42 = vmax.f32 %v1678_v27, %v3813_v22  ;;  %v1922_v43 = vsel %vm1346_vm3, %v1921_v12, %v3872_v2  ;;  %v3915_v45 = vunpack.c.h.bf16 %v3459_v8 }
  0x2b   : > { %v1847_v44 = vmax.f32 %v1757_v31, %v3863_v61  ;;  %v3920_v46 = vsel %vm1197_vm2, %v6038_v33, %v1227_v20  ;;  %v3925_v48 = vsel %vm1197_vm2, %v1227_v20, %v1229_v34  ;;  %v1423_v49 = vmax.f32 %v1274_v16, %v1355_v24 }
  0x2c   : > { %6055 = vst [vmem:[#allocation3_spill] sm:$0xff] %v3915_v45  ;;  %v3927_v51 = vmax.f32 %v1275_v17, %v1357_v1  ;;  %v1846_v52 = vmax.f32 %v1756_v42, %v3858_v60  ;;  %v3930_v53 = vunpack.c.l.bf16 %v3460_v32  ;;  %v1231_v56 = vrot.slane %v3894_v28, 1 }
  0x2d   : > { %v1937_v55 = vmax.f32 %v1847_v44, %v3909_v40  ;;  %v1233_v57 = vrot.slane %v3896_v30, 1  ;;  %v1285_v58 = vmax.f32 %v3878_v6, %v3920_v46  ;;  %v1286_v62 = vmax.f32 %v3880_v7, %v3925_v48 }
  0x2e   : > { %v1936_v59 = vmax.f32 %v1846_v52, %v1922_v43  ;;  %v6037_v63 = vrot.slane %v3878_v6, 2  ;;  %v1376_v1 = vrot.slane %v3880_v7, 2  ;;  %v3944_v3 = vunpack.c.h.bf16 %v3460_v32 }
  0x2f   : > { %v3947_v4 = vunpack.c.l.bf16 %v3933_v54  ;;  %v6039_v5 = vrot.slane %v3915_v45, 1  ;;  %v6040_v8 = vrot.slane %v3885_v13, 2  ;;  %v1501_v10 = vmax.f32 %v1423_v49, %v3813_v22  ;;  %v3382_v49 = vld [vmem:[%s3783_s14 + $0x10] sm:$0xff] }
  0x30   : > { %v1502_v12 = vmax.f32 %v3927_v51, %v3819_v25  ;;  %v1960_v16 = vpack.c.bf16 %v1937_v55, %v1936_v59  ;;  %v3957_v17 = vsel %vm1346_vm3, %v6037_v63, %v1376_v1  ;;  %v1380_v27 = vrot.slane %v3894_v28, 2 }
  0x31   : > { %v3963_v24 = vsel %vm1346_vm3, %v1376_v1, %v6040_v8  ;;  %v1382_v31 = vrot.slane %v3896_v30, 2  ;;  %v6042_v32 = vrot.slane %v3915_v45, 2  ;;  %v3972_v20 = vsel %vm1197_vm2, %v1231_v56, %v1233_v57 }
  0x32   : > { %3366 = vmatmul.msk.bf16.vlgmr.msra.gmra.mxu1 %vm433_vm1, %v1960_v16  ;;  %v1237_v42 = vrot.slane %v3930_v53, 1  ;;  %v1434_v43 = vmax.f32 %v1285_v58, %v3957_v17  ;;  %v1435_v44 = vmax.f32 %v1286_v62, %v3963_v24  ;;  %v3981_v52 = vsel %vm1197_vm2, %v1233_v57, %v6039_v5 }
  0x33   : > { %v1239_v55 = vrot.slane %v3944_v3, 1  ;;  %v6041_v59 = vrot.slane %v3947_v4, 1  ;;  %v3986_v1 = vunpack.c.h.bf16 %v3805_v15  ;;  %v6043_v16 = vrot.slane %v3930_v53, 2 }
  0x34   : > { %v1512_v63 = vmax.f32 %v1434_v43, %v3894_v28  ;;  %v1513_v58 = vmax.f32 %v1435_v44, %v3896_v30  ;;  %v1204_v57 = vsel %vm1197_vm2, %v1201_v18, %v1203_v29  ;;  %v4000_v62 = vsel %vm1346_vm3, %v1380_v27, %v1382_v31 }
  0x35   : > { %6056 = vst [vmem:[#allocation4_spill] sm:$0xff] %v4000_v62  ;;  %v4005_v15 = vsel %vm1346_vm3, %v1382_v31, %v6042_v32  ;;  %v1388_v43 = vrot.slane %v3944_v3, 2  ;;  %v1390_v44 = vrot.slane %v3947_v4, 2  ;;  %v1273_v29 = vmax.f32 %v3798_v11, %v1204_v57 }
  0x36   : > { %v1602_v33 = vmax.f32 %v1512_v63, %v3972_v20  ;;  %v1603_v18 = vmax.f32 %v1513_v58, %v3981_v52  ;;  %v1591_v5 = vmax.f32 %v1501_v10, %v3858_v60  ;;  %v1215_v8 = vrot.slane %v3986_v1, 1 }
  0x37   : > { %v1217_v31 = vrot.slane %v3844_v50, 1  ;;  %v1353_v63 = vsel %vm1346_vm3, %v1350_v39, %v1352_v0  ;;  %v4025_v58 = vsel %vm1197_vm2, %v1237_v42, %v1239_v55  ;;  %v1210_v10 = vsel %vm1197_vm2, %v1207_v36, %v1209_v37 }
  0x38   : > { %3359 = vmatmul.msk.bf16.gmra.mxu2 %vm433_vm1, %v3389_v23  ;;  %v1358_v23 = vrot.slane %v3813_v22, 2  ;;  %v1692_v57 = vmax.f32 %v1602_v33, %v4000_v62  ;;  %v4037_v11 = vsel %vm1197_vm2, %v1239_v55, %v6041_v59  ;;  %v4042_v14 = vsel %vm1346_vm3, %v6043_v16, %v1388_v43 }
  0x39   : > { %3352 = vmatmul.msk.bf16.gmra.mxu0 %vm433_vm1, %v3382_v49  ;;  %v1693_v49 = vmax.f32 %v1603_v18, %v4005_v15  ;;  %v1276_v39 = vmax.f32 %v3811_v21, %v1210_v10  ;;  %v4050_v33 = vsel %vm1346_vm3, %v1388_v43, %v1390_v44  ;;  %v1422_v55 = vmax.f32 %v1273_v29, %v1353_v63 }
  0x3a   : > { %v1361_v0 = vsel %vm1346_vm3, %v1358_v23, %v3872_v2  ;;  %v1770_v36 = vmax.f32 %v1692_v57, %v3930_v53  ;;  %v1216_v18 = vsel %vm1197_vm2, %v1213_v41, %v1215_v8  ;;  %v1218_v59 = vsel %vm1197_vm2, %v1215_v8, %v1217_v31 }
  0x3b   : > { %v1771_v37 = vmax.f32 %v1693_v49, %v3944_v3  ;;  %v1364_v2 = vrot.slane %v3986_v1, 2  ;;  %v1681_v32 = vmax.f32 %v1591_v5, %v1361_v0  ;;  %v1359_v57 = vsel %vm1346_vm3, %v1356_v47, %v1358_v23  ;;  %v4100_v23 = vld [vmem:[%s3788_s17 + $0x30] sm:$0xff]  }
  0x3c   : > { %v1860_v16 = vmax.f32 %v1770_v36, %v4025_v58  ;;  %v1500_v29 = vmax.f32 %v1422_v55, %v3811_v21  ;;  %v1279_v41 = vmax.f32 %v3822_v26, %v1216_v18  ;;  %v1366_v63 = vrot.slane %v3844_v50, 2 }
  0x3d   : > { %v1861_v43 = vmax.f32 %v1771_v37, %v4037_v11  ;;  %v1425_v49 = vmax.f32 %v1276_v39, %v1359_v57  ;;  %v1759_v8 = vmax.f32 %v1681_v32, %v3986_v1  ;;  %v1426_v37 = vmax.f32 %v1277_v19, %v1361_v0  ;;  %v3383_v0 = vld [vmem:[%s3783_s14 + $0x18] sm:$0xff] }
  0x3e   : > { %v1950_v5 = vmax.f32 %v1860_v16, %v4042_v14  ;;  %v1590_v47 = vmax.f32 %v1500_v29, %v1210_v10  ;;  %v4079_v21 = vmax.f32 %v1278_v38, %v3909_v40  ;;  %v4085_v32 = vmax.f32 %v1502_v12, %v3863_v61  ;;  %v3390_v12 = vld [vmem:[%s3783_s14 + $0x50] sm:$0xff] }
  0x3f   : > { %v1951_v36 = vmax.f32 %v1861_v43, %v4050_v33  ;;  %v4090_v16 = vsel %vm1346_vm3, %v1362_v9, %v1364_v2  ;;  %v1849_v19 = vmax.f32 %v1759_v8, %v1218_v59  ;;  %v4097_v38 = vsel %vm1197_vm2, %v1229_v34, %v1231_v56 }
  0x40   : > { %v1680_v60 = vmax.f32 %v1590_v47, %v1359_v57  ;;  %v1280_v25 = vmax.f32 %v3986_v1, %v1218_v59  ;;  %v4106_v61 = vsel %vm1346_vm3, %v1364_v2, %v1366_v63  ;;  %v4109_v9 = vmax.f32 %v1279_v41, %v4090_v16 }
  0x41   : > { %v1967_v22 = vpack.c.bf16 %v1951_v36, %v1950_v5  ;;  %v1503_v51 = vmax.f32 %v1425_v49, %v3822_v26  ;;  %v1504_v34 = vmax.f32 %v1426_v37, %v3986_v1  ;;  %v1287_v10 = vmax.f32 %v3885_v13, %v4097_v38  ;;  %v4143_v49 = vld [vmem:[%s3788_s17 + $0x60] sm:$0x1] }
  0x42   : > { %v1758_v56 = vmax.f32 %v1680_v60, %v3822_v26  ;;  %v1288_v39 = vmax.f32 %v3894_v28, %v3972_v20  ;;  %v1505_v55 = vmax.f32 %v4079_v21, %v3844_v50  ;;  %v4124_v2 = vunpack.c.h.bf16 %v3829_v35 }
  0x43   : > { %3373 = vmatmul.msk.bf16.vlgmr.msrb.gmra.mxu3 %vm433_vm1, %v1967_v22  ;;  %v4127_v43 = vunpack.c.h.bf16 %v3933_v54  ;;  %v6057_v26 = vrot.slane %v3885_v13, 2  ;;  %v1682_v57 = vmax.f32 %v4085_v32, %v3909_v40  ;;  %v4139_v29 = vunpack.c.l.bf16 %v4100_v23  ;;  %v4146_v54 = vld [vmem:[%s3788_s17 + $0x60] sm:$0xff]  }
  0x44   : > { %v1848_v41 = vmax.f32 %v1758_v56, %v1216_v18  ;;  %v1939_v35 = vmax.f32 %v1849_v19, %v4106_v61  ;;  %v4149_v8 = vmax.f32 %v1280_v25, %v4106_v61  ;;  %v1593_v5 = vmax.f32 %v1503_v51, %v1216_v18 }
  0x45   : > { %v4134_v1 = vsel %vm1346_vm3, %v6057_v26, %v1380_v27  ;;  %v1506_v27 = vmax.f32 %v4109_v9, %v4124_v2  ;;  %v4155_v36 = vmax.f32 %v1504_v34, %v1218_v59  ;;  %v6058_v47 = vrot.slane %v3915_v45, 1 }
  0x46   : > { %v1436_v40 = vmax.f32 %v1287_v10, %v4134_v1  ;;  %v1938_v37 = vmax.f32 %v1848_v41, %v4090_v16  ;;  %v1437_v22 = vmax.f32 %v1288_v39, %v4000_v62  ;;  %v6046_v18 = vunpack.c.l.bf16 %v4143_v49 }
  0x47   : > { %v4163_v32 = vsel %vm1197_vm2, %v6058_v47, %v1237_v42  ;;  %v1243_v60 = vrot.slane %v4127_v43, 1  ;;  %v4170_v59 = vunpack.c.l.bf16 %v4146_v54  ;;  %v6060_v42 = vrot.slane %v3930_v53, 2 }
  0x48   : > { %3360 = vmatmul.msk.bf16.gmra.mxu2 %vm433_vm1, %v3390_v12  ;;  %6059 = vst [vmem:[#allocation5_spill] sm:$0xff] %v4163_v32  ;;  %v1514_v19 = vmax.f32 %v1436_v40, %v3915_v45  ;;  %v1961_v25 = vpack.c.bf16 %v1939_v35, %v1938_v37  ;;  %v1290_v9 = vmax.f32 %v3915_v45, %v4163_v32  ;;  %v6061_v51 = vrot.slane %v3915_v45, 2  ;;  %v3384_v45 = vld [vmem:[%s3783_s14 + $0x20] sm:$0xff] }
  0x49   : > { %3353 = vmatmul.msk.bf16.gmra.mxu0 %vm433_vm1, %v3383_v0  ;;  %v1515_v34 = vmax.f32 %v1437_v22, %v3930_v53  ;;  %v1291_v10 = vmax.f32 %v3930_v53, %v4025_v58  ;;  %v6044_v39 = vrot.slane %v4170_v59, 1  ;;  %v1683_v26 = vmax.f32 %v1593_v5, %v4090_v16 }
  0x4a   : > { %v4180_v12 = vsel %vm1346_vm3, %v6061_v51, %v6060_v42  ;;  %v1604_v0 = vmax.f32 %v1514_v19, %v4163_v32  ;;  %3367 = vmatmul.msk.bf16.gmra.mxu1 %vm433_vm1, %v1961_v25  ;;  %v4192_v41 = vrot.slane %v4127_v43, 2  ;;  %v1219_v40 = vrot.slane %v4124_v2, 1 }
  0x4b   : > { %6062 = vst [vmem:[#allocation6_spill] sm:$0xff] %v4180_v12  ;;  %v1605_v35 = vmax.f32 %v1515_v34, %v4025_v58  ;;  %v1684_v37 = vmax.f32 %v4155_v36, %v4106_v61  ;;  %v1245_v53 = vrot.slane %v6046_v18, 1  ;;  %v6045_v47 = vrot.slane %v4170_v59, 2 }
  0x4c   : > { %v1694_v22 = vmax.f32 %v1604_v0, %v4180_v12  ;;  %v6063_v16 = vrot.slane %v3947_v4, 1  ;;  %v1439_v19 = vmax.f32 %v1290_v9, %v4180_v12  ;;  %v1221_v25 = vrot.slane %v4139_v29, 1 }
  0x4d   : > { %v1695_v58 = vmax.f32 %v1605_v35, %v4042_v14  ;;  %v1440_v61 = vmax.f32 %v1291_v10, %v4042_v14  ;;  %v1577_v36 = vsel %vm1197_vm2, %v1243_v60, %v6044_v39  ;;  %v1220_v51 = vsel %vm1197_vm2, %v1217_v31, %v1219_v40 }
  0x4e   : > { %v4205_v5 = vsel %vm1197_vm2, %v6063_v16, %v1243_v60  ;;  %v1772_v42 = vmax.f32 %v1694_v22, %v3947_v4  ;;  %v4222_v9 = vsel %vm1346_vm3, %v1390_v44, %v4192_v41  ;;  %v1281_v14 = vmax.f32 %v3844_v50, %v1220_v51 }
  0x4f   : > { %v1773_v34 = vmax.f32 %v1695_v58, %v4127_v43  ;;  %v1368_v10 = vrot.slane %v4124_v2, 2  ;;  %v4231_v0 = vsel %vm1346_vm3, %v4192_v41, %v6045_v47  ;;  %v4235_v35 = vunpack.c.h.bf16 %v4100_v23 }
  0x50   : > { %v1862_v31 = vmax.f32 %v1772_v42, %v4205_v5  ;;  %v1370_v44 = vrot.slane %v4139_v29, 2  ;;  %v1222_v16 = vsel %vm1197_vm2, %v1219_v40, %v1221_v25  ;;  %v1760_v58 = vmax.f32 %v1682_v57, %v3844_v50 }
  0x51   : > { %v1863_v22 = vmax.f32 %v1773_v34, %v1577_v36  ;;  %v1761_v39 = vmax.f32 %v1683_v26, %v4124_v2  ;;  %v1517_v56 = vmax.f32 %v1439_v19, %v3947_v4  ;;  %v1369_v42 = vsel %vm1346_vm3, %v1366_v63, %v1368_v10  ;;  %v3391_v34 = vld [vmem:[%s3783_s14 + $0x58] sm:$0xff] }
  0x52   : > { %v1952_v47 = vmax.f32 %v1862_v31, %v4222_v9  ;;  %v1595_v23 = vmax.f32 %v1505_v55, %v1220_v51  ;;  %v1371_v18 = vsel %vm1346_vm3, %v1368_v10, %v1370_v44  ;;  %v1430_v57 = vmax.f32 %v1281_v14, %v1369_v42 }
  0x53   : > { %v1953_v40 = vmax.f32 %v1863_v22, %v4231_v0  ;;  %v1850_v12 = vmax.f32 %v1760_v58, %v1220_v51  ;;  %v4253_v26 = vsel %vm1197_vm2, %v1243_v60, %v1245_v53  ;;  %v1596_v19 = vmax.f32 %v1506_v27, %v1222_v16 }
  0x54   : > { %v1851_v31 = vmax.f32 %v1761_v39, %v1222_v16  ;;  %v1223_v32 = vrot.slane %v4235_v35, 1  ;;  %v1518_v63 = vmax.f32 %v1440_v61, %v4127_v43  ;;  %v1282_v50 = vmax.f32 %v4124_v2, %v1222_v16 }
  0x55   : > { %v1968_v62 = vpack.c.bf16 %v1953_v40, %v1952_v47  ;;  %v1940_v21 = vmax.f32 %v1850_v12, %v1369_v42  ;;  %v1293_v55 = vmax.f32 %v3947_v4, %v4205_v5  ;;  %v1607_v14 = vmax.f32 %v1517_v56, %v4205_v5 }
  0x56   : > { %v1685_v51 = vmax.f32 %v1595_v23, %v1369_v42  ;;  %v1941_v10 = vmax.f32 %v1851_v31, %v1371_v18  ;;  %v1294_v27 = vmax.f32 %v4127_v43, %v4253_v26  ;;  %v1508_v60 = vmax.f32 %v1430_v57, %v4235_v35  ;;  %v1470_v42 = vld [vmem:[%s3788_s17 + $0x68] sm:$0xff]  }
  0x57   : > { %3374 = vmatmul.msk.bf16.gmra.mxu3 %vm433_vm1, %v1968_v62  ;;  %v4268_v2 = vsel %vm1197_vm2, %v1221_v25, %v1223_v32  ;;  %v1372_v12 = vrot.slane %v4235_v35, 2  ;;  %v6064_v39 = vunpack.c.l.bf16 %v4143_v49  ;;  %v1686_v53 = vmax.f32 %v1596_v19, %v1371_v18 }
  0x58   : > { %3361 = vmatmul.msk.bf16.gmra.mxu2 %vm433_vm1, %v3391_v34  ;;  %v1962_v47 = vpack.c.bf16 %v1941_v10, %v1940_v21  ;;  %v6065_v61 = vmax.f32 %v4149_v8, %v4139_v29  ;;  %v4278_v62 = vmax.f32 %v1518_v63, %v1577_v36  ;;  %v1431_v16 = vmax.f32 %v1282_v50, %v1371_v18 }
  0x59   : > { %v1394_v56 = vrot.slane %v6064_v39, 2  ;;  %3354 = vmatmul.msk.bf16.gmra.mxu0 %vm433_vm1, %v3384_v45  ;;  %v1762_v25 = vmax.f32 %v1684_v37, %v4139_v29  ;;  %v1289_v58 = vmax.f32 %v3896_v30, %v3981_v52  ;;  %v1697_v49 = vmax.f32 %v1607_v14, %v4222_v9 }
  0x5a   : > { %v1597_v22 = vmax.f32 %v6065_v61, %v4268_v2  ;;  %v6066_v23 = vrot.slane %v3878_v6, 1  ;;  %v1763_v8 = vmax.f32 %v1685_v51, %v4235_v35  ;;  %v1292_v45 = vmax.f32 %v3944_v3, %v4037_v11  ;;  %3368 = vmatmul.msk.bf16.gmra.mxu1 %vm433_vm1, %v1962_v47 }
  0x5b   : > { %v1373_v18 = vsel %vm1346_vm3, %v1370_v44, %v1372_v12  ;;  %v1438_v36 = vmax.f32 %v1289_v58, %v4005_v15  ;;  %v4295_v40 = vunpack.c.h.bf16 %v4146_v54  ;;  %v4298_v31 = vunpack.c.l.bf16 %v1470_v42 }
  0x5c   : > { %v1226_v34 = vsel %vm1197_vm2, %v1223_v32, %v6066_v23  ;;  %v1687_v57 = vmax.f32 %v1597_v22, %v1373_v18  ;;  %v1441_v19 = vmax.f32 %v1292_v45, %v4050_v33  ;;  %v1764_v32 = vmax.f32 %v1686_v53, %v3878_v6  ;;  %v4329_v23 = vld [vmem:[%s3788_s17 + $0x70] sm:$0xff]   ;;  %v3392_v45 = vld [vmem:[%s3783_s14 + $0x60] sm:$0xff] }
  0x5d   : > { %v1598_v37 = vmax.f32 %v1508_v60, %v1226_v34  ;;  %v1509_v63 = vmax.f32 %v1431_v16, %v3878_v6  ;;  %v1852_v50 = vmax.f32 %v1762_v25, %v4268_v2  ;;  %v1516_v21 = vmax.f32 %v1438_v36, %v3944_v3 }
  0x5e   : > { %v1578_v44 = vrot.slane %v4295_v40, 1  ;;  %v1853_v14 = vmax.f32 %v1763_v8, %v1226_v34  ;;  %v4306_v54 = vrot.slane %v4298_v31, 1  ;;  %v1667_v51 = vrot.slane %v4295_v40, 2 }
  0x5f   : > { %v4310_v10 = vrot.slane %v4298_v31, 2  ;;  %v6067_v60 = vrot.slane %v3878_v6, 2  ;;  %v1519_v53 = vmax.f32 %v1441_v19, %v4170_v59  ;;  %v1606_v3 = vmax.f32 %v1516_v21, %v4037_v11 }
  0x60   : > { %v1775_v47 = vmax.f32 %v1697_v49, %v4295_v40  ;;  %v1283_v61 = vmax.f32 %v4139_v29, %v4268_v2  ;;  %v4322_v16 = vsel %vm1197_vm2, %v1578_v44, %v4306_v54  ;;  %v1765_v25 = vmax.f32 %v1687_v57, %v3880_v7 }
  0x61   : > { %v1375_v39 = vsel %vm1346_vm3, %v1372_v12, %v6067_v60  ;;  %v1942_v6 = vmax.f32 %v1852_v50, %v1373_v18  ;;  %v1696_v12 = vmax.f32 %v1606_v3, %v4050_v33  ;;  %v1854_v11 = vmax.f32 %v1764_v32, %v3920_v46  ;;  %v3385_v60 = vld [vmem:[%s3783_s14 + $0x28] sm:$0xff] }
  0x62   : > { %v1688_v22 = vmax.f32 %v1598_v37, %v1375_v39  ;;  %v1865_v58 = vmax.f32 %v1775_v47, %v4322_v16  ;;  %v1943_v49 = vmax.f32 %v1853_v14, %v1375_v39  ;;  %v6068_v29 = vrot.slane %v4170_v59, 1 }
  0x63   : > { %v4336_v8 = vsel %vm1346_vm3, %v1667_v51, %v4310_v10  ;;  %v1855_v37 = vmax.f32 %v1765_v25, %v3925_v48  ;;  %v1774_v36 = vmax.f32 %v1696_v12, %v4170_v59  ;;  %v4342_v57 = vmax.f32 %v1854_v11, %v3957_v17  ;;  %v1546_v25 = vld [vmem:[%s3788_s17 + $0x6c] sm:$0x1] }
  0x64   : > { %v1579_v2 = vsel %vm1197_vm2, %v6068_v29, %v1578_v44  ;;  %v1753_v19 = vunpack.c.h.bf16 %v1470_v42  ;;  %v1284_v32 = vmax.f32 %v4235_v35, %v1226_v34  ;;  %v6069_v50 = vrot.slane %v4170_v59, 2 }
  0x65   : > { %v1609_v33 = vmax.f32 %v1519_v53, %v1579_v2  ;;  %v4349_v44 = vmax.f32 %v1855_v37, %v3963_v24  ;;  %v4352_v14 = vunpack.c.l.bf16 %v4329_v23  ;;  %v1395_v53 = vsel %vm1346_vm3, %v4192_v41, %v1394_v56 }
  0x66   : > { %v1668_v21 = vsel %vm1346_vm3, %v6069_v50, %v1667_v51  ;;  %v1698_v3 = vmax.f32 %v4278_v62, %v4231_v0  ;;  %v1864_v42 = vmax.f32 %v1774_v36, %v1579_v2  ;;  %v1955_v35 = vmax.f32 %v1865_v58, %v4336_v8 }
  0x67   : > { %v1432_v34 = vmax.f32 %v1283_v61, %v1373_v18  ;;  %v1964_v59 = vpack.c.bf16 %v4349_v44, %v4342_v57  ;;  %v1599_v51 = vmax.f32 %v1509_v63, %v3920_v46  ;;  %v1766_v47 = vmax.f32 %v1688_v22, %v3885_v13 }
  0x68   : > { %3362 = vmatmul.msk.bf16.gmra.mxu2 %vm433_vm1, %v3392_v45  ;;  %v1963_v12 = vpack.c.bf16 %v1943_v49, %v1942_v6  ;;  %v1699_v11 = vmax.f32 %v1609_v33, %v1668_v21  ;;  %v1954_v41 = vmax.f32 %v1864_v42, %v1668_v21  ;;  %v1834_v56 = vrot.slane %v1753_v19, 1  ;;  %v6070_v45 = vld [vmem:[#allocation4_spill] sm:$0xff]  ;;  %v1804_v21 = vld [vmem:[%s3788_s17 + $0x78] sm:$0x1] }
  0x69   : > { %v1433_v29 = vmax.f32 %v1284_v32, %v1375_v39  ;;  %v1836_v0 = vrot.slane %v4352_v14, 1  ;;  %3355 = vmatmul.msk.bf16.gmra.mxu0 %vm433_vm1, %v3385_v60  ;;  %v1689_v62 = vmax.f32 %v1599_v51, %v3957_v17  ;;  %v1856_v18 = vmax.f32 %v1766_v47, %v4097_v38 }
  0x6a   : > { %v1442_v46 = vmax.f32 %v1293_v55, %v4222_v9  ;;  %v1443_v63 = vmax.f32 %v1294_v27, %v1395_v53  ;;  %v1969_v61 = vpack.c.bf16 %v1955_v35, %v1954_v41  ;;  %v1571_v22 = vunpack.c.l.bf16 %v1546_v25  ;;  %3369 = vmatmul.msk.bf16.gmra.mxu1 %vm433_vm1, %v1963_v12  ;;  %v6071_v25 = vld [vmem:[#allocation3_spill] sm:$0xff] }
  0x6b   : > { %v1776_v39 = vmax.f32 %v1698_v3, %v4298_v31  ;;  %v1923_v6 = vrot.slane %v1753_v19, 2  ;;  %v1767_v58 = vmax.f32 %v1689_v62, %v3894_v28  ;;  %v4380_v17 = vmax.f32 %v1856_v18, %v4134_v1  ;;  %v3393_v3 = vld [vmem:[%s3783_s14 + $0x68] sm:$0xff] }
  0x6c   : > { %v1510_v49 = vmax.f32 %v1432_v34, %v3880_v7  ;;  %3375 = vmatmul.msk.bf16.gmra.mxu3 %vm433_vm1, %v1969_v61  ;;  %v1777_v4 = vmax.f32 %v1699_v11, %v1753_v19  ;;  %v1835_v43 = vsel %vm1197_vm2, %v4306_v54, %v1834_v56  ;;  %v1925_v5 = vrot.slane %v4352_v14, 2 }
  0x6d   : > { %v1511_v9 = vmax.f32 %v1433_v29, %v3885_v13  ;;  %v1837_v28 = vsel %vm1197_vm2, %v1834_v56, %v1836_v0  ;;  %v1857_v26 = vmax.f32 %v1767_v58, %v3972_v20  ;;  %v1582_v7 = vrot.slane %v1571_v22, 1 }
  0x6e   : > { %v1520_v55 = vmax.f32 %v1442_v46, %v4295_v40  ;;  %v1866_v27 = vmax.f32 %v1776_v39, %v1835_v43  ;;  %v1924_v2 = vsel %vm1346_vm3, %v4310_v10, %v1923_v6  ;;  %v1867_v33 = vmax.f32 %v1777_v4, %v1837_v28 }
  0x6f   : > { %v1947_v37 = vmax.f32 %v1857_v26, %v6070_v45  ;;  %v1926_v13 = vsel %vm1346_vm3, %v1923_v6, %v1925_v5  ;;  %v1521_v36 = vmax.f32 %v1443_v63, %v4298_v31  ;;  %v1600_v19 = vmax.f32 %v1510_v49, %v3925_v48 }
  0x70   : > { %v1583_v20 = vsel %vm1197_vm2, %v4306_v54, %v1582_v7  ;;  %v1671_v40 = vrot.slane %v1571_v22, 2  ;;  %v1601_v50 = vmax.f32 %v1511_v9, %v4097_v38  ;;  %v1610_v53 = vmax.f32 %v1520_v55, %v4322_v16  ;;  %v3386_v38 = vld [vmem:[%s3783_s14 + $0x30] sm:$0xff]  ;;  %v6072_v16 = vld [vmem:[#allocation5_spill] sm:$0xff]  ;;  %v4449_v7 = vld [vmem:[%s6035_s5] ss:$0 sm:$0xff] }
  0x71   : > { %v1965_v32 = vpack.c.bf16 %v1947_v37, %v4380_v17  ;;  %v1690_v60 = vmax.f32 %v1600_v19, %v3963_v24  ;;  %v1956_v31 = vmax.f32 %v1866_v27, %v1924_v2  ;;  %v1957_v35 = vmax.f32 %v1867_v33, %v1926_v13 }
  0x72   : > { %v1691_v42 = vmax.f32 %v1601_v50, %v4134_v1  ;;  %v1611_v48 = vmax.f32 %v1521_v36, %v1583_v20  ;;  %v1672_v51 = vsel %vm1346_vm3, %v4310_v10, %v1671_v40  ;;  %v3450_v54 = vunpack.c.h.bf16 %v4329_v23  ;;  %v6073_v23 = vld [vmem:[#allocation6_spill] sm:$0xff] }
  0x73   : > { %v1768_v34 = vmax.f32 %v1690_v60, %v3896_v30  ;;  %v1829_v47 = vunpack.c.l.bf16 %v1804_v21  ;;  %v1700_v11 = vmax.f32 %v1610_v53, %v4336_v8  ;;  %v1970_v41 = vpack.c.bf16 %v1957_v35, %v1956_v31 }
  0x74   : > { %v1769_v12 = vmax.f32 %v1691_v42, %v6071_v25  ;;  %v1701_v56 = vmax.f32 %v1611_v48, %v1672_v51  ;;  %v1838_v29 = vrot.slane %v3450_v54, 1  ;;  %v1927_v63 = vrot.slane %v3450_v54, 2 }
  0x75   : > { %v1858_v24 = vmax.f32 %v1768_v34, %v3981_v52  ;;  %v1840_v10 = vrot.slane %v1829_v47, 1  ;;  %v1778_v52 = vmax.f32 %v1700_v11, %v4352_v14  ;;  %v1929_v61 = vrot.slane %v1829_v47, 2 }
  0x76   : > { %v1859_v1 = vmax.f32 %v1769_v12, %v6072_v16  ;;  %v1779_v8 = vmax.f32 %v1701_v56, %v3450_v54  ;;  %v1928_v6 = vsel %vm1346_vm3, %v1925_v5, %v1927_v63 }
  0x77   : > { %v1948_v30 = vmax.f32 %v1858_v24, %v4005_v15  ;;  %v1839_v15 = vsel %vm1197_vm2, %v1836_v0, %v1838_v29  ;;  %v1841_v46 = vsel %vm1197_vm2, %v1838_v29, %v1840_v10  ;;  %v1930_v57 = vsel %vm1346_vm3, %v1927_v63, %v1929_v61 }
  0x78   : > { %3363 = vmatmul.msk.bf16.gmra.mxu2 %vm433_vm1, %v3393_v3  ;;  %v1949_v62 = vmax.f32 %v1859_v1, %v6073_v23  ;;  %v1868_v22 = vmax.f32 %v1778_v52, %v1839_v15  ;;  %v1869_v39 = vmax.f32 %v1779_v8, %v1841_v46 }
  0x79   : > { %3356 = vmatmul.msk.bf16.gmra.mxu0 %vm433_vm1, %v3386_v38 }
  0x7a   : > { %v1966_v18 = vpack.c.bf16 %v1949_v62, %v1948_v30  ;;  %3370 = vmatmul.msk.bf16.gmra.mxu1 %vm433_vm1, %v1964_v59  ;;  %v1958_v44 = vmax.f32 %v1868_v22, %v1928_v6  ;;  %v1959_v59 = vmax.f32 %v1869_v39, %v1930_v57  ;;  %v4500_v57 = vld [vmem:[%s6033_s3] ss:$0 sm:$0xff] }
  0x7c   : > { %3376 = vmatmul.msk.bf16.gmra.mxu3 %vm433_vm1, %v1970_v41  ;;  %v1971_v58 = vpack.c.bf16 %v1959_v59, %v1958_v44  ;;  %v4505_v44 = vld [vmem:[%s6033_s3 + $0x1] ss:$0 sm:$0xff] }
  0x8a   : > { %3371 = vmatmul.msk.bf16.gmra.mxu1 %vm433_vm1, %v1965_v32 }
  0x8c   : > { %3377 = vmatmul.msk.bf16.gmra.mxu3 %vm433_vm1, %v1971_v58 }
  0x96   : > { %v495_v14 = vpop.f32.mrf.mxu0 }
  0x97   : > { %575 = vst.msk [vmem:[#allocation2] sm:$0xff] %vm574_vm4, %v495_v14 }
  0x9a   : > { %3372 = vmatmul.msk.bf16.gmra.mxu1 %vm433_vm1, %v1966_v18 }
  0x9b   : > { %v530_v0 = vpop.f32.mrf.mxu2  ;;  %v565_v17 = vpop.f32.mrf.mxu3 }
  0x9c   : > { %589 = vst.msk [vmem:[#allocation2 + $0x70] sm:$0xff] %vm574_vm4, %v530_v0 }
  0x9d   : > { %603 = vst.msk [vmem:[#allocation2 + $0xe0] sm:$0xff] %vm574_vm4, %v565_v17 }
  0x9e   : > { %v497_v49 = vpop.f32.mrf.mxu0 }
  0x9f   : > { %576 = vst.msk [vmem:[#allocation2 + $0x8] sm:$0xff] %vm574_vm4, %v497_v49 }
  0xa3   : > { %v532_v4 = vpop.f32.mrf.mxu2  ;;  %v567_v43 = vpop.f32.mrf.mxu3  ;;  %v620_v22 = vld [vmem:[#allocation2 + $0x70] sm:$0xff] }
  0xa4   : > { %590 = vst.msk [vmem:[#allocation2 + $0x78] sm:$0xff] %vm574_vm4, %v532_v4  ;;  %v646_v0 = vmul.f32 %v4500_v57, %v620_v22  ;;  %v4516_v4 = vld [vmem:[%s6033_s3 + $0x2] ss:$0 sm:$0xff] }
  0xa5   : > { %604 = vst.msk [vmem:[#allocation2 + $0xe8] sm:$0xff] %vm574_vm4, %v567_v43 }
  0xa6   : > { %v500_v5 = vpop.f32.mrf.mxu0 }
  0xa7   : > { %577 = vst.msk [vmem:[#allocation2 + $0x10] sm:$0xff] %vm574_vm4, %v500_v5 }
  0xab   : > { %v535_v9 = vpop.f32.mrf.mxu2  ;;  %v570_v28 = vpop.f32.mrf.mxu3  ;;  %v670_v39 = vld [vmem:[#allocation2 + $0x71] sm:$0xff] }
  0xac   : > { %591 = vst.msk [vmem:[#allocation2 + $0x80] sm:$0xff] %vm574_vm4, %v535_v9  ;;  %v696_v17 = vmul.f32 %v4505_v44, %v670_v39  ;;  %v744_v49 = vld [vmem:[#allocation2 + $0x72] sm:$0xff] }
  0xad   : > { %605 = vst.msk [vmem:[#allocation2 + $0xf0] sm:$0xff] %vm574_vm4, %v570_v28  ;;  %v770_v9 = vmul.f32 %v4516_v4, %v744_v49  ;;  %v606_v28 = vld [vmem:[#allocation2] sm:$0xff] }
  0xae   : > { %v502_v26 = vpop.f32.mrf.mxu0  ;;  %v720_v5 = vadd.f32 %v696_v17, %v646_v0 }
  0xaf   : > { %578 = vst.msk [vmem:[#allocation2 + $0x18] sm:$0xff] %vm574_vm4, %v502_v26  ;;  %v2025_v55 = vpop.f32.mrf.mxu1  ;;  %v656_v26 = vld [vmem:[#allocation2 + $0x1] sm:$0xff] }
  0xb0   : > { %v2026_v27 = vadd.f32 %v4449_v7, %v2025_v55 }
  0xb2   : > { %2109 = vrot.lane.b32.xlu0 %v2026_v27, %s3701_s20 }
  0xb3   : > { %v537_v2 = vpop.f32.mrf.mxu2  ;;  %v572_v45 = vpop.f32.mrf.mxu3 }
  0xb4   : > { %592 = vst.msk [vmem:[#allocation2 + $0x88] sm:$0xff] %vm574_vm4, %v537_v2  ;;  %v632_v2 = vmul.f32 %v4500_v57, %v606_v28  ;;  %v682_v45 = vmul.f32 %v4505_v44, %v656_v26  ;;  %v731_v28 = vld [vmem:[#allocation2 + $0xa] sm:$0xff] }
  0xb6   : > { %v505_v37 = vpop.f32.mrf.mxu0 }
  0xb7   : > { %579 = vst.msk [vmem:[#allocation2 + $0x20] sm:$0xff] %vm574_vm4, %v505_v37  ;;  %v2027_v33 = vpop.f32.mrf.mxu1 }
  0xb8   : > { %v2028_v13 = vadd.f32 %v4449_v7, %v2027_v33 }
  0xba   : > { %2111 = vrot.lane.b32.xlu0 %v2028_v13, %s3701_s20 }
  0xbb   : > { %v540_v36 = vpop.f32.mrf.mxu2  ;;  %v4520_v27 = vld [vmem:[#allocation2 + $0x88] sm:$0xff] }
  0xbc   : > { %593 = vst.msk [vmem:[#allocation2 + $0x90] sm:$0xff] %vm574_vm4, %v540_v36  ;;  %v4532_v36 = vld [vmem:[%s6033_s3 + $0x3] ss:$0 sm:$0xff] }
  0xbe   : > { %v507_v19 = vpop.f32.mrf.mxu0 }
  0xbf   : > { %580 = vst.msk [vmem:[#allocation2 + $0x28] sm:$0xff] %vm574_vm4, %v507_v19  ;;  %v730_v19 = vld [vmem:[#allocation2 + $0x2] sm:$0xff] }
  0xc3   : > { %v542_v32 = vpop.f32.mrf.mxu2 }
  0xc4   : > { %594 = vst.msk [vmem:[#allocation2 + $0x98] sm:$0xff] %vm574_vm4, %v542_v32 }
  0xc6   : > { %v510_v20 = vpop.f32.mrf.mxu0  ;;  %v2060_v40 = vpop.f32.mrf.mxu3 }
  0xc7   : > { %581 = vst.msk [vmem:[#allocation2 + $0x30] sm:$0xff] %vm574_vm4, %v510_v20  ;;  %v2061_v50 = vadd.f32 %v4449_v7, %v2060_v40  ;;  %v2030_v21 = vpop.f32.mrf.mxu1 }
  0xc8   : > { %v2031_v60 = vadd.f32 %v4449_v7, %v2030_v21  ;;  %v756_v21 = vmul.f32 %v4516_v4, %v730_v19 }
  0xc9   : > { %2137 = vrot.lane.b32.xlu2 %v2061_v50, %s3701_s20  ;;  %v706_v50 = vadd.f32 %v682_v45, %v632_v2 }
  0xca   : > { %2113 = vrot.lane.b32.xlu1 %v2031_v60, %s3701_s20 }
  0xcb   : > { %v545_v53 = vpop.f32.mrf.mxu2 }
  0xcc   : > { %595 = vst.msk [vmem:[#allocation2 + $0xa0] sm:$0xff] %vm574_vm4, %v545_v53 }
  0xce   : > { %v512_v3 = vpop.f32.mrf.mxu0  ;;  %v2062_v42 = vpop.f32.mrf.mxu3 }
  0xcf   : > { %582 = vst.msk [vmem:[#allocation2 + $0x38] sm:$0xff] %vm574_vm4, %v512_v3  ;;  %v2063_v31 = vadd.f32 %v4449_v7, %v2062_v42  ;;  %v2032_v35 = vpop.f32.mrf.mxu1  ;;  %v794_v3 = vadd.f32 %v770_v9, %v720_v5  ;;  %v823_v42 = vmul.f32 %v4532_v36, %v4520_v27  ;;  %v4607_v9 = vld [vmem:[%s6033_s3 + $0x6] ss:$0 sm:$0xff] }
  0xd0   : > { %v2033_v48 = vadd.f32 %v4449_v7, %v2032_v35 }
  0xd1   : > { %2139 = vrot.lane.b32.xlu0 %v2063_v31, %s3701_s20  ;;  %v4542_v31 = vld [vmem:[#allocation2 + $0x18] sm:$0xff] }
  0xd2   : > { %2115 = vrot.lane.b32.xlu1 %v2033_v48, %s3701_s20  ;;  %v4548_v48 = vld [vmem:[%s6033_s3 + $0x4] ss:$0 sm:$0xff] }
  0xd3   : > { %v547_v34 = vpop.f32.mrf.mxu2 }
  0xd4   : > { %596 = vst.msk [vmem:[#allocation2 + $0xa8] sm:$0xff] %vm574_vm4, %v547_v34  ;;  %v4550_v34 = vld [vmem:[#allocation2 + $0xa0] sm:$0xff] }
  0xd6   : > { %v515_v51 = vpop.f32.mrf.mxu0  ;;  %v4524_v37 = vld [vmem:[#allocation2 + $0x38] sm:$0xff] }
  0xd7   : > { %583 = vst.msk [vmem:[#allocation2 + $0x40] sm:$0xff] %vm574_vm4, %v515_v51  ;;  %v2035_v54 = vpop.f32.mrf.mxu1  ;;  %v639_v32 = vmul.f32 %v4500_v57, %v4524_v37  ;;  %v4552_v51 = vld [vmem:[#allocation2 + $0x89] sm:$0xff] }
  0xd8   : > { %v2036_v47 = vadd.f32 %v4449_v7, %v2035_v54  ;;  %v652_v54 = vmul.f32 %v4500_v57, %v4550_v34 }
  0xda   : > { %v2065_v25 = vpop.f32.mrf.mxu3  ;;  %2117 = vrot.lane.b32.xlu2 %v2036_v47, %s3701_s20 }
  0xdb   : > { %v550_v38 = vpop.f32.mrf.mxu2  ;;  %v2066_v12 = vadd.f32 %v4449_v7, %v2065_v25  ;;  %v4558_v47 = vld [vmem:[#allocation2 + $0xa1] sm:$0xff] }
  0xdc   : > { %597 = vst.msk [vmem:[#allocation2 + $0xb0] sm:$0xff] %vm574_vm4, %v550_v38  ;;  %v4560_v38 = vld [vmem:[#allocation2 + $0xa2] sm:$0xff] }
  0xdd   : > { %2141 = vrot.lane.b32.xlu1 %v2066_v12, %s3701_s20  ;;  %v702_v12 = vmul.f32 %v4505_v44, %v4558_v47 }
  0xde   : > { %v517_v24 = vpop.f32.mrf.mxu0  ;;  %v4526_v33 = vld [vmem:[#allocation2 + $0x39] sm:$0xff] }
  0xdf   : > { %584 = vst.msk [vmem:[#allocation2 + $0x48] sm:$0xff] %vm574_vm4, %v517_v24  ;;  %v2037_v16 = vpop.f32.mrf.mxu1  ;;  %v689_v20 = vmul.f32 %v4505_v44, %v4526_v33  ;;  %v4562_v25 = vld [vmem:[#allocation2 + $0x3a] sm:$0xff]  ;;  %v776_v24 = vmul.f32 %v4516_v4, %v4560_v38 }
  0xe0   : > { %v2038_v1 = vadd.f32 %v4449_v7, %v2037_v16  ;;  %v780_v16 = vadd.f32 %v756_v21, %v706_v50  ;;  %v4616_v19 = vld [vmem:[#allocation2 + $0x40] sm:$0xff]  ;;  %v4622_v50 = vld [vmem:[#allocation2 + $0x30] sm:$0xff] }
  0xe1   : > { %v713_v35 = vadd.f32 %v689_v20, %v639_v32  ;;  %v4624_v21 = vld [vmem:[#allocation2 + $0x22] sm:$0xff] }
  0xe2   : > { %2119 = vrot.lane.b32.xlu2 %v2038_v1, %s3701_s20  ;;  %v2067_v41 = vpop.f32.mrf.mxu3  ;;  %v809_v1 = vmul.f32 %v4532_v36, %v4542_v31 }
  0xe3   : > { %v552_v11 = vpop.f32.mrf.mxu2  ;;  %v2068_v30 = vadd.f32 %v4449_v7, %v2067_v41  ;;  %v876_v41 = vmul.f32 %v4548_v48, %v4552_v51 }
  0xe4   : > { %598 = vst.msk [vmem:[#allocation2 + $0xb8] sm:$0xff] %vm574_vm4, %v552_v11  ;;  %v847_v11 = vadd.f32 %v823_v42, %v794_v3 }
  0xe6   : > { %v520_v56 = vpop.f32.mrf.mxu0  ;;  %v900_v22 = vadd.f32 %v876_v41, %v847_v11  ;;  %v4618_v32 = vld [vmem:[#allocation2 + $0x41] sm:$0xff]  ;;  %v968_v41 = vmul.f32 %v4607_v9, %v4622_v50 }
  0xe7   : > { %585 = vst.msk [vmem:[#allocation2 + $0x50] sm:$0xff] %vm574_vm4, %v520_v56  ;;  %v2040_v29 = vpop.f32.mrf.mxu1  ;;  %v4572_v56 = vld [vmem:[#allocation2 + $0x19] sm:$0xff] }
  0xe8   : > { %v2041_v10 = vadd.f32 %v4449_v7, %v2040_v29  ;;  %v726_v29 = vadd.f32 %v702_v12, %v652_v54  ;;  %v4636_v54 = vld [vmem:[%s6033_s3 + $0x7] ss:$0 sm:$0xff] }
  0xea   : > { %2121 = vrot.lane.b32.xlu0 %v2041_v10, %s3701_s20  ;;  %2143 = vrot.lane.b32.xlu2 %v2068_v30, %s3701_s20  ;;  %v747_v10 = vld [vmem:[#allocation2 + $0x8a] sm:$0xff] }
  0xeb   : > { %v555_v23 = vpop.f32.mrf.mxu2 }
  0xec   : > { %599 = vst.msk [vmem:[#allocation2 + $0xc0] sm:$0xff] %vm574_vm4, %v555_v23  ;;  %v763_v23 = vmul.f32 %v4516_v4, %v4562_v25 }
  0xee   : > { %v522_v62 = vpop.f32.mrf.mxu0  ;;  %v4595_v17 = vadd.f32 %v763_v23, %v713_v35  ;;  %v4597_v49 = vld [vmem:[#allocation2 + $0x50] sm:$0xff]  ;;  %v757_v35 = vmul.f32 %v4516_v4, %v731_v28  ;;  %v4662_v28 = vmul.f32 %v4505_v44, %v4552_v51  ;;  %v4675_v51 = vld [vmem:[#allocation2 + $0x42] sm:$0xff] }
  0xef   : > { %v2070_v18 = vpop.f32.mrf.mxu3  ;;  %586 = vst.msk [vmem:[#allocation2 + $0x58] sm:$0xff] %vm574_vm4, %v522_v62  ;;  %v2042_v8 = vpop.f32.mrf.mxu1  ;;  %v4581_v62 = vld [vmem:[%s6033_s3 + $0x5] ss:$0 sm:$0xff]  ;;  %v642_v26 = vmul.f32 %v4500_v57, %v4597_v49 }
  0xf0   : > { %v2071_v52 = vadd.f32 %v4449_v7, %v2070_v18  ;;  %v2043_v15 = vadd.f32 %v4449_v7, %v2042_v8  ;;  %v607_v18 = vld [vmem:[#allocation2 + $0x8] sm:$0xff]  ;;  %v929_v39 = vmul.f32 %v4581_v62, %v747_v10  ;;  %6075 = vst [vmem:[#allocation3_spill] sm:$0xff] %v4595_v17  ;;  %v916_v17 = vmul.f32 %v4581_v62, %v4624_v21 }
  0xf2   : > { %2123 = vrot.lane.b32.xlu1 %v2043_v15, %s3701_s20  ;;  %2145 = vrot.lane.b32.xlu0 %v2071_v52, %s3701_s20  ;;  %v657_v52 = vld [vmem:[#allocation2 + $0x9] sm:$0xff]  ;;  %v4583_v15 = vadd.f32 %v776_v24, %v726_v29  ;;  %v953_v20 = vadd.f32 %v929_v39, %v900_v22  ;;  %v640_v24 = vmul.f32 %v4500_v57, %v4616_v19 }
  0xf3   : > { %v557_v46 = vpop.f32.mrf.mxu2  ;;  %v683_v0 = vmul.f32 %v4505_v44, %v657_v52  ;;  %v760_v29 = vmul.f32 %v4516_v4, %v4624_v21  ;;  %v658_v52 = vld [vmem:[#allocation2 + $0x11] sm:$0xff] }
  0xf4   : > { %600 = vst.msk [vmem:[#allocation2 + $0xc8] sm:$0xff] %vm574_vm4, %v557_v46  ;;  %v833_v46 = vadd.f32 %v809_v1, %v780_v16  ;;  %v690_v16 = vmul.f32 %v4505_v44, %v4618_v32 }
  0xf5   : > { %6074 = vst [vmem:[#allocation4_spill] sm:$0xff] %v4583_v15 }
  0xf6   : > { %v525_v63 = vpop.f32.mrf.mxu0  ;;  %v4601_v5 = vld [vmem:[#allocation2 + $0x52] sm:$0xff] }
  0xf7   : > { %v2072_v61 = vpop.f32.mrf.mxu3  ;;  %587 = vst.msk [vmem:[#allocation2 + $0x60] sm:$0xff] %vm574_vm4, %v525_v63  ;;  %v2045_v59 = vpop.f32.mrf.mxu1  ;;  %v862_v63 = vmul.f32 %v4548_v48, %v4572_v56 }
  0xf8   : > { %v2073_v6 = vadd.f32 %v4449_v7, %v2072_v61  ;;  %v2046_v58 = vadd.f32 %v4449_v7, %v2045_v59  ;;  %v610_v59 = vld [vmem:[#allocation2 + $0x20] sm:$0xff] }
  0xf9   : > { %v636_v45 = vmul.f32 %v4500_v57, %v610_v59 }
  0xfa   : > { %2147 = vrot.lane.b32.xlu1 %v2073_v6, %s3701_s20  ;;  %2125 = vrot.lane.b32.xlu2 %v2046_v58, %s3701_s20  ;;  %v4589_v6 = vld [vmem:[#allocation2 + $0x1a] sm:$0xff] }
  0xfb   : > { %v560_v14 = vpop.f32.mrf.mxu2  ;;  %v4591_v58 = vld [vmem:[#allocation2 + $0x21] sm:$0xff]  ;;  %v915_v2 = vmul.f32 %v4581_v62, %v4589_v6 }
  0xfc   : > { %601 = vst.msk [vmem:[#allocation2 + $0xd0] sm:$0xff] %vm574_vm4, %v560_v14  ;;  %v633_v14 = vmul.f32 %v4500_v57, %v607_v18  ;;  %v608_v18 = vld [vmem:[#allocation2 + $0x10] sm:$0xff] }
  0xfe   : > { %v527_v43 = vpop.f32.mrf.mxu0  ;;  %v707_v42 = vadd.f32 %v683_v0, %v633_v14  ;;  %v810_v14 = vmul.f32 %v4532_v36, %v610_v59  ;;  %v4658_v0 = vld [vmem:[%s6033_s3 + $0x8] ss:$0 sm:$0xff]  ;;  %v4669_v59 = vld [vmem:[#allocation2 + $0x32] sm:$0xff] }
  0xff   : > { %v2075_v55 = vpop.f32.mrf.mxu3  ;;  %588 = vst.msk [vmem:[#allocation2 + $0x68] sm:$0xff] %vm574_vm4, %v527_v43  ;;  %v2047_v40 = vpop.f32.mrf.mxu1  ;;  %v4599_v43 = vld [vmem:[#allocation2 + $0x51] sm:$0xff] }
 0x100   : > { %v2076_v13 = vadd.f32 %v4449_v7, %v2075_v55  ;;  %v2048_v60 = vadd.f32 %v4449_v7, %v2047_v40  ;;  %v886_v55 = vadd.f32 %v862_v63, %v833_v46  ;;  %v982_v40 = vmul.f32 %v4607_v9, %v4550_v34 }
 0x101   : > { %v1035_v63 = vmul.f32 %v4636_v54, %v4558_v47  ;;  %v781_v39 = vadd.f32 %v757_v35, %v707_v42  ;;  %v611_v42 = vld [vmem:[#allocation2 + $0x28] sm:$0xff] }
 0x102   : > { %2127 = vrot.lane.b32.xlu0 %v2048_v60, %s3701_s20  ;;  %2149 = vrot.lane.b32.xlu2 %v2076_v13, %s3701_s20  ;;  %v686_v13 = vmul.f32 %v4505_v44, %v4591_v58  ;;  %v692_v60 = vmul.f32 %v4505_v44, %v4599_v43  ;;  %v939_v11 = vadd.f32 %v915_v2, %v886_v55  ;;  %v661_v35 = vld [vmem:[#allocation2 + $0x29] sm:$0xff] }
 0x103   : > { %v562_v53 = vpop.f32.mrf.mxu2  ;;  %v1006_v46 = vadd.f32 %v982_v40, %v953_v20  ;;  %v634_v55 = vmul.f32 %v4500_v57, %v608_v18  ;;  %v684_v2 = vmul.f32 %v4505_v44, %v658_v52  ;;  %v813_v40 = vmul.f32 %v4532_v36, %v4524_v37 }
 0x104   : > { %602 = vst.msk [vmem:[#allocation2 + $0xd8] sm:$0xff] %vm574_vm4, %v562_v53  ;;  %v766_v53 = vmul.f32 %v4516_v4, %v4601_v5  ;;  %v716_v12 = vadd.f32 %v692_v60, %v642_v26  ;;  %v710_v23 = vadd.f32 %v686_v13, %v636_v45  ;;  %v4665_v26 = vmul.f32 %v4516_v4, %v747_v10  ;;  %v732_v45 = vld [vmem:[#allocation2 + $0x12] sm:$0xff] }
 0x105   : > { %v992_v13 = vadd.f32 %v968_v41, %v939_v11  ;;  %v1088_v10 = vmul.f32 %v4658_v0, %v4560_v38  ;;  %v834_v18 = vadd.f32 %v810_v14, %v781_v39  ;;  %v863_v52 = vmul.f32 %v4548_v48, %v4591_v58  ;;  %v735_v14 = vld [vmem:[#allocation2 + $0x2a] sm:$0xff] }
 0x106   : > { %v4651_v22 = vadd.f32 %v766_v53, %v716_v12  ;;  %6077 = vst [vmem:[#allocation6_spill] sm:$0xff] %v4665_v26  ;;  %v784_v60 = vadd.f32 %v760_v29, %v710_v23  ;;  %v1059_v53 = vadd.f32 %v1035_v63, %v1006_v46  ;;  %v708_v12 = vadd.f32 %v684_v2, %v634_v55 }
 0x107   : > { %v4574_v30 = vpop.f32.mrf.mxu3  ;;  %v2050_v8 = vpop.f32.mrf.mxu1  ;;  %v758_v29 = vmul.f32 %v4516_v4, %v732_v45  ;;  %v866_v46 = vmul.f32 %v4548_v48, %v4526_v33  ;;  %v637_v39 = vmul.f32 %v4500_v57, %v611_v42  ;;  %v687_v58 = vmul.f32 %v4505_v44, %v661_v35 }
 0x108   : > { %v2051_v61 = vadd.f32 %v4449_v7, %v2050_v8  ;;  %6076 = vst [vmem:[#allocation5_spill] sm:$0xff] %v4651_v22  ;;  %v4681_v11 = vadd.f32 %v4449_v7, %v4574_v30  ;;  %v837_v63 = vadd.f32 %v813_v40, %v784_v60  ;;  %v1112_v22 = vadd.f32 %v1088_v10, %v1059_v53  ;;  %v4705_v40 = vld [vmem:[#allocation2 + $0x5a] sm:$0xff] }
 0x109   : > { %v782_v2 = vadd.f32 %v758_v29, %v708_v12  ;;  %v887_v15 = vadd.f32 %v863_v52, %v834_v18  ;;  %v969_v53 = vmul.f32 %v4607_v9, %v4524_v37  ;;  %v761_v21 = vmul.f32 %v4516_v4, %v735_v14  ;;  %v4716_v10 = vld [vmem:[#allocation2 + $0x58] sm:$0xff]  ;;  %v4725_v37 = vld [vmem:[#allocation2 + $0x48] sm:$0xff] }
 0x10a   : > { %2129 = vrot.lane.b32.xlu1 %v2051_v61, %s3701_s20  ;;  %v4649_v61 = vld [vmem:[#allocation2 + $0x31] sm:$0xff]  ;;  %v890_v12 = vadd.f32 %v866_v46, %v837_v63  ;;  %v643_v18 = vmul.f32 %v4500_v57, %v4716_v10  ;;  %v711_v29 = vadd.f32 %v687_v58, %v637_v39  ;;  %v1025_v46 = vmul.f32 %v4636_v54, %v4599_v43 }
 0x10b   : > { %v1021_v20 = vmul.f32 %v4636_v54, %v4649_v61  ;;  %v635_v63 = vmul.f32 %v4500_v57, %v4542_v31  ;;  %v814_v39 = vmul.f32 %v4532_v36, %v4616_v19  ;;  %v641_v43 = vmul.f32 %v4500_v57, %v4725_v37 }
 0x10f   : > { %v4630_v3 = vpop.f32.mrf.mxu3  ;;  %v2052_v1 = vpop.f32.mrf.mxu1 }
 0x110   : > { %v2053_v8 = vadd.f32 %v4449_v7, %v2052_v1  ;;  %v714_v1 = vadd.f32 %v690_v16, %v640_v24  ;;  %v764_v24 = vmul.f32 %v4516_v4, %v4675_v51  ;;  %v1045_v16 = vadd.f32 %v1021_v20, %v992_v13  ;;  %v4703_v20 = vld [vmem:[#allocation2 + $0x59] sm:$0xff] }
 0x111   : > { %v919_v13 = vmul.f32 %v4581_v62, %v4562_v25  ;;  %v4709_v60 = vadd.f32 %v4449_v7, %v4630_v3  ;;  %v693_v52 = vmul.f32 %v4505_v44, %v4703_v20 }
 0x112   : > { %2131 = vrot.lane.b32.xlu2 %v2053_v8, %s3701_s20  ;;  %v1074_v8 = vmul.f32 %v4658_v0, %v4669_v59  ;;  %v4696_v45 = vadd.f32 %v764_v24, %v714_v1  ;;  %v864_v1 = vmul.f32 %v4548_v48, %v661_v35  ;;  %v4727_v24 = vld [vmem:[#allocation2 + $0x49] sm:$0xff]  ;;  %v972_v35 = vmul.f32 %v4607_v9, %v4597_v49 }
 0x113   : > { %v717_v58 = vadd.f32 %v693_v52, %v643_v18  ;;  %v917_v49 = vmul.f32 %v4581_v62, %v735_v14  ;;  %v4755_v18 = vld [vmem:[#allocation2 + $0xba] sm:$0xff] }
 0x114   : > { %6078 = vst [vmem:[#allocation7_spill] sm:$0xff] %v4696_v45 }
 0x117   : > { %v2082_v41 = vpop.f32.mrf.mxu3  ;;  %v2055_v30 = vpop.f32.mrf.mxu1 }
 0x118   : > { %v2083_v23 = vadd.f32 %v4449_v7, %v2082_v41  ;;  %v2056_v55 = vadd.f32 %v4449_v7, %v2055_v30  ;;  %v811_v41 = vmul.f32 %v4532_v36, %v611_v42  ;;  %v1098_v42 = vadd.f32 %v1074_v8, %v1045_v16  ;;  %v4735_v16 = vld [vmem:[#allocation2 + $0x4a] sm:$0xff] }
 0x119   : > { %v940_v30 = vadd.f32 %v916_v17, %v887_v15  ;;  %v1022_v8 = vmul.f32 %v4636_v54, %v4526_v33  ;;  %v4741_v15 = vld [vmem:[#allocation2 + $0xb8] sm:$0xff] }
 0x11a   : > { %2133 = vrot.lane.b32.xlu0 %v2056_v55, %s3701_s20  ;;  %2155 = vrot.lane.b32.xlu2 %v2083_v23, %s3701_s20  ;;  %v835_v3 = vadd.f32 %v811_v41, %v782_v2  ;;  %v767_v23 = vmul.f32 %v4516_v4, %v4705_v40  ;;  %v785_v55 = vadd.f32 %v761_v21, %v711_v29  ;;  %v4743_v17 = vld [vmem:[#allocation2 + $0xb9] sm:$0xff] }
 0x11b   : > { %v943_v2 = vadd.f32 %v919_v13, %v890_v12  ;;  %v691_v41 = vmul.f32 %v4505_v44, %v4727_v24  ;;  %v765_v21 = vmul.f32 %v4516_v4, %v4735_v16  ;;  %v685_v13 = vmul.f32 %v4505_v44, %v4572_v56 }
 0x11c   : > { %v888_v45 = vadd.f32 %v864_v1, %v835_v3  ;;  %v4751_v26 = vadd.f32 %v767_v23, %v717_v58  ;;  %v655_v12 = vmul.f32 %v4500_v57, %v4741_v15  ;;  %v705_v52 = vmul.f32 %v4505_v44, %v4743_v17 }
 0x11d   : > { %v715_v14 = vadd.f32 %v691_v41, %v641_v43  ;;  %v993_v1 = vadd.f32 %v969_v53, %v940_v30  ;;  %v867_v3 = vmul.f32 %v4548_v48, %v4618_v32  ;;  %v838_v29 = vadd.f32 %v814_v39, %v785_v55 }
 0x11e   : > { %6079 = vst [vmem:[#allocation8_spill] sm:$0xff] %v4751_v26  ;;  %v996_v23 = vadd.f32 %v972_v35, %v943_v2  ;;  %v729_v26 = vadd.f32 %v705_v52, %v655_v12  ;;  %v759_v53 = vmul.f32 %v4516_v4, %v4589_v6  ;;  %v1078_v35 = vmul.f32 %v4658_v0, %v4601_v5 }
 0x11f   : > { %v2057_v33 = vpop.f32.mrf.mxu1  ;;  %v4769_v58 = vadd.f32 %v765_v21, %v715_v14  ;;  %v891_v2 = vadd.f32 %v867_v3, %v838_v29  ;;  %v709_v21 = vadd.f32 %v685_v13, %v635_v63  ;;  %v4792_v5 = vmul.f32 %v4532_v36, %v4550_v34 }
 0x120   : > { %v2058_v31 = vadd.f32 %v4449_v7, %v2057_v33  ;;  %v779_v33 = vmul.f32 %v4516_v4, %v4755_v18  ;;  %v4796_v52 = vmul.f32 %v4548_v48, %v4558_v47  ;;  %v973_v63 = vmul.f32 %v4607_v9, %v4716_v10 }
 0x121   : > { %6080 = vst [vmem:[#allocation9_spill] sm:$0xff] %v4769_v58  ;;  %v865_v47 = vmul.f32 %v4548_v48, %v4649_v61  ;;  %v5341_v58 = vld [vmem:[#allocation2 + $0x71] sm:$0xff] }
 0x122   : > { %2135 = vrot.lane.b32.xlu1 %v2058_v31, %s3701_s20  ;;  %2151 = vrot.lane.b32.xlu0 %v4681_v11, %s3701_s20  ;;  %v941_v31 = vadd.f32 %v917_v49, %v888_v45  ;;  %v970_v11 = vmul.f32 %v4607_v9, %v4616_v19  ;;  %v920_v45 = vmul.f32 %v4581_v62, %v4675_v51 }
 0x123   : > { %v2138_v7 = vpop.permute.xlu2 %2137  ;;  %v1046_v49 = vadd.f32 %v1022_v8, %v993_v1  ;;  %v1049_v19 = vadd.f32 %v1025_v46, %v996_v23  ;;  %v4784_v14 = vadd.f32 %v779_v33, %v729_v26  ;;  %v4800_v8 = vmul.f32 %v4581_v62, %v4560_v38 }
 0x124   : > { %v2195_v56 = vsel %vm574_vm4, %v1112_v22, %v2138_v7  ;;  %v2110_v41 = vpop.permute.xlu0 %2109  ;;  %v1075_v22 = vmul.f32 %v4658_v0, %v4562_v25  ;;  %v1023_v25 = vmul.f32 %v4636_v54, %v4618_v32  ;;  %v812_v26 = vmul.f32 %v4532_v36, %v4622_v50 }
 0x125   : > { %v2243_v43 = vmul.f32 0.70710677, %v2195_v56  ;;  %v2181_v30 = vsel %vm574_vm4, %v1098_v42, %v2110_v41  ;;  %6081 = vst [vmem:[#allocation10_spill] sm:$0xff] %v4784_v14  ;;  %v994_v42 = vadd.f32 %v970_v11, %v941_v31  ;;  %v944_v34 = vadd.f32 %v920_v45, %v891_v2 }
 0x126   : > { %v2229_v55 = vmul.f32 0.70710677, %v2181_v30  ;;  %v1099_v13 = vadd.f32 %v1075_v22, %v1046_v49  ;;  %v1102_v38 = vadd.f32 %v1078_v35, %v1049_v19  ;;  %v783_v7 = vadd.f32 %v759_v53, %v709_v21 }
 0x127   : > { %v2315_v39 = vand.u32 2147483647, %v2243_v43  ;;  %v918_v1 = vmul.f32 %v4581_v62, %v4669_v59  ;;  %v1047_v29 = vadd.f32 %v1023_v25, %v994_v42  ;;  %v638_v23 = vmul.f32 %v4500_v57, %v4622_v50 }
 0x128   : > { %v4786_v12 = vand.u32 2147483647, %v2229_v55  ;;  %v688_v33 = vmul.f32 %v4505_v44, %v4649_v61  ;;  %v1026_v41 = vmul.f32 %v4636_v54, %v4703_v20  ;;  %vm2267_vm5 = vcmp.lt.f32.partialorder %v2243_v43, 0.0 }
 0x129   : > { %v2339_v6 = vmul.f32 0.3275911, %v2315_v39  ;;  %v2939_v31 = vsub.f32 0.0, %v2315_v39  ;;  %v997_v11 = vadd.f32 %v973_v63, %v944_v34  ;;  %vm2253_vm6 = vcmp.lt.f32.partialorder %v2229_v55, 0.0 }
 0x12a   : > { %2153 = vrot.lane.b32.xlu1 %v4709_v60, %s3701_s20  ;;  %v2325_v32 = vmul.f32 0.3275911, %v4786_v12  ;;  %v1076_v60 = vmul.f32 %v4658_v0, %v4675_v51  ;;  %v712_v53 = vadd.f32 %v688_v33, %v638_v23  ;;  %v762_v51 = vmul.f32 %v4516_v4, %v4669_v59  ;;  %s3469_s20 = smul.u32 24, %s6132_s21 }
 0x12b   : > { %v4804_v46 = vadd.f32 1.0, %v2339_v6  ;;  %v836_v50 = vadd.f32 %v812_v26, %v783_v7  ;;  %v1079_v61 = vmul.f32 %v4658_v0, %v4705_v40  ;;  %v649_v22 = vmul.f32 %v4500_v57, %v4520_v27 }
 0x12c   : > { %v2112_v3 = vpop.permute.xlu0 %2111  ;;  %v4822_v48 = vadd.f32 1.0, %v2325_v32  ;;  %v4832_v44 = vadd.f32 %v1076_v60, %v1047_v29  ;;  %v4838_v35 = vmul.f32 0.5, %v2195_v56  ;;  %v4840_v45 = vadd.f32 %v762_v51, %v712_v53  ;;  %s4989_s22 = sadd.s32 %s3470_s30, %s3469_s20 }
 0x12d   : > { %3523 = vrcp.f32 %v4804_v46  ;;  %v4827_v62 = vsel %vm574_vm4, %v1099_v13, %v2112_v3  ;;  %v4842_v2 = vmul.f32 0.5, %v2181_v30  ;;  %v6051_v55 = vmov 1.0   ;;  %v6082_v3 = vld [vmem:[#allocation6_spill] sm:$0xff]  ;;  %s3289_s21 = sshll.u32 %s4989_s22, 3 }
 0x12e   : > { %3525 = vrcp.f32 %v4822_v48  ;;  %v4845_v4 = vmul.f32 0.70710677, %v4827_v62  ;;  %v4849_v49 = vsel %vm2267_vm5, -1.0, %v6051_v55  ;;  %v2963_v19 = vmul.f32 %v2939_v31, %v2315_v39  ;;  %s5012_s9 = scalar_lea.vmem %s6036_s6, %s3289_s21 }
 0x12f   : > { %v4852_v21 = vsel %vm2253_vm6, -1.0, %v6051_v55  ;;  %v1050_v57 = vadd.f32 %v1026_v41, %v997_v11  ;;  %v2925_v56 = vsub.f32 0.0, %v4786_v12  ;;  %v889_v6 = vadd.f32 %v865_v47, %v836_v50 }
 0x130   : > { %v4857_v30 = vand.u32 2147483647, %v4845_v4  ;;  %vm2574_vm7 = vweird.f32 %v4804_v46  ;;  %v2578_v42 = vand.u32 2147483647, %v4804_v46  ;;  %v2580_v43 = vand.u32 2147483648, %v4804_v46 }
 0x131   : > { %v723_v39 = vadd.f32 %v4662_v28, %v649_v22  ;;  %v3001_v13 = vmul.f32 1.442695, %v2963_v19  ;;  %v4870_v7 = vadd.f32 %v1079_v61, %v1050_v57  ;;  %v942_v33 = vadd.f32 %v918_v1, %v889_v6 }
 0x132   : > { %v2326_v32 = vmul.f32 0.3275911, %v4857_v30  ;;  %v2581_v41 = vor.u32 1.1754944e-38, %v2580_v43  ;;  %v2949_v31 = vmul.f32 %v2925_v56, %v4786_v12  ;;  %v971_v53 = vmul.f32 %v4607_v9, %v4725_v37 }
 0x133   : > { %v3524_v59 = vpop.eup %3523  ;;  %v797_v29 = vadd.f32 %v6082_v3, %v723_v39  ;;  %vm2579_vm10 = vcmp.eq.f32.partialorder %v2578_v42, 8.507059e+37  ;;  %v2384_v1 = vand.u32 2147483648, %v4822_v48  ;;  %vm2378_vm12 = vweird.f32 %v4822_v48 }
 0x134   : > { %v2570_v27 = vmul.f32 %v3524_v59, %v4804_v46  ;;  %v2118_v25 = vpop.permute.xlu2 %2117  ;;  %vm2575_vm8 = vweird.f32 %v3524_v59  ;;  %v3526_v63 = vpop.eup %3525  ;;  %v4874_v28 = vadd.f32 1.0, %v2326_v32  ;;  %v2382_v46 = vand.u32 2147483647, %v4822_v48 }
 0x135   : > { %v4865_v34 = vsel %vm574_vm4, %v1102_v38, %v2118_v25  ;;  %v2374_v23 = vmul.f32 %v3526_v63, %v4822_v48  ;;  %vm4878_vm9 = vmor %vm2574_vm7, %vm2575_vm8  ;;  %v850_v61 = vadd.f32 %v4792_v5, %v797_v29  ;;  %vm2379_vm11 = vweird.f32 %v3526_v63 }
 0x136   : > { %v2571_v26 = vsub.f32 1.0, %v2570_v27  ;;  %v4868_v47 = vmul.f32 0.70710677, %v4865_v34  ;;  %3527 = vrcp.f32 %v4874_v28  ;;  %v4898_v57 = vmul.f32 1.442695, %v2949_v31  ;;  %vm2380_vm14 = vmor %vm2378_vm12, %vm2379_vm11 }
 0x137   : > { %v2375_v50 = vsub.f32 1.0, %v2374_v23  ;;  %3529 = vpow2.f32 %v3001_v13  ;;  %v995_v56 = vadd.f32 %v971_v53, %v942_v33  ;;  %vm2254_vm13 = vcmp.lt.f32.partialorder %v4845_v4, 0.0 }
 0x138   : > { %v2572_v60 = vmul.f32 %v3524_v59, %v2571_v26  ;;  %v4884_v11 = vand.u32 2147483647, %v4868_v47  ;;  %vm2383_vm15 = vcmp.eq.f32.partialorder %v2382_v46, 8.507059e+37  ;;  %v1024_v43 = vmul.f32 %v4636_v54, %v4727_v24 }
 0x139   : > { %v2376_v22 = vmul.f32 %v3526_v63, %v2375_v50  ;;  %v4907_v25 = vadd.f32 %v4796_v52, %v850_v61  ;;  %v4919_v3 = vmul.f32 0.5, %v4827_v62  ;;  %v4922_v24 = vsel %vm2254_vm13, -1.0, %v6051_v55 }
 0x13a   : > { %v2573_v51 = vadd.f32 %v3524_v59, %v2572_v60  ;;  %v2329_v19 = vmul.f32 0.3275911, %v4884_v11  ;;  %v2396_v60 = vand.u32 2147483647, %v4874_v28  ;;  %v1048_v38 = vadd.f32 %v1024_v43, %v995_v56 }
 0x13b   : > { %v2377_v42 = vadd.f32 %v3526_v63, %v2376_v22  ;;  %v1077_v62 = vmul.f32 %v4658_v0, %v4735_v16  ;;  %vm2392_vm0 = vweird.f32 %v4874_v28  ;;  %v2926_v53 = vsub.f32 0.0, %v4857_v30 }
 0x13c   : > { %v2577_v12 = vsel %vm4878_vm9, %v3524_v59, %v2573_v51  ;;  %v2114_v27 = vpop.permute.xlu1 %2113  ;;  %v4902_v5 = vadd.f32 1.0, %v2329_v19  ;;  %v2385_v59 = vor.u32 1.1754944e-38, %v2384_v1  ;;  %v3528_v48 = vpop.eup %3527  ;;  %v2929_v46 = vsub.f32 0.0, %v4884_v11 }
 0x13d   : > { %v4895_v37 = vsel %vm2579_vm10, %v2581_v41, %v2577_v12  ;;  %v2381_v26 = vsel %vm2380_vm14, %v3526_v63, %v2377_v42  ;;  %v4912_v32 = vsel %vm574_vm4, %v4832_v44, %v2114_v27  ;;  %v4914_v4 = vpop.eup %3529  ;;  %v2388_v52 = vmul.f32 %v3528_v48, %v4874_v28  ;;  %v2120_v51 = vpop.permute.xlu2 %2119 }
 0x13e   : > { %v2723_v6 = vmul.f32 1.0614054, %v4895_v37  ;;  %3531 = vrcp.f32 %v4902_v5  ;;  %v4916_v13 = vsel %vm2383_vm15, %v2385_v59, %v2381_v26  ;;  %v2398_v44 = vand.u32 2147483648, %v4874_v28 }
 0x13f   : > { %v2709_v29 = vmul.f32 1.0614054, %v4916_v13  ;;  %v2389_v23 = vsub.f32 1.0, %v2388_v52  ;;  %v4930_v33 = vmul.f32 0.70710677, %v4912_v32  ;;  %vm2393_vm1 = vweird.f32 %v3528_v48 }
 0x140   : > { %v2747_v39 = vadd.f32 -1.4531521, %v2723_v6  ;;  %vm4942_vm2 = vcmp.eq.f32.partialorder %v2396_v60, 8.507059e+37  ;;  %v2399_v19 = vor.u32 1.1754944e-38, %v2398_v44  ;;  %vm2257_vm3 = vcmp.lt.f32.partialorder %v4868_v47, 0.0  ;;  %vm2394_vm5 = vmor %vm2392_vm0, %vm2393_vm1 }
 0x141   : > { %v2733_v31 = vadd.f32 -1.4531521, %v2709_v29  ;;  %v2390_v50 = vmul.f32 %v3528_v48, %v2389_v23  ;;  %v4938_v1 = vand.u32 2147483647, %v4930_v33  ;;  %v4951_v42 = vsel %vm574_vm4, %v4870_v7, %v2120_v51 }
 0x142   : > { %v2771_v63 = vmul.f32 %v2747_v39, %v4895_v37  ;;  %v2950_v39 = vmul.f32 %v2926_v53, %v4857_v30  ;;  %v2438_v26 = vand.u32 2147483647, %v4902_v5  ;;  %v2440_v29 = vand.u32 2147483648, %v4902_v5 }
 0x143   : > { %v2757_v22 = vmul.f32 %v2733_v31, %v4916_v13  ;;  %v2391_v27 = vadd.f32 %v3528_v48, %v2390_v50  ;;  %v2327_v6 = vmul.f32 0.3275911, %v4938_v1  ;;  %v4968_v28 = vmul.f32 0.70710677, %v4951_v42 }
 0x144   : > { %v2795_v41 = vadd.f32 1.4214138, %v2771_v63  ;;  %v3532_v61 = vpop.eup %3531  ;;  %v2975_v53 = vmul.f32 1.442695, %v2950_v39  ;;  %vm2434_vm7 = vweird.f32 %v4902_v5  ;;  %vm3141_vm9 = vcmask 64512  }
 0x145   : > { %v2430_v56 = vmul.f32 %v3532_v61, %v4902_v5  ;;  %v2781_v43 = vadd.f32 1.4214138, %v2757_v22  ;;  %v2395_v52 = vsel %vm2394_vm5, %v3528_v48, %v2391_v27  ;;  %v4959_v60 = vadd.f32 1.0, %v2327_v6 }
 0x146   : > { %v2819_v12 = vmul.f32 %v2795_v41, %v4895_v37  ;;  %v4965_v23 = vsel %vm4942_vm2, %v2399_v19, %v2395_v52  ;;  %vm2435_vm6 = vweird.f32 %v3532_v61  ;;  %v2441_v19 = vor.u32 1.1754944e-38, %v2440_v29 }
 0x147   : > { %v2431_v63 = vsub.f32 1.0, %v2430_v56  ;;  %v2805_v44 = vmul.f32 %v2781_v43, %v4916_v13  ;;  %v2710_v30 = vmul.f32 1.0614054, %v4965_v23  ;;  %3533 = vrcp.f32 %v4959_v60  ;;  %vm2436_vm8 = vmor %vm2434_vm7, %vm2435_vm6 }
 0x148   : > { %v2843_v59 = vadd.f32 -0.28449672, %v2819_v12  ;;  %3535 = vpow2.f32 %v4898_v57  ;;  %v2953_v12 = vmul.f32 %v2929_v46, %v4884_v11  ;;  %v4980_v27 = vand.u32 2147483647, %v4968_v28 }
 0x149   : > { %v2432_v48 = vmul.f32 %v3532_v61, %v2431_v63  ;;  %v2829_v31 = vadd.f32 -0.28449672, %v2805_v44  ;;  %v2734_v51 = vadd.f32 -1.4531521, %v2710_v30  ;;  %vm2439_vm10 = vcmp.eq.f32.partialorder %v2438_v26, 8.507059e+37 }
 0x14a   : > { %v2867_v7 = vmul.f32 %v2843_v59, %v4895_v37  ;;  %v1101_v6 = vadd.f32 %v1077_v62, %v1048_v38  ;;  %3537 = vpow2.f32 %v2975_v53  ;;  %v2981_v26 = vmul.f32 1.442695, %v2953_v12 }
 0x14b   : > { %v2433_v50 = vadd.f32 %v3532_v61, %v2432_v48  ;;  %v2853_v16 = vmul.f32 %v2829_v31, %v4916_v13  ;;  %v2758_v57 = vmul.f32 %v2734_v51, %v4965_v23  ;;  %v2412_v53 = vand.u32 2147483648, %v4959_v60 }
 0x14c   : > { %v2891_v41 = vadd.f32 0.2548296, %v2867_v7  ;;  %v2927_v7 = vsub.f32 0.0, %v4938_v1  ;;  %vm2406_vm12 = vweird.f32 %v4959_v60  ;;  %vm2255_vm15 = vcmp.lt.f32.partialorder %v4930_v33, 0.0  ;;  %v5089_v33 = vld [vmem:[%s6033_s3] ss:$0 sm:$0xff] }
 0x14d   : > { %v2437_v56 = vsel %vm2436_vm8, %v3532_v61, %v2433_v50  ;;  %v2877_v59 = vadd.f32 0.2548296, %v2853_v16  ;;  %v3534_v46 = vpop.eup %3533  ;;  %v2782_v43 = vadd.f32 1.4214138, %v2758_v57  ;;  %v4994_v61 = vsel %vm2257_vm3, -1.0, %v6051_v55  ;;  %v2116_v57 = vpop.permute.xlu1 %2115 }
 0x14e   : > { %v2915_v22 = vmul.f32 %v2891_v41, %v4895_v37  ;;  %v4984_v11 = vsel %vm2439_vm10, %v2441_v19, %v2437_v56  ;;  %v2330_v37 = vmul.f32 0.3275911, %v4980_v27  ;;  %v2402_v52 = vmul.f32 %v3534_v46, %v4959_v60 }
 0x14f   : > { %v2713_v38 = vmul.f32 1.0614054, %v4984_v11  ;;  %v2901_v39 = vmul.f32 %v2877_v59, %v4916_v13  ;;  %v2806_v63 = vmul.f32 %v2782_v43, %v4965_v23  ;;  %v2410_v41 = vand.u32 2147483647, %v4959_v60 }
 0x150   : > { %v3035_v5 = vmul.f32 %v4914_v4, %v2915_v22  ;;  %v3536_v4 = vpop.eup %3535  ;;  %v5001_v44 = vadd.f32 1.0, %v2330_v37  ;;  %v2403_v48 = vsub.f32 1.0, %v2402_v52  ;;  %vm2407_vm11 = vweird.f32 %v3534_v46 }
 0x151   : > { %v2737_v29 = vadd.f32 -1.4531521, %v2713_v38  ;;  %v3021_v30 = vmul.f32 %v3536_v4, %v2901_v39  ;;  %v2830_v31 = vadd.f32 -0.28449672, %v2806_v63  ;;  %v3538_v22 = vpop.eup %3537  ;;  %v2951_v19 = vmul.f32 %v2927_v7, %v4938_v1  ;;  %vm2408_vm13 = vmor %vm2406_vm12, %vm2407_vm11 }
 0x152   : > { %v3059_v62 = vsub.f32 1.0, %v3035_v5  ;;  %3539 = vrcp.f32 %v5001_v44  ;;  %v2404_v12 = vmul.f32 %v3534_v46, %v2403_v48  ;;  %v985_v56 = vmul.f32 %v4607_v9, %v4741_v15 }
 0x153   : > { %v2761_v13 = vmul.f32 %v2737_v29, %v4984_v11  ;;  %v3045_v50 = vsub.f32 1.0, %v3021_v30  ;;  %3541 = vpow2.f32 %v2981_v26  ;;  %v2413_v4 = vor.u32 1.1754944e-38, %v2412_v53 }
 0x154   : > { %v3083_v47 = vmul.f32 %v3059_v62, %v4849_v49  ;;  %v2854_v49 = vmul.f32 %v2830_v31, %v4965_v23  ;;  %v2405_v37 = vadd.f32 %v3534_v46, %v2404_v12  ;;  %vm2411_vm14 = vcmp.eq.f32.partialorder %v2410_v41, 8.507059e+37 }
 0x155   : > { %v2785_v16 = vadd.f32 1.4214138, %v2761_v13  ;;  %v3069_v59 = vmul.f32 %v3045_v50, %v4852_v21  ;;  %v5026_v9 = vsel %vm574_vm4, %v1101_v6, %v2116_v57  ;;  %v2930_v39 = vsub.f32 0.0, %v4980_v27 }
 0x156   : > { %v3107_v51 = vadd.f32 1.0, %v3083_v47  ;;  %v2878_v43 = vadd.f32 0.2548296, %v2854_v49  ;;  %v2409_v62 = vsel %vm2408_vm13, %v3534_v46, %v2405_v37  ;;  %v2977_v63 = vmul.f32 1.442695, %v2951_v19 }
 0x157   : > { %v2809_v38 = vmul.f32 %v2785_v16, %v4984_v11  ;;  %v3093_v1 = vadd.f32 1.0, %v3069_v59  ;;  %v5029_v60 = vsel %vm2411_vm14, %v2413_v4, %v2409_v62  ;;  %v2452_v6 = vand.u32 2147483647, %v5001_v44 }
 0x158   : > { %v3131_v5 = vmul.f32 %v3107_v51, %v4838_v35  ;;  %v3540_v15 = vpop.eup %3539  ;;  %v2902_v35 = vmul.f32 %v2878_v43, %v4965_v23  ;;  %v2711_v52 = vmul.f32 1.0614054, %v5029_v60  ;;  %v5039_v23 = vmul.f32 0.70710677, %v5026_v9 }
 0x159   : > { %v2833_v21 = vadd.f32 -0.28449672, %v2809_v38  ;;  %v3117_v26 = vmul.f32 %v3093_v1, %v4842_v2  ;;  %v2444_v46 = vmul.f32 %v3540_v15, %v5001_v44  ;;  %v2454_v2 = vand.u32 2147483648, %v5001_v44  ;;  %v3542_v41 = vpop.eup %3541 }
 0x15a   : > { %3156 = vst.msk [vmem:[%s5012_s9 + $0x70] sm:$0xff] %vm3141_vm9, %v3131_v5  ;;  %v3022_v29 = vmul.f32 %v3538_v22, %v2902_v35  ;;  %v2735_v47 = vadd.f32 -1.4531521, %v2711_v52  ;;  %v956_v48 = vadd.f32 %v4800_v8, %v4907_v25  ;;  %v2954_v53 = vmul.f32 %v2930_v39, %v4980_v27  ;;  %v621_v39 = vld [vmem:[#allocation2 + $0x78] sm:$0xff] }
 0x15b   : > { %v2857_v7 = vmul.f32 %v2833_v21, %v4984_v11  ;;  %3142 = vst.msk [vmem:[%s5012_s9] sm:$0xff] %vm3141_vm9, %v3117_v26  ;;  %v2445_v30 = vsub.f32 1.0, %v2444_v46  ;;  %v5048_v51 = vand.u32 2147483647, %v5039_v23  ;;  %vm2449_vm0 = vweird.f32 %v3540_v15  ;;  %v2144_v21 = vpop.permute.xlu2 %2143 }
 0x15c   : > { %v3046_v31 = vsub.f32 1.0, %v3022_v29  ;;  %v2759_v50 = vmul.f32 %v2735_v47, %v5029_v60  ;;  %v1009_v22 = vadd.f32 %v985_v56, %v956_v48  ;;  %vm2448_vm1 = vweird.f32 %v5001_v44 }
 0x15d   : > { %v2881_v13 = vadd.f32 0.2548296, %v2857_v7  ;;  %v2446_v12 = vmul.f32 %v3540_v15, %v2445_v30  ;;  %v2328_v8 = vmul.f32 0.3275911, %v5048_v51  ;;  %v2455_v57 = vor.u32 1.1754944e-38, %v2454_v2  ;;  %vm2450_vm2 = vmor %vm2448_vm1, %vm2449_vm0  ;;  %v671_v7 = vld [vmem:[#allocation2 + $0x79] sm:$0xff] }
 0x15e   : > { %v3070_v49 = vmul.f32 %v3046_v31, %v4922_v24  ;;  %v2783_v25 = vadd.f32 1.4214138, %v2759_v50  ;;  %v1038_v27 = vmul.f32 %v4636_v54, %v4743_v17  ;;  %v1091_v24 = vmul.f32 %v4658_v0, %v4755_v18  ;;  %v5066_v17 = vld [vmem:[#allocation2 + $0xa8] sm:$0xff]  ;;  %v5101_v31 = vld [vmem:[%s6033_s3 + $0x1] ss:$0 sm:$0xff] }
 0x15f   : > { %v2905_v16 = vmul.f32 %v2881_v13, %v4984_v11  ;;  %v2447_v19 = vadd.f32 %v3540_v15, %v2446_v12  ;;  %v5057_v37 = vadd.f32 1.0, %v2328_v8  ;;  %vm2453_vm3 = vcmp.eq.f32.partialorder %v2452_v6, 8.507059e+37  ;;  %v5081_v6 = vld [vmem:[#allocation2 + $0xa9] sm:$0xff]  ;;  %v5109_v50 = vld [vmem:[%s6033_s3 + $0x2] ss:$0 sm:$0xff] }
 0x160   : > { %v3094_v5 = vadd.f32 1.0, %v3070_v49  ;;  %v2807_v11 = vmul.f32 %v2783_v25, %v5029_v60  ;;  %v1062_v56 = vadd.f32 %v1038_v27, %v1009_v22  ;;  %v2983_v35 = vmul.f32 1.442695, %v2954_v53  ;;  %v5115_v25 = vld [vmem:[#allocation2 + $0xaa] sm:$0xff] }
 0x161   : > { %v3025_v59 = vmul.f32 %v3542_v41, %v2905_v16  ;;  %v2451_v44 = vsel %vm2450_vm2, %v3540_v15, %v2447_v19  ;;  %3543 = vrcp.f32 %v5057_v37  ;;  %v2209_v18 = vmul.f32 0.5, %v4865_v34  ;;  %v745_v34 = vld [vmem:[#allocation2 + $0x7a] sm:$0xff] }
 0x162   : > { %v3118_v43 = vmul.f32 %v3094_v5, %v4919_v3  ;;  %v5063_v4 = vsel %vm2453_vm3, %v2455_v57, %v2451_v44  ;;  %v2831_v1 = vadd.f32 -0.28449672, %v2807_v11  ;;  %3545 = vpow2.f32 %v2977_v63  ;;  %v5123_v5 = vld [vmem:[#allocation2 + $0x90] sm:$0xff] }
 0x163   : > { %v3049_v38 = vsub.f32 1.0, %v3025_v59  ;;  %v2714_v62 = vmul.f32 1.0614054, %v5063_v4  ;;  %v1115_v3 = vadd.f32 %v1091_v24, %v1062_v56  ;;  %v2279_v26 = vsel %vm2255_vm15, -1.0, %v6051_v55 }
 0x164   : > { %3143 = vst.msk [vmem:[%s5012_s9 + $0x8] sm:$0xff] %vm3141_vm9, %v3118_v43  ;;  %v2855_v52 = vmul.f32 %v2831_v1, %v5029_v60  ;;  %v5079_v46 = vmul.f32 %v4532_v36, %v4716_v10  ;;  %v647_v63 = vmul.f32 %v5089_v33, %v621_v39  ;;  %v653_v36 = vmul.f32 %v5089_v33, %v5066_v17  ;;  %v5127_v43 = vld [vmem:[#allocation2 + $0x91] sm:$0xff] }
 0x165   : > { %v3073_v15 = vmul.f32 %v3049_v38, %v4994_v61  ;;  %v2738_v29 = vadd.f32 -1.4531521, %v2714_v62  ;;  %v5084_v61 = vsel %vm574_vm4, %v1115_v3, %v2144_v21  ;;  %3547 = vpow2.f32 %v2983_v35  ;;  %v5135_v3 = vld [vmem:[%s6033_s3 + $0x3] ss:$0 sm:$0xff] }
 0x166   : > { %v2879_v10 = vadd.f32 0.2548296, %v2855_v52  ;;  %v5096_v2 = vmul.f32 0.70710677, %v5084_v61  ;;  %v697_v13 = vmul.f32 %v5101_v31, %v671_v7  ;;  %v703_v53 = vmul.f32 %v5101_v31, %v5081_v6  ;;  %v5147_v7 = vld [vmem:[%s6033_s3 + $0x4] ss:$0 sm:$0xff] }
 0x167   : > { %v3097_v47 = vadd.f32 1.0, %v3073_v15  ;;  %v2762_v30 = vmul.f32 %v2738_v29, %v5063_v4  ;;  %v3544_v48 = vpop.eup %3543  ;;  %v771_v12 = vmul.f32 %v5109_v50, %v745_v34  ;;  %v2928_v8 = vsub.f32 0.0, %v5048_v51 }
 0x168   : > { %v2903_v22 = vmul.f32 %v2879_v10, %v5029_v60  ;;  %v2416_v16 = vmul.f32 %v3544_v48, %v5057_v37  ;;  %v3546_v19 = vpop.eup %3545  ;;  %v2424_v57 = vand.u32 2147483647, %v5057_v37  ;;  %v5121_v27 = vand.u32 2147483647, %v5096_v2 }
 0x169   : > { %v3121_v41 = vmul.f32 %v3097_v47, %v2209_v18  ;;  %v2786_v49 = vadd.f32 1.4214138, %v2762_v30  ;;  %v721_v59 = vadd.f32 %v697_v13, %v647_v63  ;;  %v727_v24 = vadd.f32 %v703_v53, %v653_v36 }
 0x16a   : > { %v3023_v60 = vmul.f32 %v3546_v19, %v2903_v22  ;;  %v2417_v44 = vsub.f32 1.0, %v2416_v16  ;;  %v2426_v56 = vand.u32 2147483648, %v5057_v37  ;;  %vm2421_vm5 = vweird.f32 %v3544_v48  ;;  %v5169_v19 = vld [vmem:[#allocation2 + $0xb0] sm:$0xff] }
 0x16b   : > { %3146 = vst.msk [vmem:[%s5012_s9 + $0x20] sm:$0xff] %vm3141_vm9, %v3121_v41  ;;  %v2810_v11 = vmul.f32 %v2786_v49, %v5063_v4  ;;  %v2342_v38 = vmul.f32 0.3275911, %v5121_v27  ;;  %v777_v1 = vmul.f32 %v5109_v50, %v5115_v25  ;;  %v795_v62 = vadd.f32 %v771_v12, %v721_v59  ;;  %v3548_v35 = vpop.eup %3547  ;;  %v5156_v12 = vld [vmem:[#allocation2 + $0x92] sm:$0xff] }
 0x16c   : > { %v3047_v21 = vsub.f32 1.0, %v3023_v60  ;;  %v2418_v15 = vmul.f32 %v3544_v48, %v2417_v44  ;;  %v824_v39 = vmul.f32 %v5135_v3, %v5123_v5  ;;  %vm2420_vm6 = vweird.f32 %v5057_v37  ;;  %v5176_v60 = vld [vmem:[#allocation2 + $0xb2] sm:$0xff] }
 0x16d   : > { %v2834_v18 = vadd.f32 -0.28449672, %v2810_v11  ;;  %v5140_v52 = vadd.f32 1.0, %v2342_v38  ;;  %v5142_v29 = vadd.f32 %v777_v1, %v727_v24  ;;  %v877_v34 = vmul.f32 %v5147_v7, %v5127_v43  ;;  %vm2422_vm8 = vmor %vm2420_vm6, %vm2421_vm5  ;;  %v5174_v24 = vld [vmem:[#allocation2 + $0xb1] sm:$0xff] }
 0x16e   : > { %v3071_v47 = vmul.f32 %v3047_v21, %v2279_v26  ;;  %v2419_v36 = vadd.f32 %v3544_v48, %v2418_v15  ;;  %v848_v10 = vadd.f32 %v824_v39, %v795_v62  ;;  %v2207_v30 = vmul.f32 0.5, %v4912_v32  ;;  %v5163_v32 = vld [vmem:[%s6033_s3 + $0x5] ss:$0 sm:$0xff] }
 0x16f   : > { %6087 = vst [vmem:[#allocation6_spill] sm:$0xff] %v5142_v29  ;;  %v2858_v63 = vmul.f32 %v2834_v18, %v5063_v4  ;;  %vm2258_vm7 = vcmp.lt.f32.partialorder %v4968_v28, 0.0  ;;  %v2427_v37 = vor.u32 1.1754944e-38, %v2426_v56  ;;  %3549 = vrcp.f32 %v5140_v52  ;;  %v6088_v18 = vld [vmem:[#allocation7_spill] sm:$0xff] }
 0x170   : > { %v3095_v41 = vadd.f32 1.0, %v3071_v47  ;;  %v2423_v53 = vsel %vm2422_vm8, %v3544_v48, %v2419_v36  ;;  %vm2425_vm10 = vcmp.eq.f32.partialorder %v2424_v57, 8.507059e+37  ;;  %v870_v26 = vmul.f32 %v5147_v7, %v4703_v20 }
 0x171   : > { %v2882_v13 = vadd.f32 0.2548296, %v2858_v63  ;;  %v923_v22 = vmul.f32 %v5163_v32, %v4705_v40  ;;  %v5167_v49 = vsel %vm2425_vm10, %v2427_v37, %v2423_v53  ;;  %v901_v16 = vadd.f32 %v877_v34, %v848_v10  ;;  %v5208_v53 = vld [vmem:[#allocation2 + $0x61] sm:$0xff] }
 0x172   : > { %v3119_v48 = vmul.f32 %v3095_v41, %v2207_v30  ;;  %v2712_v59 = vmul.f32 1.0614054, %v5167_v49  ;;  %v2952_v20 = vmul.f32 %v2928_v8, %v5048_v51  ;;  %v2210_v11 = vmul.f32 0.5, %v4951_v42 }
 0x173   : > { %v2906_v57 = vmul.f32 %v2882_v13, %v5063_v4  ;;  %v2282_v40 = vsel %vm2258_vm7, -1.0, %v6051_v55  ;;  %v930_v44 = vmul.f32 %v5163_v32, %v5156_v12  ;;  %v5187_v4 = vld [vmem:[%s6033_s3 + $0x6] ss:$0 sm:$0xff]  ;;  %v1036_v42 = vmul.f32 %v4636_v54, %v5081_v6 }
 0x174   : > { %v983_v51 = vmul.f32 %v5187_v4, %v5066_v17  ;;  %3144 = vst.msk [vmem:[%s5012_s9 + $0x10] sm:$0xff] %vm3141_vm9, %v3119_v48  ;;  %v2736_v56 = vadd.f32 -1.4531521, %v2712_v59  ;;  %v654_v28 = vmul.f32 %v5089_v33, %v5169_v19  ;;  %v704_v62 = vmul.f32 %v5101_v31, %v5174_v24 }
 0x175   : > { %v3026_v8 = vmul.f32 %v3548_v35, %v2906_v57  ;;  %v3550_v38 = vpop.eup %3549  ;;  %v954_v1 = vadd.f32 %v930_v44, %v901_v16  ;;  %v778_v21 = vmul.f32 %v5109_v50, %v5176_v60  ;;  %v841_v15 = vadd.f32 %v5079_v46, %v6088_v18 }
 0x176   : > { %v2760_v35 = vmul.f32 %v2736_v56, %v5167_v49  ;;  %v2979_v34 = vmul.f32 1.442695, %v2952_v20  ;;  %v2612_v54 = vmul.f32 %v3550_v38, %v5140_v52  ;;  %v2620_v47 = vand.u32 2147483647, %v5140_v52 }
 0x177   : > { %v3050_v39 = vsub.f32 1.0, %v3026_v8  ;;  %v1007_v63 = vadd.f32 %v983_v51, %v954_v1  ;;  %v728_v36 = vadd.f32 %v704_v62, %v654_v28  ;;  %v894_v10 = vadd.f32 %v870_v26, %v841_v15  ;;  %v5216_v26 = vld [vmem:[#allocation2 + $0x60] sm:$0xff] }
 0x178   : > { %v2784_v37 = vadd.f32 1.4214138, %v2760_v35  ;;  %v2613_v41 = vsub.f32 1.0, %v2612_v54  ;;  %v1089_v13 = vmul.f32 %v4658_v0, %v5115_v25  ;;  %v2622_v46 = vand.u32 2147483648, %v5140_v52  ;;  %v2140_v0 = vpop.permute.xlu0 %2139  ;;  %v622_v35 = vld [vmem:[#allocation2 + $0x80] sm:$0xff] }
 0x179   : > { %v3074_v30 = vmul.f32 %v3050_v39, %v2282_v40  ;;  %v1060_v16 = vadd.f32 %v1036_v42, %v1007_v63  ;;  %v5211_v48 = vadd.f32 %v778_v21, %v728_v36  ;;  %v5213_v57 = vadd.f32 %v923_v22, %v894_v10  ;;  %v5218_v40 = vld [vmem:[#allocation2 + $0x62] sm:$0xff] }
 0x17a   : > { %v2808_v20 = vmul.f32 %v2784_v37, %v5167_v49  ;;  %v2614_v44 = vmul.f32 %v3550_v38, %v2613_v41  ;;  %vm2617_vm11 = vweird.f32 %v3550_v38  ;;  %vm2616_vm12 = vweird.f32 %v5140_v52  ;;  %v672_v10 = vld [vmem:[#allocation2 + $0x81] sm:$0xff] }
 0x17b   : > { %6089 = vst [vmem:[#allocation7_spill] sm:$0xff] %v5211_v48  ;;  %v3098_v59 = vadd.f32 1.0, %v3074_v30  ;;  %v644_v51 = vmul.f32 %v5089_v33, %v5216_v26  ;;  %v694_v22 = vmul.f32 %v5101_v31, %v5208_v53  ;;  %v1113_v28 = vadd.f32 %v1089_v13, %v1060_v16  ;;  %vm2618_vm13 = vmor %vm2616_vm12, %vm2617_vm11 }
 0x17c   : > { %v2832_v56 = vadd.f32 -0.28449672, %v2808_v20  ;;  %v2615_v42 = vadd.f32 %v3550_v38, %v2614_v44  ;;  %3551 = vpow2.f32 %v2979_v34  ;;  %v2623_v1 = vor.u32 1.1754944e-38, %v2622_v46 }
 0x17d   : > { %v3122_v8 = vmul.f32 %v3098_v59, %v2210_v11  ;;  %v768_v62 = vmul.f32 %v5109_v50, %v5218_v40  ;;  %vm2621_vm14 = vcmp.eq.f32.partialorder %v2620_v47, 8.507059e+37  ;;  %v5231_v18 = vsel %vm574_vm4, %v1113_v28, %v2140_v0  ;;  %v746_v59 = vld [vmem:[#allocation2 + $0x82] sm:$0xff] }
 0x17e   : > { %v2856_v52 = vmul.f32 %v2832_v56, %v5167_v49  ;;  %v2619_v21 = vsel %vm2618_vm13, %v3550_v38, %v2615_v42  ;;  %v2942_v11 = vsub.f32 0.0, %v5121_v27  ;;  %v5237_v39 = vmul.f32 0.70710677, %v5231_v18 }
 0x17f   : > { %3147 = vst.msk [vmem:[%s5012_s9 + $0x28] sm:$0xff] %vm3141_vm9, %v3122_v8  ;;  %v5233_v15 = vsel %vm2621_vm14, %v2623_v1, %v2619_v21  ;;  %v718_v34 = vadd.f32 %v694_v22, %v644_v51  ;;  %v648_v36 = vmul.f32 %v5089_v33, %v622_v35  ;;  %v698_v47 = vmul.f32 %v5101_v31, %v672_v10  ;;  %v3626_v22 = vld [vmem:[#allocation2 + $0x50] sm:$0xff]  ;;  %v5272_v10 = vld [vmem:[#allocation2 + $0x99] sm:$0xff] }
 0x180   : > { %v2880_v54 = vadd.f32 0.2548296, %v2856_v52  ;;  %v2726_v63 = vmul.f32 1.0614054, %v5233_v15  ;;  %v5242_v38 = vand.u32 2147483647, %v5237_v39  ;;  %v2966_v46 = vmul.f32 %v2942_v11, %v5121_v27 }
 0x181   : > { %v5245_v30 = vadd.f32 %v768_v62, %v718_v34  ;;  %vm2256_vm15 = vcmp.lt.f32.partialorder %v5039_v23, 0.0  ;;  %v722_v0 = vadd.f32 %v698_v47, %v648_v36  ;;  %v772_v51 = vmul.f32 %v5109_v50, %v746_v59  ;;  %v5260_v62 = vld [vmem:[#allocation2 + $0x68] sm:$0xff]  ;;  %v3627_v34 = vld [vmem:[#allocation2 + $0x51] sm:$0xff] }
 0x182   : > { %v2904_v37 = vmul.f32 %v2880_v54, %v5167_v49  ;;  %v2750_v41 = vadd.f32 -1.4531521, %v2726_v63  ;;  %v3552_v13 = vpop.eup %3551  ;;  %v2340_v16 = vmul.f32 0.3275911, %v5242_v38  ;;  %v816_v8 = vmul.f32 %v3626_v22, %v5135_v3  ;;  %v5256_v49 = vld [vmem:[#allocation2 + $0x98] sm:$0xff]  ;;  %v5262_v52 = vld [vmem:[#allocation2 + $0x69] sm:$0xff] }
 0x183   : > { %6090 = vst [vmem:[#allocation11_spill] sm:$0xff] %v5245_v30  ;;  %v796_v1 = vadd.f32 %v772_v51, %v722_v0  ;;  %v825_v27 = vmul.f32 %v5135_v3, %v5256_v49  ;;  %v2280_v21 = vsel %vm2256_vm15, -1.0, %v6051_v55  ;;  %v3007_v11 = vmul.f32 1.442695, %v2966_v46 }
 0x184   : > { %v3024_v20 = vmul.f32 %v3552_v13, %v2904_v37  ;;  %v2774_v44 = vmul.f32 %v2750_v41, %v5233_v15  ;;  %v5254_v56 = vadd.f32 1.0, %v2340_v16  ;;  %6091 = vst [vmem:[#allocation12_spill] sm:$0xff] %v5262_v52  ;;  %v645_v35 = vmul.f32 %v5089_v33, %v5260_v62  ;;  %v5274_v37 = vld [vmem:[#allocation2 + $0x6a] sm:$0xff]  ;;  %v3628_v41 = vld [vmem:[#allocation2 + $0x52] sm:$0xff]  ;;  %v5280_v16 = vld [vmem:[#allocation2 + $0x9a] sm:$0xff] }
 0x185   : > { %v869_v54 = vmul.f32 %v3627_v34, %v5147_v7  ;;  %v849_v47 = vadd.f32 %v825_v27, %v796_v1  ;;  %6092 = vst [vmem:[#allocation13_spill] sm:$0xff] %v5274_v37  ;;  %v922_v23 = vmul.f32 %v3628_v41, %v5163_v32  ;;  %v3629_v13 = vld [vmem:[#allocation2 + $0x48] sm:$0xff]  ;;  %v878_v59 = vmul.f32 %v5147_v7, %v5272_v10 }
 0x186   : > { %v3048_v42 = vsub.f32 1.0, %v3024_v20  ;;  %v2798_v28 = vadd.f32 1.4214138, %v2774_v44  ;;  %3553 = vrcp.f32 %v5254_v56  ;;  %v5278_v46 = vmul.f32 %v3629_v13, %v5135_v3  ;;  %v3630_v27 = vld [vmem:[#allocation2 + $0x49] sm:$0xff] }
 0x187   : > { %v695_v20 = vmul.f32 %v5101_v31, %v5262_v52  ;;  %v2208_v44 = vmul.f32 0.5, %v5026_v9  ;;  %v931_v22 = vmul.f32 %v5163_v32, %v5280_v16  ;;  %3555 = vpow2.f32 %v3007_v11 }
 0x188   : > { %v3072_v63 = vmul.f32 %v3048_v42, %v2280_v21  ;;  %v2822_v36 = vmul.f32 %v2798_v28, %v5233_v15  ;;  %v902_v42 = vadd.f32 %v878_v59, %v849_v47  ;;  %v769_v1 = vmul.f32 %v5109_v50, %v5274_v37  ;;  %v6094_v47 = vld [vmem:[#allocation3_spill] sm:$0xff] }
 0x189   : > { %v719_v28 = vadd.f32 %v695_v20, %v645_v35  ;;  %v5292_v21 = vmul.f32 %v3630_v27, %v5147_v7  ;;  %v984_v9 = vmul.f32 %v5187_v4, %v5169_v19  ;;  %v840_v59 = vadd.f32 %v816_v8, %v6094_v47  ;;  %v3632_v20 = vld [vmem:[#allocation2 + $0xb8] sm:$0xff]  ;;  %v5312_v27 = vld [vmem:[%s6033_s3 + $0x7] ss:$0 sm:$0xff] }
 0x18a   : > { %v3096_v0 = vadd.f32 1.0, %v3072_v63  ;;  %v2846_v51 = vadd.f32 -0.28449672, %v2822_v36  ;;  %v3631_v36 = vld [vmem:[#allocation2 + $0x4a] sm:$0xff]  ;;  %v955_v11 = vadd.f32 %v931_v22, %v902_v42  ;;  %v1037_v22 = vmul.f32 %v5312_v27, %v5174_v24  ;;  %v3634_v42 = vld [vmem:[#allocation2 + $0xb9] sm:$0xff] }
 0x18b   : > { %v5298_v13 = vmul.f32 %v3631_v36, %v5163_v32  ;;  %v5300_v35 = vadd.f32 %v769_v1, %v719_v28  ;;  %v5317_v8 = vmul.f32 %v3634_v42, %v5147_v7  ;;  %v5319_v1 = vld [vmem:[#allocation2 + $0x70] sm:$0xff]  ;;  %vm2270_vm0 = vcmp.lt.f32.partialorder %v5096_v2, 0.0 }
 0x18c   : > { %v3120_v34 = vmul.f32 %v3096_v0, %v2208_v44  ;;  %v2870_v41 = vmul.f32 %v2846_v51, %v5233_v15  ;;  %v3554_v63 = vpop.eup %3553  ;;  %v5306_v44 = vmul.f32 %v3632_v20, %v5135_v3  ;;  %v1008_v28 = vadd.f32 %v984_v9, %v955_v11  ;;  %v5328_v20 = vld [vmem:[%s6033_s3 + $0x8] ss:$0 sm:$0xff] }
 0x18d   : > { %6093 = vst [vmem:[#allocation14_spill] sm:$0xff] %v5300_v35  ;;  %v2584_v51 = vmul.f32 %v3554_v63, %v5254_v56  ;;  %v1090_v42 = vmul.f32 %v5328_v20, %v5176_v60  ;;  %v3556_v9 = vpop.eup %3555  ;;  %v2594_v11 = vand.u32 2147483648, %v5254_v56  ;;  %v2940_v55 = vsub.f32 0.0, %v5242_v38 }
 0x18e   : > { %3145 = vst.msk [vmem:[%s5012_s9 + $0x18] sm:$0xff] %vm3141_vm9, %v3120_v34  ;;  %v2894_v0 = vadd.f32 0.2548296, %v2870_v41  ;;  %v976_v34 = vmul.f32 %v5319_v1, %v5187_v4  ;;  %v893_v41 = vadd.f32 %v869_v54, %v840_v59  ;;  %v1061_v35 = vadd.f32 %v1037_v22, %v1008_v28 }
 0x18f   : > { %v2585_v47 = vsub.f32 1.0, %v2584_v51  ;;  %vm2589_vm1 = vweird.f32 %v3554_v63  ;;  %v3637_v51 = vld [vmem:[#allocation2 + $0xba] sm:$0xff]  ;;  %v1029_v22 = vmul.f32 %v5341_v58, %v5312_v27  ;;  %vm2588_vm2 = vweird.f32 %v5254_v56 }
 0x190   : > { %v2918_v36 = vmul.f32 %v2894_v0, %v5233_v15  ;;  %v5334_v54 = vadd.f32 %v922_v23, %v893_v41  ;;  %v2592_v15 = vand.u32 2147483647, %v5254_v56  ;;  %v2142_v0 = vpop.permute.xlu1 %2141  ;;  %v5338_v48 = vmul.f32 %v3637_v51, %v5163_v32  ;;  %vm2590_vm3 = vmor %vm2588_vm2, %vm2589_vm1 }
 0x191   : > { %v2586_v30 = vmul.f32 %v3554_v63, %v2585_v47  ;;  %v1114_v29 = vadd.f32 %v1090_v42, %v1061_v35  ;;  %v1000_v14 = vadd.f32 %v976_v34, %v5213_v57  ;;  %v2222_v23 = vmul.f32 0.5, %v5084_v61 }
 0x192   : > { %v3038_v59 = vmul.f32 %v3556_v9, %v2918_v36  ;;  %v6095_v36 = vmov 1.0   ;;  %v2595_v9 = vor.u32 1.1754944e-38, %v2594_v11  ;;  %v2964_v35 = vmul.f32 %v2940_v55, %v5242_v38 }
 0x193   : > { %v2587_v41 = vadd.f32 %v3554_v63, %v2586_v30  ;;  %v2294_v47 = vsel %vm2270_vm0, -1.0, %v6095_v36  ;;  %v5352_v57 = vsel %vm574_vm4, %v1114_v29, %v2142_v0  ;;  %vm2593_vm5 = vcmp.eq.f32.partialorder %v2592_v15, 8.507059e+37 }
 0x194   : > { %v3062_v28 = vsub.f32 1.0, %v3038_v59  ;;  %v5355_v61 = vmul.f32 0.70710677, %v5352_v57  ;;  %v700_v30 = vmul.f32 %v5101_v31, %v5127_v43  ;;  %v1053_v2 = vadd.f32 %v1029_v22, %v1000_v14  ;;  %v5361_v59 = vld [vmem:[#allocation2 + $0x72] sm:$0xff] }
 0x195   : > { %v2591_v42 = vsel %vm2590_vm3, %v3554_v63, %v2587_v41  ;;  %v1082_v55 = vmul.f32 %v5361_v59, %v5328_v20  ;;  %vm2268_vm6 = vcmp.lt.f32.partialorder %v5237_v39, 0.0  ;;  %v774_v43 = vmul.f32 %v5109_v50, %v5156_v12  ;;  %v806_v41 = vld [vmem:[#allocation2 + $0xd0] sm:$0xff] }
 0x196   : > { %v3086_v34 = vmul.f32 %v3062_v28, %v2294_v47  ;;  %v5359_v56 = vsel %vm2593_vm5, %v2595_v9, %v2591_v42  ;;  %v5368_v63 = vand.u32 2147483647, %v5355_v61  ;;  %v5374_v14 = vmul.f32 %v5135_v3, %v5066_v17 }
 0x197   : > { %v2724_v29 = vmul.f32 1.0614054, %v5359_v56  ;;  %v5378_v11 = vmul.f32 %v5147_v7, %v5081_v6  ;;  %v3003_v15 = vmul.f32 1.442695, %v2964_v35  ;;  %v5382_v39 = vmul.f32 %v5163_v32, %v5115_v25 }
 0x198   : > { %v3110_v38 = vadd.f32 1.0, %v3086_v34  ;;  %v2341_v22 = vmul.f32 0.3275911, %v5368_v63  ;;  %v5386_v28 = vmul.f32 0.5, %v5231_v18  ;;  %v5389_v12 = vsel %vm2268_vm6, -1.0, %v6095_v36 }
 0x199   : > { %v2748_v51 = vadd.f32 -1.4531521, %v2724_v29  ;;  %v1106_v17 = vadd.f32 %v1082_v55, %v1053_v2  ;;  %v5393_v6 = vmul.f32 %v5135_v3, %v5216_v26  ;;  %v839_v18 = vadd.f32 %v5278_v46, %v4840_v45 }
 0x19a   : > { %v3134_v0 = vmul.f32 %v3110_v38, %v2222_v23  ;;  %v859_v23 = vld [vmem:[#allocation2 + $0xd1] sm:$0xff]  ;;  %v5398_v47 = vadd.f32 1.0, %v2341_v22  ;;  %v5404_v9 = vmul.f32 %v5147_v7, %v5208_v53  ;;  %3557 = vpow2.f32 %v3003_v15  ;;  %v2126_v38 = vpop.permute.xlu2 %2125  ;;  %v6099_v15 = vld [vmem:[#allocation4_spill] sm:$0xff] }
 0x19b   : > { %v2772_v25 = vmul.f32 %v2748_v51, %v5359_v56  ;;  %v5408_v35 = vmul.f32 %v5163_v32, %v5218_v40  ;;  %v975_v34 = vmul.f32 %v5187_v4, %v5260_v62  ;;  %v650_v42 = vmul.f32 %v5089_v33, %v5123_v5 }
 0x19c   : > { %3159 = vst.msk [vmem:[%s5012_s9 + $0x88] sm:$0xff] %vm3141_vm9, %v3134_v0  ;;  %3559 = vrcp.f32 %v5398_v47  ;;  %v5416_v45 = vmul.f32 %v5135_v3, %v806_v41  ;;  %v5419_v46 = vmul.f32 %v5147_v7, %v859_v23  ;;  %v5423_v55 = vmul.f32 %v5101_v31, %v5272_v10 }
 0x19d   : > { %6096 = vst [vmem:[#allocation3_spill] sm:$0xff] %v5408_v35  ;;  %v2796_v2 = vadd.f32 1.4214138, %v2772_v25  ;;  %v892_v29 = vadd.f32 %v5292_v21, %v839_v18  ;;  %v853_v0 = vadd.f32 %v5306_v44, %v6099_v15  ;;  %v1028_v5 = vmul.f32 %v5312_v27, %v5262_v52 }
 0x19e   : > { %6097 = vst [vmem:[#allocation15_spill] sm:$0xff] %v5416_v45  ;;  %v5432_v22 = vsel %vm574_vm4, %v1106_v17, %v2126_v38  ;;  %v974_v25 = vmul.f32 %v5187_v4, %v5216_v26  ;;  %v1081_v31 = vmul.f32 %v5328_v20, %v5274_v37  ;;  %v5440_v10 = vmul.f32 %v5109_v50, %v5280_v16 }
 0x19f   : > { %6098 = vst [vmem:[#allocation16_spill] sm:$0xff] %v5419_v46  ;;  %v2820_v51 = vmul.f32 %v2796_v2, %v5359_v56  ;;  %v5443_v21 = vmul.f32 0.70710677, %v5432_v22  ;;  %v999_v44 = vadd.f32 %v975_v34, %v5334_v54  ;;  %v724_v18 = vadd.f32 %v700_v30, %v650_v42 }
 0x1a0   : > { %v945_v17 = vadd.f32 %v5298_v13, %v892_v29  ;;  %v1027_v38 = vmul.f32 %v5312_v27, %v5208_v53  ;;  %v906_v26 = vadd.f32 %v5317_v8, %v853_v0  ;;  %v3558_v15 = vpop.eup %3557  ;;  %v5452_v37 = vmul.f32 %v5135_v3, %v5169_v19 }
 0x1a1   : > { %v2844_v2 = vadd.f32 -0.28449672, %v2820_v51  ;;  %v5456_v50 = vmul.f32 %v5147_v7, %v5174_v24  ;;  %v5460_v16 = vmul.f32 %v5163_v32, %v5176_v60  ;;  %v5463_v13 = vand.u32 2147483647, %v5443_v21 }
 0x1a2   : > { %v3560_v54 = vpop.eup %3559  ;;  %v998_v8 = vadd.f32 %v974_v25, %v945_v17  ;;  %v1080_v30 = vmul.f32 %v5328_v20, %v5218_v40  ;;  %v988_v19 = vmul.f32 %v5187_v4, %v806_v41  ;;  %v5470_v34 = vmul.f32 0.5, %v5352_v57  ;;  %v2122_v41 = vpop.permute.xlu0 %2121 }
 0x1a3   : > { %v2868_v53 = vmul.f32 %v2844_v2, %v5359_v56  ;;  %v2598_v24 = vmul.f32 %v3560_v54, %v5398_v47  ;;  %v2333_v60 = vmul.f32 0.3275911, %v5463_v13  ;;  %v1052_v42 = vadd.f32 %v1028_v5, %v999_v44 }
 0x1a4   : > { %v1051_v0 = vadd.f32 %v1027_v38, %v998_v8  ;;  %v959_v51 = vadd.f32 %v5338_v48, %v906_v26  ;;  %v798_v52 = vadd.f32 %v774_v43, %v724_v18  ;;  %v2608_v25 = vand.u32 2147483648, %v5398_v47  ;;  %v5483_v48 = vld [vmem:[#allocation2 + $0xd2] sm:$0xff] }
 0x1a5   : > { %v2892_v29 = vadd.f32 0.2548296, %v2868_v53  ;;  %v2599_v2 = vsub.f32 1.0, %v2598_v24  ;;  %v2941_v40 = vsub.f32 0.0, %v5368_v63  ;;  %v5477_v17 = vadd.f32 1.0, %v2333_v60  ;;  %v2150_v24 = vpop.permute.xlu2 %2149 }
 0x1a6   : > { %v1104_v46 = vadd.f32 %v1080_v30, %v1051_v0  ;;  %v1012_v45 = vadd.f32 %v988_v19, %v959_v51  ;;  %v1041_v35 = vmul.f32 %v5312_v27, %v859_v23  ;;  %vm2603_vm7 = vweird.f32 %v3560_v54 }
 0x1a7   : > { %v2916_v57 = vmul.f32 %v2892_v29, %v5359_v56  ;;  %v2600_v5 = vmul.f32 %v3560_v54, %v2599_v2  ;;  %v2606_v44 = vand.u32 2147483647, %v5398_v47  ;;  %3561 = vrcp.f32 %v5477_v17 }
 0x1a8   : > { %v5486_v18 = vsel %vm574_vm4, %v1104_v46, %v2122_v41  ;;  %v1094_v38 = vmul.f32 %v5328_v20, %v5483_v48  ;;  %v1105_v56 = vadd.f32 %v1081_v31, %v1052_v42  ;;  %vm2269_vm8 = vcmp.lt.f32.partialorder %v5355_v61, 0.0 }
 0x1a9   : > { %v3036_v43 = vmul.f32 %v3558_v15, %v2916_v57  ;;  %v2601_v26 = vadd.f32 %v3560_v54, %v2600_v5  ;;  %vm2602_vm10 = vweird.f32 %v5398_v47  ;;  %v5493_v23 = vmul.f32 0.70710677, %v5486_v18 }
 0x1aa   : > { %vm2604_vm11 = vmor %vm2602_vm10, %vm2603_vm7  ;;  %v2609_v8 = vor.u32 1.1754944e-38, %v2608_v25  ;;  %v2965_v15 = vmul.f32 %v2941_v40, %v5368_v63  ;;  %v1065_v30 = vadd.f32 %v1041_v35, %v1012_v45  ;;  %vm2607_vm12 = vcmp.eq.f32.partialorder %v2606_v44, 8.507059e+37 }
 0x1ab   : > { %v3060_v53 = vsub.f32 1.0, %v3036_v43  ;;  %v2605_v46 = vsel %vm2604_vm11, %v3560_v54, %v2601_v26  ;;  %v2307_v19 = vand.u32 2147483647, %v5493_v23  ;;  %v851_v31 = vadd.f32 %v5374_v14, %v798_v52 }
 0x1ac   : > { %v5500_v47 = vsel %vm2269_vm8, -1.0, %v6095_v36  ;;  %v5502_v60 = vsel %vm2607_vm12, %v2609_v8, %v2605_v46  ;;  %v1118_v42 = vadd.f32 %v1094_v38, %v1065_v30  ;;  %v5508_v45 = vmul.f32 %v5319_v1, %v5135_v3 }
 0x1ad   : > { %v3084_v61 = vmul.f32 %v3060_v53, %v5389_v12  ;;  %v3562_v29 = vpop.eup %3561  ;;  %v2725_v0 = vmul.f32 1.0614054, %v5502_v60  ;;  %v2331_v63 = vmul.f32 0.3275911, %v2307_v19  ;;  %v904_v35 = vadd.f32 %v5378_v11, %v851_v31  ;;  %v2124_v11 = vpop.permute.xlu1 %2123 }
 0x1ae   : > { %v3005_v52 = vmul.f32 1.442695, %v2965_v15  ;;  %v2486_v14 = vmul.f32 %v3562_v29, %v5477_v17  ;;  %v5512_v12 = vsel %vm574_vm4, %v1118_v42, %v2150_v24  ;;  %v2933_v2 = vsub.f32 0.0, %v5463_v13 }
 0x1af   : > { %v3108_v54 = vadd.f32 1.0, %v3084_v61  ;;  %v2749_v51 = vadd.f32 -1.4531521, %v2725_v0  ;;  %v5515_v25 = vadd.f32 1.0, %v2331_v63  ;;  %v5518_v40 = vmul.f32 0.70710677, %v5512_v12 }
 0x1b0   : > { %v2487_v41 = vsub.f32 1.0, %v2486_v14  ;;  %v5522_v57 = vsel %vm574_vm4, %v1105_v56, %v2124_v11  ;;  %v957_v5 = vadd.f32 %v5382_v39, %v904_v35  ;;  %v2496_v43 = vand.u32 2147483648, %v5477_v17 }
 0x1b1   : > { %v3132_v1 = vmul.f32 %v3108_v54, %v5386_v28  ;;  %v2773_v44 = vmul.f32 %v2749_v51, %v5502_v60  ;;  %3563 = vrcp.f32 %v5515_v25  ;;  %v2931_v38 = vsub.f32 0.0, %v2307_v19 }
 0x1b2   : > { %v2488_v26 = vmul.f32 %v3562_v29, %v2487_v41  ;;  %vm2491_vm13 = vweird.f32 %v3562_v29  ;;  %v2494_v53 = vand.u32 2147483647, %v5477_v17  ;;  %v5532_v28 = vand.u32 2147483647, %v5518_v40 }
 0x1b3   : > { %3157 = vst.msk [vmem:[%s5012_s9 + $0x78] sm:$0xff] %vm3141_vm9, %v3132_v1  ;;  %v2797_v56 = vadd.f32 1.4214138, %v2773_v44  ;;  %v2957_v8 = vmul.f32 %v2933_v2, %v5463_v13  ;;  %v5536_v39 = vmul.f32 0.70710677, %v5522_v57  ;;  %v5540_v15 = vmul.f32 %v5341_v58, %v5147_v7  ;;  %v5563_v2 = vld [vmem:[#allocation2 + $0xc0] sm:$0xff] }
 0x1b4   : > { %vm2261_vm14 = vcmp.lt.f32.partialorder %v5443_v21, 0.0  ;;  %v2489_v30 = vadd.f32 %v3562_v29, %v2488_v26  ;;  %vm2490_vm15 = vweird.f32 %v5477_v17  ;;  %v2345_v46 = vmul.f32 0.3275911, %v5532_v28 }
 0x1b5   : > { %v2821_v24 = vmul.f32 %v2797_v56, %v5502_v60  ;;  %vm2492_vm0 = vmor %vm2490_vm15, %vm2491_vm13  ;;  %v2497_v31 = vor.u32 1.1754944e-38, %v2496_v43  ;;  %v2955_v61 = vmul.f32 %v2931_v38, %v2307_v19  ;;  %v5547_v13 = vand.u32 2147483647, %v5536_v39 }
 0x1b6   : > { %3565 = vpow2.f32 %v3005_v52  ;;  %v2493_v42 = vsel %vm2492_vm0, %v3562_v29, %v2489_v30  ;;  %vm2495_vm1 = vcmp.eq.f32.partialorder %v2494_v53, 8.507059e+37  ;;  %v5549_v58 = vadd.f32 1.0, %v2345_v46 }
 0x1b7   : > { %v3564_v7 = vpop.eup %3563  ;;  %v2845_v21 = vadd.f32 -0.28449672, %v2821_v24  ;;  %v5552_v0 = vsel %vm2261_vm14, -1.0, %v6095_v36  ;;  %v5554_v17 = vsel %vm2495_vm1, %v2497_v31, %v2493_v42  ;;  %v2989_v63 = vmul.f32 1.442695, %v2957_v8 }
 0x1b8   : > { %v2717_v35 = vmul.f32 1.0614054, %v5554_v17  ;;  %v2458_v19 = vmul.f32 %v3564_v7, %v5515_v25  ;;  %v2466_v54 = vand.u32 2147483647, %v5515_v25  ;;  %v2468_v52 = vand.u32 2147483648, %v5515_v25 }
 0x1b9   : > { %v2869_v29 = vmul.f32 %v2845_v21, %v5502_v60  ;;  %v2985_v14 = vmul.f32 1.442695, %v2955_v61  ;;  %3567 = vrcp.f32 %v5549_v58  ;;  %v2332_v51 = vmul.f32 0.3275911, %v5547_v13  ;;  %v5581_v61 = vld [vmem:[#allocation2 + $0xc2] sm:$0xff] }
 0x1ba   : > { %v2741_v11 = vadd.f32 -1.4531521, %v2717_v35  ;;  %v2459_v1 = vsub.f32 1.0, %v2458_v19  ;;  %v986_v41 = vmul.f32 %v5187_v4, %v5563_v2  ;;  %v651_v44 = vmul.f32 %v5089_v33, %v5256_v49  ;;  %v5579_v49 = vld [vmem:[#allocation2 + $0xc1] sm:$0xff] }
 0x1bb   : > { %v2893_v43 = vadd.f32 0.2548296, %v2869_v29  ;;  %3569 = vpow2.f32 %v2989_v63  ;;  %vm2462_vm2 = vweird.f32 %v5515_v25  ;;  %v5570_v38 = vadd.f32 1.0, %v2332_v51 }
 0x1bc   : > { %v3566_v26 = vpop.eup %3565  ;;  %v2765_v53 = vmul.f32 %v2741_v11, %v5554_v17  ;;  %v2460_v56 = vmul.f32 %v3564_v7, %v2459_v1  ;;  %vm2463_vm3 = vweird.f32 %v3564_v7  ;;  %vm5573_vm5 = vcmp.eq.f32.partialorder %v2466_v54, 8.507059e+37 }
 0x1bd   : > { %v2917_v30 = vmul.f32 %v2893_v43, %v5502_v60  ;;  %v2469_v46 = vor.u32 1.1754944e-38, %v2468_v52  ;;  %3571 = vpow2.f32 %v2985_v14  ;;  %v2945_v33 = vsub.f32 0.0, %v5532_v28  ;;  %vm2464_vm6 = vmor %vm2462_vm2, %vm2463_vm3 }
 0x1be   : > { %v2789_v24 = vadd.f32 1.4214138, %v2765_v53  ;;  %v2461_v31 = vadd.f32 %v3564_v7, %v2460_v56  ;;  %v1010_v42 = vadd.f32 %v986_v41, %v957_v5  ;;  %v1039_v21 = vmul.f32 %v5312_v27, %v5579_v49 }
 0x1bf   : > { %v3568_v63 = vpop.eup %3567  ;;  %v3037_v35 = vmul.f32 %v3566_v26, %v2917_v30  ;;  %v2662_v60 = vand.u32 2147483647, %v5549_v58  ;;  %3573 = vrcp.f32 %v5570_v38  ;;  %v1092_v19 = vmul.f32 %v5328_v20, %v5581_v61 }
 0x1c0   : > { %v2813_v54 = vmul.f32 %v2789_v24, %v5554_v17  ;;  %v2465_v52 = vsel %vm2464_vm6, %v3564_v7, %v2461_v31  ;;  %v2654_v5 = vmul.f32 %v3568_v63, %v5549_v58  ;;  %v2664_v29 = vand.u32 2147483648, %v5549_v58 }
 0x1c1   : > { %v3570_v14 = vpop.eup %3569  ;;  %v3061_v51 = vsub.f32 1.0, %v3037_v35  ;;  %v5596_v25 = vsel %vm5573_vm5, %v2469_v46, %v2465_v52  ;;  %vm2658_vm7 = vweird.f32 %v5549_v58  ;;  %vm2659_vm8 = vweird.f32 %v3568_v63  ;;  %v2146_v35 = vpop.permute.xlu0 %2145 }
 0x1c2   : > { %v2837_v11 = vadd.f32 -0.28449672, %v2813_v54  ;;  %v2715_v1 = vmul.f32 1.0614054, %v5596_v25  ;;  %v2655_v41 = vsub.f32 1.0, %v2654_v5  ;;  %v1063_v43 = vadd.f32 %v1039_v21, %v1010_v42  ;;  %vm5613_vm11 = vmor %vm2658_vm7, %vm2659_vm8 }
 0x1c3   : > { %v5600_v26 = vpop.eup %3571  ;;  %v3085_v7 = vmul.f32 %v3061_v51, %v5500_v47  ;;  %vm5603_vm10 = vcmp.eq.f32.partialorder %v2662_v60, 8.507059e+37  ;;  %v2969_v56 = vmul.f32 %v2945_v33, %v5532_v28  ;;  %v2932_v8 = vsub.f32 0.0, %v5547_v13 }
 0x1c4   : > { %v2861_v30 = vmul.f32 %v2837_v11, %v5554_v17  ;;  %v2739_v46 = vadd.f32 -1.4531521, %v2715_v1  ;;  %v2656_v24 = vmul.f32 %v3568_v63, %v2655_v41  ;;  %v2665_v31 = vor.u32 1.1754944e-38, %v2664_v29 }
 0x1c5   : > { %v3574_v54 = vpop.eup %3573  ;;  %v3109_v42 = vadd.f32 1.0, %v3085_v7  ;;  %v2480_v28 = vand.u32 2147483647, %v5570_v38  ;;  %v1116_v33 = vadd.f32 %v1092_v19, %v1063_v43  ;;  %v725_v21 = vadd.f32 %v5423_v55, %v651_v44 }
 0x1c6   : > { %v2885_v60 = vadd.f32 0.2548296, %v2861_v30  ;;  %v2763_v52 = vmul.f32 %v2739_v46, %v5596_v25  ;;  %v2657_v5 = vadd.f32 %v3568_v63, %v2656_v24  ;;  %v2472_v29 = vmul.f32 %v3574_v54, %v5570_v38 }
 0x1c7   : > { %v3133_v51 = vmul.f32 %v3109_v42, %v5470_v34  ;;  %v2482_v58 = vand.u32 2147483648, %v5570_v38  ;;  %v5624_v11 = vsel %vm574_vm4, %v1116_v33, %v2146_v35  ;;  %v799_v1 = vadd.f32 %v5440_v10, %v725_v21 }
 0x1c8   : > { %v2909_v41 = vmul.f32 %v2885_v60, %v5554_v17  ;;  %v2787_v19 = vadd.f32 1.4214138, %v2763_v52  ;;  %v2661_v55 = vsel %vm5613_vm11, %v3568_v63, %v2657_v5  ;;  %v2473_v44 = vsub.f32 1.0, %v2472_v29  ;;  %v5642_v63 = vld [vmem:[#allocation2 + $0xc8] sm:$0xff] }
 0x1c9   : > { %3158 = vst.msk [vmem:[%s5012_s9 + $0x80] sm:$0xff] %vm3141_vm9, %v3133_v51  ;;  %v5634_v43 = vsel %vm5603_vm10, %v2665_v31, %v2661_v55  ;;  %vm2477_vm12 = vweird.f32 %v3574_v54  ;;  %v5637_v34 = vmul.f32 0.70710677, %v5624_v11  ;;  %v852_v7 = vadd.f32 %v5452_v37, %v799_v1  ;;  %v5657_v5 = vld [vmem:[#allocation2 + $0xc9] sm:$0xff] }
 0x1ca   : > { %v3029_v10 = vmul.f32 %v3570_v14, %v2909_v41  ;;  %v2811_v17 = vmul.f32 %v2787_v19, %v5596_v25  ;;  %v2729_v30 = vmul.f32 1.0614054, %v5634_v43  ;;  %v2474_v46 = vmul.f32 %v3574_v54, %v2473_v44  ;;  %v5663_v1 = vld [vmem:[#allocation2 + $0xca] sm:$0xff] }
 0x1cb   : > { %vm2476_vm13 = vweird.f32 %v5570_v38  ;;  %v5646_v53 = vand.u32 2147483647, %v5637_v34  ;;  %v905_v24 = vadd.f32 %v5456_v50, %v852_v7  ;;  %v987_v31 = vmul.f32 %v5187_v4, %v5642_v63 }
 0x1cc   : > { %v3053_v35 = vsub.f32 1.0, %v3029_v10  ;;  %v2835_v37 = vadd.f32 -0.28449672, %v2811_v17  ;;  %v2753_v14 = vadd.f32 -1.4531521, %v2729_v30  ;;  %v2475_v42 = vadd.f32 %v3574_v54, %v2474_v46  ;;  %vm2478_vm14 = vmor %vm2476_vm13, %vm2477_vm12  ;;  %v6106_v30 = vld [vmem:[#allocation8_spill] sm:$0xff] }
 0x1cd   : > { %vm2481_vm15 = vcmp.eq.f32.partialorder %v2480_v28, 8.507059e+37  ;;  %v2483_v47 = vor.u32 1.1754944e-38, %v2482_v58  ;;  %v2343_v33 = vmul.f32 0.3275911, %v5646_v53  ;;  %v958_v38 = vadd.f32 %v5460_v16, %v905_v24 }
 0x1ce   : > { %v3077_v21 = vmul.f32 %v3053_v35, %v5552_v0  ;;  %v2859_v60 = vmul.f32 %v2835_v37, %v5596_v25  ;;  %v2777_v50 = vmul.f32 %v2753_v14, %v5634_v43  ;;  %v2479_v52 = vsel %vm2478_vm14, %v3574_v54, %v2475_v42 }
 0x1cf   : > { %v5659_v29 = vsel %vm2481_vm15, %v2483_v47, %v2479_v52  ;;  %v5661_v51 = vadd.f32 1.0, %v2343_v33  ;;  %v1011_v28 = vadd.f32 %v987_v31, %v958_v38  ;;  %v1040_v58 = vmul.f32 %v5312_v27, %v5657_v5 }
 0x1d0   : > { %v2213_v16 = vmul.f32 0.5, %v5432_v22  ;;  %v3101_v0 = vadd.f32 1.0, %v3077_v21  ;;  %v2883_v41 = vadd.f32 0.2548296, %v2859_v60  ;;  %v2801_v19 = vadd.f32 1.4214138, %v2777_v50 }
 0x1d1   : > { %v3013_v55 = vmul.f32 1.442695, %v2969_v56  ;;  %v2716_v54 = vmul.f32 1.0614054, %v5659_v29  ;;  %3575 = vrcp.f32 %v5661_v51  ;;  %v1093_v44 = vmul.f32 %v5328_v20, %v5663_v1 }
 0x1d2   : > { %v3125_v7 = vmul.f32 %v3101_v0, %v2213_v16  ;;  %v2907_v10 = vmul.f32 %v2883_v41, %v5596_v25  ;;  %v2825_v17 = vmul.f32 %v2801_v19, %v5634_v43  ;;  %v844_v22 = vadd.f32 %v5508_v45, %v6106_v30 }
 0x1d3   : > { %vm2259_vm0 = vcmp.lt.f32.partialorder %v5493_v23, 0.0  ;;  %v2740_v46 = vadd.f32 -1.4531521, %v2716_v54  ;;  %v2956_v56 = vmul.f32 %v2932_v8, %v5547_v13  ;;  %v1064_v24 = vadd.f32 %v1040_v58, %v1011_v28  ;;  %v2148_v23 = vpop.permute.xlu1 %2147 }
 0x1d4   : > { %3150 = vst.msk [vmem:[%s5012_s9 + $0x40] sm:$0xff] %vm3141_vm9, %v3125_v7  ;;  %v3027_v31 = vmul.f32 %v5600_v26, %v2907_v10  ;;  %v5685_v25 = vmul.f32 %v5163_v32, %v5483_v48  ;;  %v2849_v35 = vadd.f32 -0.28449672, %v2825_v17  ;;  %v5689_v45 = vmul.f32 %v5135_v3, %v5260_v62  ;;  %v6107_v62 = vld [vmem:[#allocation9_spill] sm:$0xff]  ;;  %v6108_v17 = vld [vmem:[#allocation3_spill] sm:$0xff] }
 0x1d5   : > { %3577 = vpow2.f32 %v3013_v55  ;;  %v2764_v37 = vmul.f32 %v2740_v46, %v5659_v29  ;;  %v1117_v14 = vadd.f32 %v1093_v44, %v1064_v24  ;;  %v926_v13 = vmul.f32 %v5361_v59, %v5163_v32 }
 0x1d6   : > { %v2283_v8 = vsel %vm2259_vm0, -1.0, %v6095_v36  ;;  %v3051_v26 = vsub.f32 1.0, %v3027_v31  ;;  %v2873_v42 = vmul.f32 %v2849_v35, %v5634_v43  ;;  %v897_v48 = vadd.f32 %v5540_v15, %v844_v22  ;;  %v3640_v35 = vld [vmem:[#allocation2 + $0x88] sm:$0xff] }
 0x1d7   : > { %v3576_v47 = vpop.eup %3575  ;;  %v2788_v33 = vadd.f32 1.4214138, %v2764_v37  ;;  %v2987_v38 = vmul.f32 1.442695, %v2956_v56  ;;  %v5698_v3 = vsel %vm574_vm4, %v1117_v14, %v2148_v23  ;;  %v842_v21 = vadd.f32 %v5393_v6, %v6107_v62 }
 0x1d8   : > { %v2211_v60 = vmul.f32 0.5, %v5486_v18  ;;  %v3075_v50 = vmul.f32 %v3051_v26, %v2283_v8  ;;  %v2897_v32 = vadd.f32 0.2548296, %v2873_v42  ;;  %v2626_v59 = vmul.f32 %v3576_v47, %v5661_v51  ;;  %v6109_v8 = vld [vmem:[#allocation10_spill] sm:$0xff]  ;;  %v6110_v26 = vld [vmem:[#allocation15_spill] sm:$0xff] }
 0x1d9   : > { %vm2273_vm1 = vcmp.lt.f32.partialorder %v5518_v40, 0.0  ;;  %v2812_v52 = vmul.f32 %v2788_v33, %v5659_v29  ;;  %v2636_v15 = vand.u32 2147483648, %v5661_v51  ;;  %v5708_v28 = vmul.f32 0.70710677, %v5698_v3 }
 0x1da   : > { %v3099_v58 = vadd.f32 1.0, %v3075_v50  ;;  %v2921_v16 = vmul.f32 %v2897_v32, %v5634_v43  ;;  %v2627_v6 = vsub.f32 1.0, %v2626_v59  ;;  %v895_v18 = vadd.f32 %v5404_v9, %v842_v21 }
 0x1db   : > { %v3578_v0 = vpop.eup %3577  ;;  %v2836_v41 = vadd.f32 -0.28449672, %v2812_v52  ;;  %3579 = vpow2.f32 %v2987_v38  ;;  %v2634_v19 = vand.u32 2147483647, %v5661_v51  ;;  %v5714_v55 = vand.u32 2147483647, %v5708_v28 }
 0x1dc   : > { %v3123_v54 = vmul.f32 %v3099_v58, %v2211_v60  ;;  %v3041_v44 = vmul.f32 %v3578_v0, %v2921_v16  ;;  %v2628_v7 = vmul.f32 %v3576_v47, %v2627_v6  ;;  %vm2631_vm2 = vweird.f32 %v3576_v47  ;;  %v3641_v60 = vld [vmem:[#allocation2 + $0x89] sm:$0xff]  ;;  %v5745_v52 = vld [vmem:[%s6033_s3 + $0x4] ss:$0 sm:$0xff]  ;;  %v5758_v0 = vld [vmem:[%s6033_s3 + $0x5] ss:$0 sm:$0xff] }
 0x1dd   : > { %v2297_v43 = vsel %vm2273_vm1, -1.0, %v6095_v36  ;;  %v2860_v10 = vmul.f32 %v2836_v41, %v5659_v29  ;;  %v2344_v9 = vmul.f32 0.3275911, %v5714_v55  ;;  %v5722_v30 = vadd.f32 %v6108_v17, %v895_v18  ;;  %v6113_v41 = vld [vmem:[#allocation13_spill] sm:$0xff] }
 0x1de   : > { %3148 = vst.msk [vmem:[%s5012_s9 + $0x30] sm:$0xff] %vm3141_vm9, %v3123_v54  ;;  %v3065_v22 = vsub.f32 1.0, %v3041_v44  ;;  %v2629_v46 = vadd.f32 %v3576_v47, %v2628_v7  ;;  %vm2630_vm3 = vweird.f32 %v5661_v51  ;;  %v2637_v56 = vor.u32 1.1754944e-38, %v2636_v15 }
 0x1df   : > { %v2884_v24 = vadd.f32 0.2548296, %v2860_v10  ;;  %vm2632_vm5 = vmor %vm2630_vm3, %vm2631_vm2  ;;  %v5727_v31 = vadd.f32 1.0, %v2344_v9  ;;  %v950_v40 = vadd.f32 %v926_v13, %v897_v48  ;;  %v979_v23 = vmul.f32 %v3640_v35, %v5187_v4  ;;  %v3644_v9 = vld [vmem:[#allocation2 + $0x8a] sm:$0xff] }
 0x1e0   : > { %v3089_v37 = vmul.f32 %v3065_v22, %v2297_v43  ;;  %v2633_v14 = vsel %vm2632_vm5, %v3576_v47, %v2629_v46  ;;  %vm2635_vm6 = vcmp.eq.f32.partialorder %v2634_v19, 8.507059e+37  ;;  %v856_v42 = vadd.f32 %v6110_v26, %v6109_v8  ;;  %v2132_v8 = vpop.permute.xlu2 %2131 }
 0x1e1   : > { %v3580_v33 = vpop.eup %3579  ;;  %v2908_v38 = vmul.f32 %v2884_v24, %v5659_v29  ;;  %v5733_v62 = vsel %vm2635_vm6, %v2637_v56, %v2633_v14  ;;  %v2943_v51 = vsub.f32 0.0, %v5646_v53  ;;  %3581 = vrcp.f32 %v5727_v31  ;;  %v6111_v29 = vld [vmem:[#allocation16_spill] sm:$0xff] }
 0x1e2   : > { %v2225_v13 = vmul.f32 0.5, %v5512_v12  ;;  %v3113_v48 = vadd.f32 1.0, %v3089_v37  ;;  %vm2260_vm7 = vcmp.lt.f32.partialorder %v5536_v39, 0.0  ;;  %v2727_v4 = vmul.f32 1.0614054, %v5733_v62  ;;  %v6112_v12 = vld [vmem:[#allocation12_spill] sm:$0xff] }
 0x1e3   : > { %v3028_v47 = vmul.f32 %v3580_v33, %v2908_v38  ;;  %v1003_v21 = vadd.f32 %v979_v23, %v950_v40  ;;  %v1032_v50 = vmul.f32 %v3641_v60, %v5312_v27  ;;  %v909_v32 = vadd.f32 %v6111_v29, %v856_v42  ;;  %v5789_v60 = vld [vmem:[%s6033_s3 + $0x3] ss:$0 sm:$0xff] }
 0x1e4   : > { %v3137_v59 = vmul.f32 %v3113_v48, %v2225_v13  ;;  %v872_v15 = vmul.f32 %v5745_v52, %v6112_v12  ;;  %v2751_v58 = vadd.f32 -1.4531521, %v2727_v4  ;;  %v2967_v6 = vmul.f32 %v2943_v51, %v5646_v53  ;;  %v6114_v53 = vld [vmem:[#allocation5_spill] sm:$0xff] }
 0x1e5   : > { %v3052_v16 = vsub.f32 1.0, %v3028_v47  ;;  %v5751_v18 = vadd.f32 %v5685_v25, %v909_v32  ;;  %v925_v19 = vmul.f32 %v5758_v0, %v6113_v41  ;;  %v2284_v54 = vsel %vm2260_vm7, -1.0, %v6095_v36 }
 0x1e6   : > { %3162 = vst.msk [vmem:[%s5012_s9 + $0xa0] sm:$0xff] %vm3141_vm9, %v3137_v59  ;;  %v2775_v44 = vmul.f32 %v2751_v58, %v5733_v62  ;;  %v843_v25 = vadd.f32 %v5689_v45, %v6114_v53  ;;  %v1056_v10 = vadd.f32 %v1032_v50, %v1003_v21  ;;  %v1085_v17 = vmul.f32 %v3644_v9, %v5328_v20  ;;  %v6115_v53 = vld [vmem:[#allocation6_spill] sm:$0xff] }
 0x1e7   : > { %v3582_v7 = vpop.eup %3581  ;;  %v3076_v43 = vmul.f32 %v3052_v16, %v2284_v54  ;;  %v2212_v24 = vmul.f32 0.5, %v5522_v57  ;;  %v3009_v40 = vmul.f32 1.442695, %v2967_v6  ;;  %v2650_v14 = vand.u32 2147483648, %v5727_v31  ;;  %v5806_v54 = vld [vmem:[%s6033_s3 + $0x6] ss:$0 sm:$0xff] }
 0x1e8   : > { %v2799_v22 = vadd.f32 1.4214138, %v2775_v44  ;;  %v2640_v46 = vmul.f32 %v3582_v7, %v5727_v31  ;;  %v896_v56 = vadd.f32 %v872_v15, %v843_v25  ;;  %v1109_v26 = vadd.f32 %v1085_v17, %v1056_v10 }
 0x1e9   : > { %v3100_v39 = vadd.f32 1.0, %v3076_v43  ;;  %vm2645_vm8 = vweird.f32 %v3582_v7  ;;  %v2648_v38 = vand.u32 2147483647, %v5727_v31  ;;  %3583 = vpow2.f32 %v3009_v40 }
 0x1ea   : > { %v2823_v35 = vmul.f32 %v2799_v22, %v5733_v62  ;;  %v2641_v23 = vsub.f32 1.0, %v2640_v46  ;;  %v5772_v37 = vadd.f32 %v925_v19, %v896_v56  ;;  %vm2644_vm10 = vweird.f32 %v5727_v31  ;;  %v5817_v22 = vld [vmem:[#allocation2 + $0x79] sm:$0xff] }
 0x1eb   : > { %v3124_v45 = vmul.f32 %v3100_v39, %v2212_v24  ;;  %v5781_v13 = vsel %vm574_vm4, %v1109_v26, %v2132_v8  ;;  %vm2646_vm11 = vmor %vm2644_vm10, %vm2645_vm8  ;;  %v2651_v48 = vor.u32 1.1754944e-38, %v2650_v14  ;;  %vm2649_vm12 = vcmp.eq.f32.partialorder %v2648_v38, 8.507059e+37  ;;  %v5824_v8 = vld [vmem:[#allocation2 + $0x7a] sm:$0xff]  ;;  %v2128_v38 = vpop.permute.xlu0 %2127 }
 0x1ec   : > { %v2847_v42 = vadd.f32 -0.28449672, %v2823_v35  ;;  %v2642_v33 = vmul.f32 %v3582_v7, %v2641_v23  ;;  %v5784_v4 = vmul.f32 0.70710677, %v5781_v13  ;;  %v830_v50 = vmul.f32 %v5789_v60, %v5563_v2 }
 0x1ed   : > { %3149 = vst.msk [vmem:[%s5012_s9 + $0x38] sm:$0xff] %vm3141_vm9, %v3124_v45  ;;  %v2944_v29 = vsub.f32 0.0, %v5714_v55  ;;  %v883_v16 = vmul.f32 %v5745_v52, %v5579_v49  ;;  %vm2271_vm13 = vcmp.lt.f32.partialorder %v5637_v34, 0.0  ;;  %v936_v34 = vmul.f32 %v5758_v0, %v5581_v61 }
 0x1ee   : > { %v2871_v57 = vmul.f32 %v2847_v42, %v5733_v62  ;;  %v2643_v51 = vadd.f32 %v3582_v7, %v2642_v33  ;;  %v5795_v32 = vand.u32 2147483647, %v5784_v4  ;;  %v854_v25 = vadd.f32 %v830_v50, %v6115_v53 }
 0x1ef   : > { %v3584_v15 = vpop.eup %3583  ;;  %v2968_v2 = vmul.f32 %v2944_v29, %v5714_v55  ;;  %v2295_v55 = vsel %vm2271_vm13, -1.0, %v6095_v36  ;;  %v1030_v46 = vmul.f32 %v5817_v22, %v5312_v27  ;;  %v2223_v24 = vmul.f32 0.5, %v5624_v11 }
 0x1f0   : > { %v2895_v47 = vadd.f32 0.2548296, %v2871_v57  ;;  %v2647_v21 = vsel %vm2646_vm11, %v3582_v7, %v2643_v51  ;;  %v2336_v58 = vmul.f32 0.3275911, %v5795_v32  ;;  %v907_v56 = vadd.f32 %v883_v16, %v854_v25 }
 0x1f1   : > { %v2652_v31 = vsel %vm2649_vm12, %v2651_v48, %v2647_v21  ;;  %v3011_v9 = vmul.f32 1.442695, %v2968_v2  ;;  %vm2272_vm15 = vcmp.lt.f32.partialorder %v5708_v28, 0.0  ;;  %v2936_v28 = vsub.f32 0.0, %v5795_v32 }
 0x1f2   : > { %v2919_v59 = vmul.f32 %v2895_v47, %v5733_v62  ;;  %v2728_v12 = vmul.f32 1.0614054, %v2652_v31  ;;  %v2360_v19 = vadd.f32 1.0, %v2336_v58  ;;  %v5808_v62 = vld [vmem:[#allocation2 + $0x78] sm:$0xff]  ;;  %v5822_v61 = vadd.f32 %v936_v34, %v907_v56  ;;  %v1018_v56 = vld [vmem:[#allocation2 + $0xe9] sm:$0xff] }
 0x1f3   : > { %v977_v44 = vmul.f32 %v5808_v62, %v5806_v54  ;;  %vm2264_vm5 = vcmp.lt.f32.partialorder %v5784_v4, 0.0 }
 0x1f4   : > { %v3039_v6 = vmul.f32 %v3584_v15, %v2919_v59  ;;  %v2752_v41 = vadd.f32 -1.4531521, %v2728_v12  ;;  %3585 = vrcp.f32 %v2360_v19  ;;  %v2538_v33 = vand.u32 2147483648, %v2360_v19 }
 0x1f5   : > { %v1001_v17 = vadd.f32 %v977_v44, %v5722_v30  ;;  %3587 = vpow2.f32 %v3011_v9  ;;  %v1083_v30 = vmul.f32 %v5824_v8, %v5328_v20  ;;  %v2536_v47 = vand.u32 2147483647, %v2360_v19 }
 0x1f6   : > { %v3063_v49 = vsub.f32 1.0, %v3039_v6  ;;  %v2776_v7 = vmul.f32 %v2752_v41, %v2652_v31  ;;  %vm2532_vm0 = vweird.f32 %v2360_v19  ;;  %v2539_v59 = vor.u32 1.1754944e-38, %v2538_v33 }
 0x1f7   : > { %v1054_v14 = vadd.f32 %v1030_v46, %v1001_v17  ;;  %vm2537_vm2 = vcmp.eq.f32.partialorder %v2536_v47, 8.507059e+37  ;;  %v2224_v44 = vmul.f32 0.5, %v5698_v3  ;;  %v937_v47 = vmul.f32 %v5758_v0, %v5663_v1 }
 0x1f8   : > { %v3087_v43 = vmul.f32 %v3063_v49, %v2295_v55  ;;  %v2800_v10 = vadd.f32 1.4214138, %v2776_v7  ;;  %v2960_v49 = vmul.f32 %v2936_v28, %v5795_v32  ;;  %v5852_v32 = vld [vmem:[%s6033_s3 + $0x7] ss:$0 sm:$0xff]  ;;  %v821_v1 = vmul.f32 %v5808_v62, %v5789_v60  ;;  %v6116_v28 = vld [vmem:[#allocation7_spill] sm:$0xff] }
 0x1f9   : > { %v1107_v57 = vadd.f32 %v1083_v30, %v1054_v14  ;;  %v2288_v4 = vsel %vm2264_vm5, -1.0, %v6095_v36 }
 0x1fa   : > { %v3111_v39 = vadd.f32 1.0, %v3087_v43  ;;  %v2824_v40 = vmul.f32 %v2800_v10, %v2652_v31  ;;  %v3586_v45 = vpop.eup %3585  ;;  %v965_v43 = vld [vmem:[#allocation2 + $0xe8] sm:$0xff]  ;;  %v2995_v9 = vmul.f32 1.442695, %v2960_v49 }
 0x1fb   : > { %v2528_v26 = vmul.f32 %v3586_v45, %v2360_v19  ;;  %vm2533_vm14 = vweird.f32 %v3586_v45  ;;  %v3588_v21 = vpop.eup %3587  ;;  %v5832_v20 = vsel %vm574_vm4, %v1107_v57, %v2128_v38  ;;  %v991_v17 = vmul.f32 %v5806_v54, %v965_v43 }
 0x1fc   : > { %v3135_v35 = vmul.f32 %v3111_v39, %v2223_v24  ;;  %v2848_v23 = vadd.f32 -0.28449672, %v2824_v40  ;;  %vm2534_vm1 = vmor %vm2532_vm0, %vm2533_vm14  ;;  %v5835_v12 = vmul.f32 0.70710677, %v5832_v20  ;;  %v1044_v40 = vmul.f32 %v5852_v32, %v1018_v56 }
 0x1fd   : > { %v2529_v11 = vsub.f32 1.0, %v2528_v26  ;;  %v1015_v24 = vadd.f32 %v991_v17, %v5751_v18  ;;  %v831_v26 = vmul.f32 %v5789_v60, %v5642_v63  ;;  %v884_v18 = vmul.f32 %v5745_v52, %v5657_v5 }
 0x1fe   : > { %3160 = vst.msk [vmem:[%s5012_s9 + $0x90] sm:$0xff] %vm3141_vm9, %v3135_v35  ;;  %v2872_v27 = vmul.f32 %v2848_v23, %v2652_v31  ;;  %v5840_v6 = vand.u32 2147483647, %v5835_v12  ;;  %vm2262_vm11 = vcmp.lt.f32.partialorder %v5835_v12, 0.0 }
 0x1ff   : > { %v2530_v48 = vmul.f32 %v3586_v45, %v2529_v11  ;;  %v1068_v14 = vadd.f32 %v1044_v40, %v1015_v24  ;;  %v5862_v11 = vld [vmem:[%s6033_s3 + $0x8] ss:$0 sm:$0xff] }
 0x200   : > { %v2896_v42 = vadd.f32 0.2548296, %v2872_v27  ;;  %v2334_v19 = vmul.f32 0.3275911, %v5840_v6  ;;  %v3654_v24 = vld [vmem:[#allocation2 + $0x82] sm:$0xff] }
 0x201   : > { %v2531_v29 = vadd.f32 %v3586_v45, %v2530_v48 }
 0x202   : > { %v2920_v51 = vmul.f32 %v2896_v42, %v2652_v31  ;;  %v2296_v31 = vsel %vm2272_vm15, -1.0, %v6095_v36  ;;  %v2358_v7 = vadd.f32 1.0, %v2334_v19 }
 0x203   : > { %v2535_v58 = vsel %vm2534_vm1, %v3586_v45, %v2531_v29  ;;  %v1071_v45 = vld [vmem:[#allocation2 + $0xea] sm:$0xff] }
 0x204   : > { %v3040_v50 = vmul.f32 %v3588_v21, %v2920_v51  ;;  %v2540_v16 = vsel %vm2537_vm2, %v2539_v59, %v2535_v58  ;;  %3589 = vrcp.f32 %v2358_v7  ;;  %v2510_v42 = vand.u32 2147483648, %v2358_v7  ;;  %v3652_v21 = vld [vmem:[#allocation2 + $0x80] sm:$0xff]  ;;  %v2156_v58 = vpop.permute.xlu2 %2155 }
 0x205   : > { %v2720_v2 = vmul.f32 1.0614054, %v2540_v16  ;;  %3591 = vpow2.f32 %v2995_v9  ;;  %v1097_v33 = vmul.f32 %v5862_v11, %v1071_v45  ;;  %v2508_v51 = vand.u32 2147483647, %v2358_v7 }
 0x206   : > { %v3064_v15 = vsub.f32 1.0, %v3040_v50  ;;  %v978_v5 = vmul.f32 %v3652_v21, %v5806_v54  ;;  %v3653_v50 = vld [vmem:[#allocation2 + $0x81] sm:$0xff]  ;;  %vm2504_vm6 = vweird.f32 %v2358_v7 }
 0x207   : > { %v2744_v25 = vadd.f32 -1.4531521, %v2720_v2  ;;  %v1121_v63 = vadd.f32 %v1097_v33, %v1068_v14  ;;  %v1031_v29 = vmul.f32 %v3653_v50, %v5852_v32  ;;  %vm2509_vm8 = vcmp.eq.f32.partialorder %v2508_v51, 8.507059e+37  ;;  %v2130_v33 = vpop.permute.xlu1 %2129 }
 0x208   : > { %v3088_v41 = vmul.f32 %v3064_v15, %v2296_v31  ;;  %v2511_v31 = vor.u32 1.1754944e-38, %v2510_v42  ;;  %v1002_v62 = vadd.f32 %v978_v5, %v5772_v37  ;;  %v822_v42 = vmul.f32 %v3652_v21, %v5789_v60 }
 0x209   : > { %v2768_v55 = vmul.f32 %v2744_v25, %v2540_v16  ;;  %v2934_v25 = vsub.f32 0.0, %v5840_v6 }
 0x20a   : > { %v3112_v53 = vadd.f32 1.0, %v3088_v41  ;;  %v3590_v39 = vpop.eup %3589  ;;  %v855_v41 = vadd.f32 %v831_v26, %v6116_v28  ;;  %v1055_v14 = vadd.f32 %v1031_v29, %v1002_v62  ;;  %v3657_v62 = vld [vmem:[#allocation2 + $0x92] sm:$0xff] }
 0x20b   : > { %v2792_v10 = vadd.f32 1.4214138, %v2768_v55  ;;  %v2500_v23 = vmul.f32 %v3590_v39, %v2358_v7  ;;  %vm2505_vm3 = vweird.f32 %v3590_v39  ;;  %v3592_v48 = vpop.eup %3591  ;;  %v2958_v56 = vmul.f32 %v2934_v25, %v5840_v6 }
 0x20c   : > { %v3136_v34 = vmul.f32 %v3112_v53, %v2224_v44  ;;  %vm2506_vm7 = vmor %vm2504_vm6, %vm2505_vm3  ;;  %v908_v49 = vadd.f32 %v884_v18, %v855_v41  ;;  %v927_v6 = vmul.f32 %v5824_v8, %v5758_v0  ;;  %v6118_v8 = vld [vmem:[#allocation14_spill] sm:$0xff]  ;;  %v928_v41 = vmul.f32 %v3654_v24, %v5758_v0  ;;  %v3658_v0 = vld [vmem:[#allocation2 + $0x98] sm:$0xff] }
 0x20d   : > { %v2816_v46 = vmul.f32 %v2792_v10, %v2540_v16  ;;  %v2501_v27 = vsub.f32 1.0, %v2500_v23  ;;  %v2216_v10 = vmul.f32 0.5, %v5781_v13  ;;  %v846_v29 = vadd.f32 %v822_v42, %v6118_v8 }
 0x20e   : > { %3161 = vst.msk [vmem:[%s5012_s9 + $0x98] sm:$0xff] %vm3141_vm9, %v3136_v34  ;;  %v5885_v43 = vadd.f32 %v937_v47, %v908_v49 }
 0x20f   : > { %v2840_v3 = vadd.f32 -0.28449672, %v2816_v46  ;;  %v2502_v57 = vmul.f32 %v3590_v39, %v2501_v27 }
 0x211   : > { %v2864_v35 = vmul.f32 %v2840_v3, %v2540_v16  ;;  %v2503_v15 = vadd.f32 %v3590_v39, %v2502_v57  ;;  %v1084_v3 = vmul.f32 %v3654_v24, %v5862_v11 }
 0x213   : > { %v2888_v30 = vadd.f32 0.2548296, %v2864_v35  ;;  %v2507_v19 = vsel %vm2506_vm7, %v3590_v39, %v2503_v15  ;;  %v6117_v39 = vld [vmem:[#allocation11_spill] sm:$0xff]  ;;  %v874_v35 = vmul.f32 %v5817_v22, %v5745_v52  ;;  %v1108_v18 = vadd.f32 %v1084_v3, %v1055_v14 }
 0x214   : > { %v2512_v53 = vsel %vm2509_vm8, %v2511_v31, %v2507_v19  ;;  %v845_v40 = vadd.f32 %v821_v1, %v6117_v39  ;;  %v3656_v1 = vld [vmem:[#allocation2 + $0x91] sm:$0xff]  ;;  %v2286_v3 = vsel %vm2262_vm11, -1.0, %v6095_v36 }
 0x215   : > { %v2912_v38 = vmul.f32 %v2888_v30, %v2540_v16  ;;  %v5871_v16 = vsel %vm574_vm4, %v1121_v63, %v2156_v58  ;;  %v2718_v34 = vmul.f32 1.0614054, %v2512_v53  ;;  %v2991_v30 = vmul.f32 1.442695, %v2958_v56 }
 0x216   : > { %v5877_v44 = vmul.f32 0.70710677, %v5871_v16  ;;  %v898_v27 = vadd.f32 %v874_v35, %v845_v40  ;;  %v5900_v22 = vsel %vm574_vm4, %v1108_v18, %v2130_v33  ;;  %v1033_v28 = vmul.f32 %v3656_v1, %v5852_v32 }
 0x217   : > { %v3032_v59 = vmul.f32 %v3592_v48, %v2912_v38  ;;  %v2742_v17 = vadd.f32 -1.4531521, %v2718_v34  ;;  %v5903_v57 = vmul.f32 0.70710677, %v5900_v22  ;;  %v3655_v48 = vld [vmem:[#allocation2 + $0x90] sm:$0xff] }
 0x218   : > { %v5882_v55 = vand.u32 2147483647, %v5877_v44  ;;  %v951_v51 = vadd.f32 %v927_v6, %v898_v27  ;;  %v980_v47 = vmul.f32 %v3655_v48, %v5806_v54  ;;  %vm2276_vm3 = vcmp.lt.f32.partialorder %v5877_v44, 0.0 }
 0x219   : > { %v3056_v2 = vsub.f32 1.0, %v3032_v59  ;;  %v2766_v37 = vmul.f32 %v2742_v17, %v2512_v53  ;;  %v875_v59 = vmul.f32 %v3653_v50, %v5745_v52  ;;  %v5909_v15 = vand.u32 2147483647, %v5903_v57 }
 0x21a   : > { %v2348_v46 = vmul.f32 0.3275911, %v5882_v55  ;;  %v1004_v31 = vadd.f32 %v980_v47, %v951_v51  ;;  %v2948_v35 = vsub.f32 0.0, %v5882_v55  ;;  %v2228_v44 = vmul.f32 0.5, %v5871_v16 }
 0x21b   : > { %v3080_v7 = vmul.f32 %v3056_v2, %v2288_v4  ;;  %v2790_v13 = vadd.f32 1.4214138, %v2766_v37  ;;  %v2335_v4 = vmul.f32 0.3275911, %v5909_v15  ;;  %v899_v25 = vadd.f32 %v875_v59, %v846_v29 }
 0x21c   : > { %v2372_v45 = vadd.f32 1.0, %v2348_v46  ;;  %v1057_v17 = vadd.f32 %v1033_v28, %v1004_v31  ;;  %v2972_v33 = vmul.f32 %v2948_v35, %v5882_v55 }
 0x21d   : > { %v3104_v9 = vadd.f32 1.0, %v3080_v7  ;;  %v2814_v26 = vmul.f32 %v2790_v13, %v2512_v53  ;;  %v2359_v34 = vadd.f32 1.0, %v2335_v4  ;;  %v952_v24 = vadd.f32 %v928_v41, %v899_v25 }
 0x21e   : > { %3593 = vrcp.f32 %v2372_v45  ;;  %v2706_v19 = vand.u32 2147483648, %v2372_v45  ;;  %v2704_v52 = vand.u32 2147483647, %v2372_v45  ;;  %vm2700_vm12 = vweird.f32 %v2372_v45 }
 0x21f   : > { %v3128_v23 = vmul.f32 %v3104_v9, %v2216_v10  ;;  %v2838_v38 = vadd.f32 -0.28449672, %v2814_v26  ;;  %3595 = vpow2.f32 %v2991_v30  ;;  %v1086_v10 = vmul.f32 %v3657_v62, %v5862_v11  ;;  %v3659_v30 = vld [vmem:[#allocation2 + $0x99] sm:$0xff]  ;;  %v2134_v26 = vpop.permute.xlu0 %2133 }
 0x220   : > { %v2707_v56 = vor.u32 1.1754944e-38, %v2706_v19  ;;  %3597 = vrcp.f32 %v2359_v34  ;;  %vm2705_vm14 = vcmp.eq.f32.partialorder %v2704_v52, 8.507059e+37  ;;  %v1034_v27 = vmul.f32 %v3659_v30, %v5852_v32  ;;  %v2136_v19 = vpop.permute.xlu1 %2135 }
 0x221   : > { %3153 = vst.msk [vmem:[%s5012_s9 + $0x58] sm:$0xff] %vm3141_vm9, %v3128_v23  ;;  %v2862_v5 = vmul.f32 %v2838_v38, %v2512_v53  ;;  %v1110_v37 = vadd.f32 %v1086_v10, %v1057_v17  ;;  %v3019_v59 = vmul.f32 1.442695, %v2972_v33  ;;  %v2522_v31 = vand.u32 2147483647, %v2359_v34 }
 0x222   : > { %vm2518_vm0 = vweird.f32 %v2359_v34  ;;  %v2935_v10 = vsub.f32 0.0, %v5909_v15 }
 0x223   : > { %v2886_v21 = vadd.f32 0.2548296, %v2862_v5  ;;  %v5923_v38 = vsel %vm574_vm4, %v1110_v37, %v2134_v26  ;;  %3599 = vpow2.f32 %v3019_v59  ;;  %vm2523_vm2 = vcmp.eq.f32.partialorder %v2522_v31, 8.507059e+37  ;;  %v1016_v26 = vld [vmem:[#allocation2 + $0xd9] sm:$0xff] }
 0x224   : > { %v3594_v63 = vpop.eup %3593  ;;  %v1069_v59 = vld [vmem:[#allocation2 + $0xda] sm:$0xff] }
 0x225   : > { %v2696_v60 = vmul.f32 %v3594_v63, %v2372_v45  ;;  %v2910_v2 = vmul.f32 %v2886_v21, %v2512_v53  ;;  %v3596_v49 = vpop.eup %3595  ;;  %vm2701_vm10 = vweird.f32 %v3594_v63  ;;  %v981_v53 = vmul.f32 %v3658_v0, %v5806_v54 }
 0x226   : > { %vm2702_vm13 = vmor %vm2700_vm12, %vm2701_vm10  ;;  %v2214_v45 = vmul.f32 0.5, %v5832_v20  ;;  %v3598_v18 = vpop.eup %3597  ;;  %v5928_v20 = vmul.f32 0.70710677, %v5923_v38  ;;  %vm2263_vm10 = vcmp.lt.f32.partialorder %v5903_v57, 0.0 }
 0x227   : > { %v2697_v58 = vsub.f32 1.0, %v2696_v60  ;;  %v3030_v50 = vmul.f32 %v3596_v49, %v2910_v2  ;;  %v1005_v13 = vadd.f32 %v981_v53, %v952_v24  ;;  %v2514_v48 = vmul.f32 %v3598_v18, %v2359_v34 }
 0x228   : > { %v2524_v60 = vand.u32 2147483648, %v2359_v34  ;;  %v5932_v55 = vand.u32 2147483647, %v5928_v20  ;;  %vm2519_vm15 = vweird.f32 %v3598_v18  ;;  %v2959_v24 = vmul.f32 %v2935_v10, %v5909_v15  ;;  %v2152_v10 = vpop.permute.xlu0 %2151 }
 0x229   : > { %v2698_v7 = vmul.f32 %v3594_v63, %v2697_v58  ;;  %v3054_v46 = vsub.f32 1.0, %v3030_v50  ;;  %v1058_v47 = vadd.f32 %v1034_v27, %v1005_v13  ;;  %v2515_v29 = vsub.f32 1.0, %v2514_v48  ;;  %vm2520_vm1 = vmor %vm2518_vm0, %vm2519_vm15 }
 0x22a   : > { %v2337_v1 = vmul.f32 0.3275911, %v5932_v55  ;;  %v2525_v4 = vor.u32 1.1754944e-38, %v2524_v60  ;;  %v2993_v30 = vmul.f32 1.442695, %v2959_v24  ;;  %v2287_v57 = vsel %vm2263_vm10, -1.0, %v6095_v36 }
 0x22b   : > { %v2699_v9 = vadd.f32 %v3594_v63, %v2698_v7  ;;  %v3078_v12 = vmul.f32 %v3054_v46, %v2286_v3  ;;  %v2516_v58 = vmul.f32 %v3598_v18, %v2515_v29  ;;  %v963_v46 = vld [vmem:[#allocation2 + $0xd8] sm:$0xff]  ;;  %vm2265_vm15 = vcmp.lt.f32.partialorder %v5928_v20, 0.0 }
 0x22c   : > { %v2361_v25 = vadd.f32 1.0, %v2337_v1  ;;  %v989_v37 = vmul.f32 %v5806_v54, %v963_v46 }
 0x22d   : > { %v2703_v39 = vsel %vm2702_vm13, %v3594_v63, %v2699_v9  ;;  %v3102_v14 = vadd.f32 1.0, %v3078_v12  ;;  %v3660_v63 = vld [vmem:[#allocation2 + $0x9a] sm:$0xff]  ;;  %v2517_v2 = vadd.f32 %v3598_v18, %v2516_v58 }
 0x22e   : > { %v2708_v40 = vsel %vm2705_vm14, %v2707_v56, %v2703_v39  ;;  %v1087_v5 = vmul.f32 %v3660_v63, %v5862_v11  ;;  %3601 = vrcp.f32 %v2361_v25  ;;  %v3600_v56 = vpop.eup %3599  ;;  %v1013_v33 = vadd.f32 %v989_v37, %v5822_v61 }
 0x22f   : > { %v2732_v23 = vmul.f32 1.0614054, %v2708_v40  ;;  %v3126_v42 = vmul.f32 %v3102_v14, %v2214_v45  ;;  %v2521_v52 = vsel %vm2520_vm1, %v3598_v18, %v2517_v2  ;;  %v2550_v18 = vand.u32 2147483647, %v2361_v25 }
 0x230   : > { %v1111_v28 = vadd.f32 %v1087_v5, %v1058_v47  ;;  %v2526_v62 = vsel %vm2523_vm2, %v2525_v4, %v2521_v52  ;;  %v1042_v63 = vmul.f32 %v5852_v32, %v1016_v26  ;;  %vm2546_vm6 = vweird.f32 %v2361_v25 }
 0x231   : > { %v2756_v6 = vadd.f32 -1.4531521, %v2732_v23  ;;  %3151 = vst.msk [vmem:[%s5012_s9 + $0x48] sm:$0xff] %vm3141_vm9, %v3126_v42  ;;  %v2719_v34 = vmul.f32 1.0614054, %v2526_v62  ;;  %v2552_v42 = vand.u32 2147483648, %v2361_v25 }
 0x232   : > { %v5936_v49 = vsel %vm574_vm4, %v1111_v28, %v2136_v19  ;;  %vm2551_vm8 = vcmp.eq.f32.partialorder %v2550_v18, 8.507059e+37  ;;  %v2937_v28 = vsub.f32 0.0, %v5932_v55 }
 0x233   : > { %v2780_v51 = vmul.f32 %v2756_v6, %v2708_v40  ;;  %v5939_v50 = vmul.f32 0.70710677, %v5936_v49  ;;  %v2743_v53 = vadd.f32 -1.4531521, %v2719_v34  ;;  %v2553_v16 = vor.u32 1.1754944e-38, %v2552_v42 }
 0x234   : > { %v3602_v35 = vpop.eup %3601  ;;  %v2961_v46 = vmul.f32 %v2937_v28, %v5932_v55 }
 0x235   : > { %v2804_v8 = vadd.f32 1.4214138, %v2780_v51  ;;  %v5943_v17 = vand.u32 2147483647, %v5939_v50  ;;  %v2767_v12 = vmul.f32 %v2743_v53, %v2526_v62  ;;  %v2542_v13 = vmul.f32 %v3602_v35, %v2361_v25 }
 0x236   : > { %vm2547_vm5 = vweird.f32 %v3602_v35  ;;  %v2997_v55 = vmul.f32 1.442695, %v2961_v46  ;;  %vm2266_vm1 = vcmp.lt.f32.partialorder %v5939_v50, 0.0 }
 0x237   : > { %v2828_v21 = vmul.f32 %v2804_v8, %v2708_v40  ;;  %v2338_v3 = vmul.f32 0.3275911, %v5943_v17  ;;  %v2791_v14 = vadd.f32 1.4214138, %v2767_v12  ;;  %v2543_v6 = vsub.f32 1.0, %v2542_v13  ;;  %vm2548_vm7 = vmor %vm2546_vm6, %vm2547_vm5 }
 0x238   : > { %v2290_v50 = vsel %vm2266_vm1, -1.0, %v6095_v36 }
 0x239   : > { %v2852_v41 = vadd.f32 -0.28449672, %v2828_v21  ;;  %v5948_v23 = vadd.f32 1.0, %v2338_v3  ;;  %v2815_v27 = vmul.f32 %v2791_v14, %v2526_v62  ;;  %v2544_v47 = vmul.f32 %v3602_v35, %v2543_v6 }
 0x23a   : > { %v1066_v21 = vadd.f32 %v1042_v63, %v1013_v33  ;;  %v2938_v14 = vsub.f32 0.0, %v5943_v17 }
 0x23b   : > { %v2876_v7 = vmul.f32 %v2852_v41, %v2708_v40  ;;  %3603 = vrcp.f32 %v5948_v23  ;;  %v2839_v48 = vadd.f32 -0.28449672, %v2815_v27  ;;  %v2545_v29 = vadd.f32 %v3602_v35, %v2544_v47  ;;  %v964_v47 = vld [vmem:[#allocation2 + $0xe0] sm:$0xff] }
 0x23c   : > { %3605 = vpow2.f32 %v2993_v30  ;;  %v1095_v41 = vmul.f32 %v5862_v11, %v1069_v59  ;;  %v2566_v52 = vand.u32 2147483648, %v5948_v23  ;;  %vm2560_vm12 = vweird.f32 %v5948_v23 }
 0x23d   : > { %v2900_v9 = vadd.f32 0.2548296, %v2876_v7  ;;  %v2863_v8 = vmul.f32 %v2839_v48, %v2526_v62  ;;  %v2549_v58 = vsel %vm2548_vm7, %v3602_v35, %v2545_v29  ;;  %v2564_v7 = vand.u32 2147483647, %v5948_v23 }
 0x23e   : > { %v2554_v1 = vsel %vm2551_vm8, %v2553_v16, %v2549_v58  ;;  %3607 = vpow2.f32 %v2997_v55  ;;  %v2962_v42 = vmul.f32 %v2938_v14, %v5943_v17 }
 0x23f   : > { %v2924_v0 = vmul.f32 %v2900_v9, %v2708_v40  ;;  %v2300_v40 = vsel %vm2276_vm3, -1.0, %v6095_v36  ;;  %v2887_v61 = vadd.f32 0.2548296, %v2863_v8  ;;  %v2721_v19 = vmul.f32 1.0614054, %v2554_v1 }
 0x240   : > { %v1119_v9 = vadd.f32 %v1095_v41, %v1066_v21  ;;  %vm2565_vm14 = vcmp.eq.f32.partialorder %v2564_v7, 8.507059e+37  ;;  %v990_v8 = vmul.f32 %v5806_v54, %v964_v47  ;;  %v2289_v54 = vsel %vm2265_vm15, -1.0, %v6095_v36 }
 0x241   : > { %v3044_v39 = vmul.f32 %v3600_v56, %v2924_v0  ;;  %v3604_v60 = vpop.eup %3603  ;;  %v2911_v2 = vmul.f32 %v2887_v61, %v2526_v62  ;;  %v2745_v0 = vadd.f32 -1.4531521, %v2721_v19  ;;  %v1070_v19 = vld [vmem:[#allocation2 + $0xe2] sm:$0xff] }
 0x242   : > { %v2556_v31 = vmul.f32 %v3604_v60, %v5948_v23  ;;  %v3606_v25 = vpop.eup %3605  ;;  %vm2561_vm11 = vweird.f32 %v3604_v60  ;;  %v5967_v3 = vsel %vm574_vm4, %v1119_v9, %v2152_v10  ;;  %v1014_v21 = vadd.f32 %v990_v8, %v5885_v43 }
 0x243   : > { %v3068_v45 = vsub.f32 1.0, %v3044_v39  ;;  %v3031_v34 = vmul.f32 %v3606_v25, %v2911_v2  ;;  %v2769_v56 = vmul.f32 %v2745_v0, %v2554_v1  ;;  %vm2562_vm13 = vmor %vm2560_vm12, %vm2561_vm11  ;;  %v2567_v39 = vor.u32 1.1754944e-38, %v2566_v52 }
 0x244   : > { %v2557_v4 = vsub.f32 1.0, %v2556_v31  ;;  %v5971_v12 = vmul.f32 0.70710677, %v5967_v3  ;;  %v3608_v16 = vpop.eup %3607  ;;  %v2217_v43 = vmul.f32 0.5, %v5923_v38  ;;  %v1096_v10 = vmul.f32 %v5862_v11, %v1070_v19 }
 0x245   : > { %v3092_v15 = vmul.f32 %v3068_v45, %v2300_v40  ;;  %v3055_v62 = vsub.f32 1.0, %v3031_v34  ;;  %v2793_v37 = vadd.f32 1.4214138, %v2769_v56  ;;  %v2215_v40 = vmul.f32 0.5, %v5900_v22 }
 0x246   : > { %v2558_v53 = vmul.f32 %v3604_v60, %v2557_v4  ;;  %v5975_v13 = vand.u32 2147483647, %v5971_v12  ;;  %vm2274_vm6 = vcmp.lt.f32.partialorder %v5971_v12, 0.0 }
 0x247   : > { %v3116_v51 = vadd.f32 1.0, %v3092_v15  ;;  %v3079_v35 = vmul.f32 %v3055_v62, %v2287_v57  ;;  %v2817_v15 = vmul.f32 %v2793_v37, %v2554_v1 }
 0x248   : > { %v2559_v24 = vadd.f32 %v3604_v60, %v2558_v53  ;;  %v2346_v6 = vmul.f32 0.3275911, %v5975_v13 }
 0x249   : > { %v3140_v5 = vmul.f32 %v3116_v51, %v2228_v44  ;;  %v3103_v30 = vadd.f32 1.0, %v3079_v35  ;;  %v2841_v44 = vadd.f32 -0.28449672, %v2817_v15 }
 0x24a   : > { %v2563_v45 = vsel %vm2562_vm13, %v3604_v60, %v2559_v24  ;;  %v2370_v33 = vadd.f32 1.0, %v2346_v6  ;;  %v1017_v60 = vld [vmem:[#allocation2 + $0xe1] sm:$0xff]  ;;  %v2154_v24 = vpop.permute.xlu1 %2153 }
 0x24b   : > { %3165 = vst.msk [vmem:[%s5012_s9 + $0xb8] sm:$0xff] %vm3141_vm9, %v3140_v5  ;;  %v2568_v23 = vsel %vm2565_vm14, %v2567_v39, %v2563_v45  ;;  %v3127_v26 = vmul.f32 %v3103_v30, %v2215_v40  ;;  %v2865_v51 = vmul.f32 %v2841_v44, %v2554_v1  ;;  %v2999_v5 = vmul.f32 1.442695, %v2962_v42 }
 0x24c   : > { %v2722_v27 = vmul.f32 1.0614054, %v2568_v23  ;;  %3609 = vrcp.f32 %v2370_v33  ;;  %v1043_v31 = vmul.f32 %v5852_v32, %v1017_v60  ;;  %v2676_v52 = vand.u32 2147483647, %v2370_v33 }
 0x24d   : > { %3152 = vst.msk [vmem:[%s5012_s9 + $0x50] sm:$0xff] %vm3141_vm9, %v3127_v26  ;;  %v2889_v63 = vadd.f32 0.2548296, %v2865_v51  ;;  %3611 = vpow2.f32 %v2999_v5  ;;  %v2678_v20 = vand.u32 2147483648, %v2370_v33  ;;  %vm2672_vm2 = vweird.f32 %v2370_v33 }
 0x24e   : > { %v2746_v18 = vadd.f32 -1.4531521, %v2722_v27  ;;  %vm2677_vm5 = vcmp.eq.f32.partialorder %v2676_v52, 8.507059e+37  ;;  %v2946_v45 = vsub.f32 0.0, %v5975_v13  ;;  %v2218_v40 = vmul.f32 0.5, %v5936_v49 }
 0x24f   : > { %v2913_v29 = vmul.f32 %v2889_v63, %v2554_v1  ;;  %v1067_v1 = vadd.f32 %v1043_v31, %v1014_v21  ;;  %v2679_v38 = vor.u32 1.1754944e-38, %v2678_v20 }
 0x250   : > { %v2770_v48 = vmul.f32 %v2746_v18, %v2568_v23  ;;  %v2970_v6 = vmul.f32 %v2946_v45, %v5975_v13 }
 0x251   : > { %v3033_v17 = vmul.f32 %v3608_v16, %v2913_v29  ;;  %v1120_v53 = vadd.f32 %v1096_v10, %v1067_v1 }
 0x252   : > { %v2794_v22 = vadd.f32 1.4214138, %v2770_v48  ;;  %v3610_v58 = vpop.eup %3609 }
 0x253   : > { %v3057_v28 = vsub.f32 1.0, %v3033_v17  ;;  %v2668_v2 = vmul.f32 %v3610_v58, %v2370_v33  ;;  %vm2673_vm0 = vweird.f32 %v3610_v58  ;;  %v3612_v0 = vpop.eup %3611  ;;  %v5991_v57 = vsel %vm574_vm4, %v1120_v53, %v2154_v24 }
 0x254   : > { %v2818_v59 = vmul.f32 %v2794_v22, %v2568_v23  ;;  %vm2674_vm3 = vmor %vm2672_vm2, %vm2673_vm0  ;;  %v5996_v35 = vmul.f32 0.70710677, %v5991_v57  ;;  %v3015_v33 = vmul.f32 1.442695, %v2970_v6 }
 0x255   : > { %v3081_v4 = vmul.f32 %v3057_v28, %v2289_v54  ;;  %v2669_v7 = vsub.f32 1.0, %v2668_v2  ;;  %v2226_v54 = vmul.f32 0.5, %v5967_v3 }
 0x256   : > { %v2842_v61 = vadd.f32 -0.28449672, %v2818_v59  ;;  %v2323_v14 = vand.u32 2147483647, %v5996_v35  ;;  %vm2275_vm11 = vcmp.lt.f32.partialorder %v5996_v35, 0.0 }
 0x257   : > { %v3105_v9 = vadd.f32 1.0, %v3081_v4  ;;  %v2670_v32 = vmul.f32 %v3610_v58, %v2669_v7 }
 0x258   : > { %v2866_v41 = vmul.f32 %v2842_v61, %v2568_v23  ;;  %v2347_v27 = vmul.f32 0.3275911, %v2323_v14  ;;  %v2947_v2 = vsub.f32 0.0, %v2323_v14 }
 0x259   : > { %v3129_v46 = vmul.f32 %v3105_v9, %v2217_v43  ;;  %v2671_v56 = vadd.f32 %v3610_v58, %v2670_v32 }
 0x25a   : > { %v2890_v25 = vadd.f32 0.2548296, %v2866_v41  ;;  %v2371_v18 = vadd.f32 1.0, %v2347_v27 }
 0x25b   : > { %3154 = vst.msk [vmem:[%s5012_s9 + $0x60] sm:$0xff] %vm3141_vm9, %v3129_v46  ;;  %v2675_v39 = vsel %vm2674_vm3, %v3610_v58, %v2671_v56  ;;  %v2298_v58 = vsel %vm2274_vm6, -1.0, %v6095_v36  ;;  %v2299_v46 = vsel %vm2275_vm11, -1.0, %v6095_v36  ;;  %v2227_v56 = vmul.f32 0.5, %v5991_v57 }
 0x25c   : > { %v2914_v34 = vmul.f32 %v2890_v25, %v2568_v23  ;;  %v2680_v37 = vsel %vm2677_vm5, %v2679_v38, %v2675_v39  ;;  %3613 = vrcp.f32 %v2371_v18  ;;  %v2692_v29 = vand.u32 2147483648, %v2371_v18 }
 0x25d   : > { %v2730_v23 = vmul.f32 1.0614054, %v2680_v37  ;;  %3615 = vpow2.f32 %v3015_v33  ;;  %v2690_v60 = vand.u32 2147483647, %v2371_v18  ;;  %vm2686_vm7 = vweird.f32 %v2371_v18 }
 0x25e   : > { %v3034_v62 = vmul.f32 %v3612_v0, %v2914_v34  ;;  %v2693_v61 = vor.u32 1.1754944e-38, %v2692_v29  ;;  %v2971_v25 = vmul.f32 %v2947_v2, %v2323_v14 }
 0x25f   : > { %v2754_v15 = vadd.f32 -1.4531521, %v2730_v23  ;;  %vm2691_vm10 = vcmp.eq.f32.partialorder %v2690_v60, 8.507059e+37 }
 0x260   : > { %v3058_v11 = vsub.f32 1.0, %v3034_v62  ;;  %v3017_v52 = vmul.f32 1.442695, %v2971_v25 }
 0x261   : > { %v2778_v44 = vmul.f32 %v2754_v15, %v2680_v37 }
 0x262   : > { %v3082_v55 = vmul.f32 %v3058_v11, %v2290_v50  ;;  %v3614_v47 = vpop.eup %3613  ;;  %3617 = vpow2.f32 %v3017_v52 }
 0x263   : > { %v2802_v42 = vadd.f32 1.4214138, %v2778_v44  ;;  %v2682_v22 = vmul.f32 %v3614_v47, %v2371_v18  ;;  %v3616_v59 = vpop.eup %3615  ;;  %vm2687_vm4 = vweird.f32 %v3614_v47 }
 0x264   : > { %v3106_v30 = vadd.f32 1.0, %v3082_v55  ;;  %vm2688_vm8 = vmor %vm2686_vm7, %vm2687_vm4 }
 0x265   : > { %v2826_v51 = vmul.f32 %v2802_v42, %v2680_v37  ;;  %v2683_v5 = vsub.f32 1.0, %v2682_v22 }
 0x266   : > { %v3130_v26 = vmul.f32 %v3106_v30, %v2218_v40 }
 0x267   : > { %v2850_v48 = vadd.f32 -0.28449672, %v2826_v51  ;;  %v2684_v13 = vmul.f32 %v3614_v47, %v2683_v5 }
 0x268   : > { %3155 = vst.msk [vmem:[%s5012_s9 + $0x68] sm:$0xff] %vm3141_vm9, %v3130_v26  ;;  %v3618_v0 = vpop.eup %3617 }
 0x269   : > { %v2874_v63 = vmul.f32 %v2850_v48, %v2680_v37  ;;  %v2685_v21 = vadd.f32 %v3614_v47, %v2684_v13 }
 0x26b   : > { %v2898_v49 = vadd.f32 0.2548296, %v2874_v63  ;;  %v2689_v31 = vsel %vm2688_vm8, %v3614_v47, %v2685_v21 }
 0x26c   : > { %v2694_v41 = vsel %vm2691_vm10, %v2693_v61, %v2689_v31 }
 0x26d   : > { %v2922_v8 = vmul.f32 %v2898_v49, %v2680_v37  ;;  %v2731_v19 = vmul.f32 1.0614054, %v2694_v41 }
 0x26f   : > { %v3042_v16 = vmul.f32 %v3616_v59, %v2922_v8  ;;  %v2755_v4 = vadd.f32 -1.4531521, %v2731_v19 }
 0x271   : > { %v3066_v17 = vsub.f32 1.0, %v3042_v16  ;;  %v2779_v7 = vmul.f32 %v2755_v4, %v2694_v41 }
 0x273   : > { %v3090_v28 = vmul.f32 %v3066_v17, %v2298_v58  ;;  %v2803_v43 = vadd.f32 1.4214138, %v2779_v7 }
 0x275   : > { %v3114_v1 = vadd.f32 1.0, %v3090_v28  ;;  %v2827_v20 = vmul.f32 %v2803_v43, %v2694_v41 }
 0x277   : > { %v3138_v12 = vmul.f32 %v3114_v1, %v2226_v54  ;;  %v2851_v10 = vadd.f32 -0.28449672, %v2827_v20 }
 0x279   : > { %3163 = vst.msk [vmem:[%s5012_s9 + $0xa8] sm:$0xff] %vm3141_vm9, %v3138_v12  ;;  %v2875_v9 = vmul.f32 %v2851_v10, %v2694_v41 }
 0x27b   : > { %v2899_v34 = vadd.f32 0.2548296, %v2875_v9 }
 0x27d   : > { %v2923_v32 = vmul.f32 %v2899_v34, %v2694_v41 }
 0x27f   : > { %v3043_v3 = vmul.f32 %v3618_v0, %v2923_v32 }
 0x281   : > { %v3067_v53 = vsub.f32 1.0, %v3043_v3 }
 0x283   : > { %v3091_v62 = vmul.f32 %v3067_v53, %v2299_v46 }
 0x285   : > { %v3115_v24 = vadd.f32 1.0, %v3091_v62 }
 0x287   : > { %v3139_v38 = vmul.f32 %v3115_v24, %v2227_v56 }
 0x289   : > { %3164 = vst.msk [vmem:[%s5012_s9 + $0xb0] sm:$0xff] %vm3141_vm9, %v3139_v38 }
 0x28a PF: > { %s16_s25 = sadd.s32 1, %s3699_s25   ;;  %s6119_s21 = smov %s3691_s23 }
 0x28b   : > { %p13_p7 = scmp.ge.s32.totalorder %s16_s25, 6   ;;  %s6120_s22 = smov %s3695_s24 }
 0x28c   : > { %s6121_s23 = smov %s6124_s26  ;;  %s6122_s24 = smov %s6128_s27 }
 0x28d   :  { %15 = sbr.rel (!%p13_p7) target bundleno = 3 (0x3), region = 77 }

</bundles_post_ra>
